<compile_context>
chip_gen: v7x
topology: tpu7x:2x2x1
jax: 0.10.0
libtpu: 0.0.40
codegen_flags: <defaults>
</compile_context>

<pallas_src>
import functools
import math

import jax
import jax.numpy as jnp
from jax import lax
from jax.experimental import pallas as pl
from jax.experimental.pallas import tpu as pltpu

IN_FEATURES = 768
OUT_FEATURES = 192


def _round_up(x: int, m: int) -> int:
    return ((x + m - 1) // m) * m


def _device_kind() -> str:
    try:
        return jax.devices()[0].device_kind.lower()
    except Exception:  # pragma: no cover - conservative fallback
        return ""


def _linear_kernel(x_ref, w_ref, b_ref, o_ref, *, precision):
    # (tm, K) @ (K, N) on the MXU with f32 accumulation, bias fused, one store.
    o_ref[...] = (
        jnp.dot(
            x_ref[...],
            w_ref[...],
            preferred_element_type=jnp.float32,
            precision=precision,
        )
        + b_ref[...]
    ).astype(o_ref.dtype)


def prompt_linear_pallas(
    x2d,
    weight,
    bias,
    *,
    tm_max=None,
    precision=lax.Precision.HIGHEST,
):
    """x2d: (M, 768), weight: (768, 192) [in, out], bias: (192,) -> (M, 192)."""
    M, K = x2d.shape
    Kw, N = weight.shape
    assert K == Kw, f"weight must be (in, out)=(K, N); got {weight.shape} for K={K}"
    assert bias.shape == (N,)

    kind = _device_kind()
    is_v7x = ("v7" in kind) or ("tpu7" in kind) or ("7x" in kind)

    # M-tile: as large as comfortably fits VMEM (amortizes per-step overhead),
    # sublane-(8) aligned. v7x gets bigger tiles (3.2 TB/s HBM makes per-step
    # overhead relatively expensive); for tiny M shrink to the array itself.
    if tm_max is None:
        tm_max = 2048 if is_v7x else 1024
    tm = min(tm_max, _round_up(M, 8))

    # v7x megacore: make sure the single "parallel" axis has work for both
    # TensorCores for mid-size M (split one big tile into two ~even tiles).
    if is_v7x and M >= 512 and pl.cdiv(M, tm) < 2:
        tm = min(tm, _round_up(pl.cdiv(M, 2), 256))

    grid_m = pl.cdiv(M, tm)

    # Scoped-VMEM budget: double-buffered x/out tiles + resident weight/bias.
    itemsize = jnp.dtype(x2d.dtype).itemsize
    db_bytes = 2 * itemsize * (tm * K + tm * N + K * N + N)
    vmem_limit = None
    if db_bytes > 14 * 1024 * 1024:
        # Would overflow a 16 MiB scoped default (v5e) -> raise it explicitly.
        vmem_limit = int(min(db_bytes + (4 << 20), 28 << 20))

    cost = pl.CostEstimate(
        flops=2 * M * K * N,
        bytes_accessed=itemsize * (M * K + K * N + N + M * N),
        transcendentals=0,
    )

    bias2d = bias.reshape(1, N)
    kernel = functools.partial(_linear_kernel, precision=precision)

    return pl.pallas_call(
        kernel,
        out_shape=jax.ShapeDtypeStruct((M, N), x2d.dtype),
        grid_spec=pltpu.PrefetchScalarGridSpec(
            num_scalar_prefetch=0,
            grid=(grid_m,),
            in_specs=[
                pl.BlockSpec((tm, K), lambda i: (i, 0)),  # streamed activations
                pl.BlockSpec((K, N), lambda i: (0, 0)),   # full weight, resident
                pl.BlockSpec((1, N), lambda i: (0, 0)),   # bias, resident
            ],
            out_specs=pl.BlockSpec((tm, N), lambda i: (i, 0)),
        ),
        compiler_params=pltpu.CompilerParams(
            dimension_semantics=("parallel",),
            vmem_limit_bytes=vmem_limit,
        ),
        cost_estimate=cost,
    )(x2d, weight, bias2d)


def prompt_forward(x_nhwc, weight_out_in, bias, *, precision=lax.Precision.HIGHEST):
    """Full Prompt.forward: (B, H, W, 768) -> (B, H*W, 192).

    `weight_out_in` uses PyTorch nn.Linear layout (out, in) = (192, 768); it is
    transposed exactly once here, outside the hot loop.
    """
    B, H, W, C = x_nhwc.shape
    assert C == IN_FEATURES, f"expected last dim {IN_FEATURES}, got {C}"
    assert weight_out_in.shape == (OUT_FEATURES, IN_FEATURES), (
        f"expected PyTorch-layout weight {(OUT_FEATURES, IN_FEATURES)}, "
        f"got {weight_out_in.shape}"
    )
    assert bias.shape == (OUT_FEATURES,)

    # permute(0,3,1,2).flatten(2).transpose(1,2) == reshape(B, H*W, C)
    x2d = x_nhwc.reshape(B * H * W, C)
    w_in_out = weight_out_in.T  # one-time transpose to (in, out)
    out2d = prompt_linear_pallas(x2d, w_in_out, bias, precision=precision)
    return out2d.reshape(B, H * W, OUT_FEATURES)


if __name__ == "__main__":
    key = jax.random.PRNGKey(0)
    k_x, k_w, k_b = jax.random.split(key, 3)

    # Small shapes consistent with the module: last dim must be 768.
    B, H, W = 2, 4, 4
    x = jax.random.normal(k_x, (B, H, W, IN_FEATURES), dtype=jnp.float32)

    # Deterministic synthetic nn.Linear(768, 192) parameters in PyTorch layout.
    bound = 1.0 / math.sqrt(IN_FEATURES)
    weight_pt = jax.random.uniform(
        k_w, (OUT_FEATURES, IN_FEATURES), jnp.float32, -bound, bound
    )
    bias = jax.random.uniform(k_b, (OUT_FEATURES,), jnp.float32, -bound, bound)

    out = jax.block_until_ready(prompt_forward(x, weight_pt, bias))

    # Pure-JAX reference of the same math (same HIGHEST precision).
    ref = (
        jnp.dot(
            x.reshape(B * H * W, IN_FEATURES),
            weight_pt.T,
            precision=lax.Precision.HIGHEST,
        )
        + bias
    ).reshape(B, H * W, OUT_FEATURES)
    assert out.shape == (B, H * W, OUT_FEATURES)
    assert bool(jnp.allclose(out, ref, atol=5e-4, rtol=5e-4))

    # Ragged M (not a multiple of the tile) to exercise the cdiv grid /
    # masked trailing block path.
    Mr = 2 * 14 * 14  # 392 rows
    xr = jax.random.normal(k_x, (Mr, IN_FEATURES), dtype=jnp.float32)
    outr = jax.block_until_ready(prompt_linear_pallas(xr, weight_pt.T, bias))
    refr = jnp.dot(xr, weight_pt.T, precision=lax.Precision.HIGHEST) + bias
    assert bool(jnp.allclose(outr, refr, atol=5e-4, rtol=5e-4))

    # TODO(synk): optional bf16 activation/weight path (keeps f32 accumulate)
    # would roughly halve HBM traffic; gated on model accuracy requirements.

    print("KERNEL_OK")
</pallas_src>

<mosaic_0001>
module attributes {stable_mosaic.version = 11 : i64} {
  func.func @_linear_kernel(%arg0: i32, %arg1: memref<32x768xf32, #tpu.memory_space<vmem>>, %arg2: memref<768x192xf32, #tpu.memory_space<vmem>>, %arg3: memref<1x192xf32, #tpu.memory_space<vmem>>, %arg4: memref<32x192xf32, #tpu.memory_space<vmem>>) attributes {dimension_semantics = [#tpu.dimension_semantics<parallel>], iteration_bounds = array<i64: 1>, scalar_prefetch = 0 : i64, scratch_operands = 0 : i64, tpu.core_type = #tpu.core_type<tc>, window_params = [{transform_indices = @transform_0, window_bounds = array<i64: 32, 768>}, {pipeline_mode = #tpu.pipeline_mode<synchronous>, transform_indices = @transform_1, window_bounds = array<i64: 768, 192>}, {pipeline_mode = #tpu.pipeline_mode<synchronous>, transform_indices = @transform_2, window_bounds = array<i64: 1, 192>}, {transform_indices = @transform_3, window_bounds = array<i64: 32, 192>}]} {
    %c0 = arith.constant 0 : index
    %c0_0 = arith.constant 0 : index
    %0 = vector.load %arg1[%c0, %c0_0] : memref<32x768xf32, #tpu.memory_space<vmem>>, vector<32x768xf32>
    %c0_1 = arith.constant 0 : index
    %c0_2 = arith.constant 0 : index
    %1 = vector.load %arg2[%c0_1, %c0_2] : memref<768x192xf32, #tpu.memory_space<vmem>>, vector<768x192xf32>
    %cst = arith.constant dense<0.000000e+00> : vector<32x192xf32>
    %2 = tpu.matmul %0, %1, %cst {dimension_numbers = #tpu.dot_dimension_numbers<[1], [0], [0], [1], [0, 0, 1, 1], [], []>, precision = #tpu.contract_precision<fp32>} : vector<32x768xf32>, vector<768x192xf32>, vector<32x192xf32> -> vector<32x192xf32>
    %c0_3 = arith.constant 0 : index
    %c0_4 = arith.constant 0 : index
    %3 = vector.load %arg3[%c0_3, %c0_4] : memref<1x192xf32, #tpu.memory_space<vmem>>, vector<1x192xf32>
    %4 = vector.broadcast %3 : vector<1x192xf32> to vector<32x192xf32>
    %5 = arith.addf %2, %4 : vector<32x192xf32>
    %c0_5 = arith.constant 0 : index
    %c0_6 = arith.constant 0 : index
    %6 = vector.load %arg4[%c0_5, %c0_6] : memref<32x192xf32, #tpu.memory_space<vmem>>, vector<32x192xf32>
    tpu.vector_store %arg4[%c0_5, %c0_6], %5 {strides = array<i32>} : memref<32x192xf32, #tpu.memory_space<vmem>>, vector<32x192xf32>,
    return
  }
  func.func @transform_0(%arg0: i32) -> (i32, i32) {
    %c0_i32 = arith.constant 0 : i32
    %c0_i32_0 = arith.constant 0 : i32
    return %arg0, %c0_i32 : i32, i32
  }
  func.func @transform_1(%arg0: i32) -> (i32, i32) {
    %c0_i32 = arith.constant 0 : i32
    %c0_i32_0 = arith.constant 0 : i32
    %c0_i32_1 = arith.constant 0 : i32
    return %c0_i32, %c0_i32_0 : i32, i32
  }
  func.func @transform_2(%arg0: i32) -> (i32, i32) {
    %c0_i32 = arith.constant 0 : i32
    %c0_i32_0 = arith.constant 0 : i32
    %c0_i32_1 = arith.constant 0 : i32
    return %c0_i32, %c0_i32_0 : i32, i32
  }
  func.func @transform_3(%arg0: i32) -> (i32, i32) {
    %c0_i32 = arith.constant 0 : i32
    %c0_i32_0 = arith.constant 0 : i32
    return %arg0, %c0_i32 : i32, i32
  }
}

</mosaic_0001>

<bundles_post_ra>
// kernel: tpu_custom_call.1
= control target key start
LH: loop header
LB: loop body
LE: loop exit
PB: predicated region body
PF: predicated region fallthrough
CT: control target
= control target key end

     0   :  { %s9461_s0 = inlined_call_operand.vmem [shape: f32[32,768], index: 0, kind: input, shape index: {}]   ;;  %s9462_s1 = inlined_call_operand.vmem [shape: f32[768,192], index: 1, kind: input, shape index: {}]   ;;  %s9463_s2 = inlined_call_operand.vmem [shape: f32[1,192], index: 2, kind: input, shape index: {}]   ;;  %s9464_s3 = inlined_call_operand.hbm [shape: f32[32,192], index: 3, kind: output, shape index: {}]  }
   0x1   :  { %v40_v0 = vld [vmem:[%s9462_s1 + $0x8] sm:$0xff]  ;;  %v42_v1 = vld [vmem:[%s9462_s1 + $0x18] sm:$0xff]  ;;  %v39_v7 = vld [vmem:[%s9462_s1] sm:$0xff] }
   0x2   :  { %v104_v2 = vld [vmem:[%s9462_s1 + $0x208] sm:$0xff]  ;;  %v243_v3 = vand.u32 4294901760, %v40_v0  ;;  %v247_v4 = vand.u32 4294901760, %v42_v1  ;;  %v106_v5 = vld [vmem:[%s9462_s1 + $0x218] sm:$0xff]  ;;  %v41_v8 = vld [vmem:[%s9462_s1 + $0x10] sm:$0xff]  ;;  %v245_v10 = vand.u32 4294901760, %v39_v7 }
   0x3   :  { %v1713_v6 = vand.u32 4294901760, %v104_v2  ;;  %v1717_v9 = vand.u32 4294901760, %v106_v5  ;;  %v249_v11 = vand.u32 4294901760, %v41_v8  ;;  %v103_v12 = vld [vmem:[%s9462_s1 + $0x200] sm:$0xff]  ;;  %v105_v13 = vld [vmem:[%s9462_s1 + $0x210] sm:$0xff]  ;;  %v44_v14 = vld [vmem:[%s9462_s1 + $0x28] sm:$0xff] }
   0x4   :  { %v6051_v15 = vpack.c.bf16 %v247_v4, %v243_v3  ;;  %v6053_v16 = vsub.f32 %v40_v0, %v243_v3  ;;  %v6055_v17 = vsub.f32 %v42_v1, %v247_v4  ;;  %v46_v19 = vld [vmem:[%s9462_s1 + $0x38] sm:$0xff]  ;;  %v108_v20 = vld [vmem:[%s9462_s1 + $0x228] sm:$0xff]  ;;  %v6074_v25 = vsub.f32 %v39_v7, %v245_v10  ;;  %v43_v26 = vld [vmem:[%s9462_s1 + $0x20] sm:$0xff] }
   0x5   :  { %v6057_v18 = vsub.f32 %v104_v2, %v1713_v6  ;;  %v110_v21 = vld [vmem:[%s9462_s1 + $0x238] sm:$0xff]  ;;  %v6068_v22 = vpack.c.bf16 %v1717_v9, %v1713_v6  ;;  %v6070_v23 = vsub.f32 %v106_v5, %v1717_v9  ;;  %v6072_v24 = vpack.c.bf16 %v249_v11, %v245_v10  ;;  %v45_v31 = vld [vmem:[%s9462_s1 + $0x30] sm:$0xff]  ;;  %v107_v36 = vld [vmem:[%s9462_s1 + $0x220] sm:$0xff] }
   0x6   :  { %10283 = vst [vmem:[#allocation5_spill] sm:$0xff] %v6051_v15  ;;  %4679 = vmatprep.subr.bf16.mxu1 %v6051_v15  ;;  %v6080_v27 = vsub.f32 %v41_v8, %v249_v11  ;;  %v1715_v28 = vand.u32 4294901760, %v103_v12  ;;  %v1719_v29 = vand.u32 4294901760, %v105_v13  ;;  %v251_v30 = vand.u32 4294901760, %v44_v14  ;;  %v109_v37 = vld [vmem:[%s9462_s1 + $0x230] sm:$0xff]  ;;  %v48_v42 = vld [vmem:[%s9462_s1 + $0x48] sm:$0xff] }
   0x7   :  { %10284 = vst [vmem:[#allocation6_spill] sm:$0xff] %v6057_v18  ;;  %10285 = vst [vmem:[#allocation7_spill] sm:$0xff] %v6068_v22  ;;  %5255 = vmatprep.subr.bf16.mxu0 %v6068_v22  ;;  %4681 = vmatpush1.bf16.msra.mxu1 %v6072_v24  ;;  %v255_v32 = vand.u32 4294901760, %v46_v19  ;;  %v1721_v33 = vand.u32 4294901760, %v108_v20  ;;  %v1725_v34 = vand.u32 4294901760, %v110_v21  ;;  %v253_v35 = vand.u32 4294901760, %v43_v26 }
   0x8   :  { %10286 = vst [vmem:[#allocation8_spill] sm:$0xff] %v6070_v23  ;;  %10287 = vst [vmem:[#allocation9_spill] sm:$0xff] %v6072_v24  ;;  %v6093_v38 = vpack.c.bf16 %v1719_v29, %v1715_v28  ;;  %v6095_v39 = vsub.f32 %v103_v12, %v1715_v28  ;;  %v6097_v40 = vsub.f32 %v105_v13, %v1719_v29  ;;  %v50_v43 = vld [vmem:[%s9462_s1 + $0x58] sm:$0xff]  ;;  %v112_v44 = vld [vmem:[%s9462_s1 + $0x248] sm:$0xff]  ;;  %v257_v51 = vand.u32 4294901760, %v45_v31 }
   0x9   :  { %10288 = vst [vmem:[#allocation10_spill] sm:$0xff] %v6080_v27  ;;  %v6099_v41 = vsub.f32 %v44_v14, %v251_v30  ;;  %v6110_v45 = vpack.c.bf16 %v255_v32, %v251_v30  ;;  %v6112_v46 = vsub.f32 %v46_v19, %v255_v32  ;;  %v6114_v47 = vpack.c.bf16 %v1725_v34, %v1721_v33  ;;  %v114_v49 = vld [vmem:[%s9462_s1 + $0x258] sm:$0xff]  ;;  %v47_v58 = vld [vmem:[%s9462_s1 + $0x40] sm:$0xff]  ;;  %v49_v59 = vld [vmem:[%s9462_s1 + $0x50] sm:$0xff] }
   0xa   :  { %10289 = vst [vmem:[#allocation11_spill] sm:$0xff] %v6093_v38  ;;  %10290 = vst [vmem:[#allocation12_spill] sm:$0xff] %v6095_v39  ;;  %v6116_v48 = vsub.f32 %v108_v20, %v1721_v33  ;;  %5257 = vmatpush1.bf16.msra.mxu0 %v6093_v38  ;;  %v6122_v50 = vsub.f32 %v110_v21, %v1725_v34  ;;  %v6124_v52 = vsub.f32 %v43_v26, %v253_v35  ;;  %v111_v0 = vld [vmem:[%s9462_s1 + $0x240] sm:$0xff]  ;;  %v113_v1 = vld [vmem:[%s9462_s1 + $0x250] sm:$0xff] }
   0xb   :  { %10291 = vst [vmem:[#allocation13_spill] sm:$0xff] %v6097_v40  ;;  %10292 = vst [vmem:[#allocation14_spill] sm:$0xff] %v6099_v41  ;;  %v1723_v53 = vand.u32 4294901760, %v107_v36  ;;  %4683 = vmatprep.subr.bf16.mxu1 %v6110_v45  ;;  %5259 = vmatprep.subr.bf16.mxu0 %v6114_v47  ;;  %v1727_v54 = vand.u32 4294901760, %v109_v37  ;;  %v259_v55 = vand.u32 4294901760, %v48_v42  ;;  %v263_v56 = vand.u32 4294901760, %v50_v43 }
   0xc   :  { %10293 = vst [vmem:[#allocation15_spill] sm:$0xff] %v6110_v45  ;;  %10294 = vst [vmem:[#allocation16_spill] sm:$0xff] %v6112_v46  ;;  %v1729_v57 = vand.u32 4294901760, %v112_v44  ;;  %v6134_v60 = vpack.c.bf16 %v257_v51, %v253_v35  ;;  %v6136_v61 = vsub.f32 %v45_v31, %v257_v51  ;;  %v1733_v63 = vand.u32 4294901760, %v114_v49  ;;  %v52_v2 = vld [vmem:[%s9462_s1 + $0x68] sm:$0xff]  ;;  %v54_v7 = vld [vmem:[%s9462_s1 + $0x78] sm:$0xff] }
   0xd   :  { %10295 = vst [vmem:[#allocation17_spill] sm:$0xff] %v6114_v47  ;;  %10296 = vst [vmem:[#allocation18_spill] sm:$0xff] %v6116_v48  ;;  %v6138_v62 = vsub.f32 %v107_v36, %v1723_v53  ;;  %v6149_v3 = vpack.c.bf16 %v1727_v54, %v1723_v53  ;;  %v6151_v4 = vsub.f32 %v109_v37, %v1727_v54  ;;  %v116_v8 = vld [vmem:[%s9462_s1 + $0x268] sm:$0xff]  ;;  %v118_v9 = vld [vmem:[%s9462_s1 + $0x278] sm:$0xff]  ;;  %v261_v14 = vand.u32 4294901760, %v47_v58 }
   0xe   :  { %10297 = vst [vmem:[#allocation19_spill] sm:$0xff] %v6122_v50  ;;  %10298 = vst [vmem:[#allocation20_spill] sm:$0xff] %v6124_v52  ;;  %v6153_v5 = vpack.c.bf16 %v263_v56, %v259_v55  ;;  %v6155_v6 = vsub.f32 %v48_v42, %v259_v55  ;;  %4685 = vmatpush1.bf16.msra.mxu1 %v6134_v60  ;;  %v6167_v10 = vsub.f32 %v50_v43, %v263_v56  ;;  %v51_v31 = vld [vmem:[%s9462_s1 + $0x60] sm:$0xff]  ;;  %v53_v36 = vld [vmem:[%s9462_s1 + $0x70] sm:$0xff] }
   0xf   :  { %10299 = vst [vmem:[#allocation21_spill] sm:$0xff] %v6134_v60  ;;  %10300 = vst [vmem:[#allocation22_spill] sm:$0xff] %v6136_v61  ;;  %v6169_v11 = vpack.c.bf16 %v1733_v63, %v1729_v57  ;;  %v6171_v12 = vsub.f32 %v112_v44, %v1729_v57  ;;  %v6173_v13 = vsub.f32 %v114_v49, %v1733_v63  ;;  %5261 = vmatpush1.bf16.msra.mxu0 %v6149_v3  ;;  %v115_v37 = vld [vmem:[%s9462_s1 + $0x260] sm:$0xff]  ;;  %v117_v42 = vld [vmem:[%s9462_s1 + $0x270] sm:$0xff] }
  0x10   :  { %10301 = vst [vmem:[#allocation23_spill] sm:$0xff] %v6138_v62  ;;  %10302 = vst [vmem:[#allocation24_spill] sm:$0xff] %v6149_v3  ;;  %4687 = vmatprep.subr.bf16.mxu1 %v6153_v5  ;;  %v265_v19 = vand.u32 4294901760, %v49_v59  ;;  %v1731_v20 = vand.u32 4294901760, %v111_v0  ;;  %v1735_v21 = vand.u32 4294901760, %v113_v1  ;;  %v267_v26 = vand.u32 4294901760, %v52_v2 }
  0x11   :  { %10303 = vst [vmem:[#allocation25_spill] sm:$0xff] %v6151_v4  ;;  %10304 = vst [vmem:[#allocation26_spill] sm:$0xff] %v6153_v5  ;;  %5263 = vmatprep.subr.bf16.mxu0 %v6169_v11  ;;  %v271_v28 = vand.u32 4294901760, %v54_v7  ;;  %v1737_v29 = vand.u32 4294901760, %v116_v8  ;;  %v1741_v30 = vand.u32 4294901760, %v118_v9  ;;  %v6183_v33 = vsub.f32 %v47_v58, %v261_v14  ;;  %v56_v53 = vld [vmem:[%s9462_s1 + $0x88] sm:$0xff] }
  0x12   :  { %10305 = vst [vmem:[#allocation27_spill] sm:$0xff] %v6155_v6  ;;  %10306 = vst [vmem:[#allocation28_spill] sm:$0xff] %v6167_v10  ;;  %v6181_v32 = vpack.c.bf16 %v265_v19, %v261_v14  ;;  %v6185_v34 = vsub.f32 %v49_v59, %v265_v19  ;;  %v6187_v35 = vpack.c.bf16 %v1735_v21, %v1731_v20  ;;  %v58_v54 = vld [vmem:[%s9462_s1 + $0x98] sm:$0xff]  ;;  %v120_v55 = vld [vmem:[%s9462_s1 + $0x288] sm:$0xff]  ;;  %v269_v59 = vand.u32 4294901760, %v51_v31 }
  0x13   :  { %10307 = vst [vmem:[#allocation29_spill] sm:$0xff] %v6169_v11  ;;  %10308 = vst [vmem:[#allocation30_spill] sm:$0xff] %v6171_v12  ;;  %v6198_v43 = vsub.f32 %v111_v0, %v1731_v20  ;;  %v6200_v44 = vsub.f32 %v113_v1, %v1735_v21  ;;  %v6202_v49 = vpack.c.bf16 %v271_v28, %v267_v26  ;;  %v273_v0 = vand.u32 4294901760, %v53_v36  ;;  %v122_v14 = vld [vmem:[%s9462_s1 + $0x298] sm:$0xff]  ;;  %v55_v21 = vld [vmem:[%s9462_s1 + $0x80] sm:$0xff] }
  0x14   :  { %10309 = vst [vmem:[#allocation31_spill] sm:$0xff] %v6173_v13  ;;  %10310 = vst [vmem:[#allocation32_spill] sm:$0xff] %v6181_v32  ;;  %v6204_v51 = vsub.f32 %v52_v2, %v267_v26  ;;  %4689 = vmatpush1.bf16.msra.mxu1 %v6181_v32  ;;  %5265 = vmatpush1.bf16.msra.mxu0 %v6187_v35  ;;  %v6217_v56 = vsub.f32 %v54_v7, %v271_v28  ;;  %v1739_v1 = vand.u32 4294901760, %v115_v37  ;;  %v119_v26 = vld [vmem:[%s9462_s1 + $0x280] sm:$0xff]  ;;  %v60_v32 = vld [vmem:[%s9462_s1 + $0xa8] sm:$0xff] }
  0x15   :  { %10311 = vst [vmem:[#allocation33_spill] sm:$0xff] %v6183_v33  ;;  %10312 = vst [vmem:[#allocation34_spill] sm:$0xff] %v6185_v34  ;;  %v6219_v57 = vpack.c.bf16 %v1741_v30, %v1737_v29  ;;  %v6221_v58 = vsub.f32 %v116_v8, %v1737_v29  ;;  %4691 = vmatprep.subr.bf16.mxu1 %v6202_v49  ;;  %v6224_v63 = vsub.f32 %v118_v9, %v1741_v30  ;;  %v57_v9 = vld [vmem:[%s9462_s1 + $0x90] sm:$0xff]  ;;  %v62_v5 = vld [vmem:[%s9462_s1 + $0xb8] sm:$0xff] }
  0x16   :  { %10313 = vst [vmem:[#allocation35_spill] sm:$0xff] %v6187_v35  ;;  %10314 = vst [vmem:[#allocation36_spill] sm:$0xff] %v6198_v43  ;;  %v1743_v2 = vand.u32 4294901760, %v117_v42  ;;  %v6230_v7 = vsub.f32 %v51_v31, %v269_v59  ;;  %v275_v19 = vand.u32 4294901760, %v56_v53  ;;  %v279_v20 = vand.u32 4294901760, %v58_v54  ;;  %v123_v35 = vld [vmem:[%s9462_s1 + $0x2a0] sm:$0xff] }
  0x17   :  { %10315 = vst [vmem:[#allocation37_spill] sm:$0xff] %v6200_v44  ;;  %10316 = vst [vmem:[#allocation38_spill] sm:$0xff] %v6202_v49  ;;  %5267 = vmatprep.subr.bf16.mxu0 %v6219_v57  ;;  %v1745_v8 = vand.u32 4294901760, %v120_v55  ;;  %v6241_v28 = vpack.c.bf16 %v273_v0, %v269_v59  ;;  %v6243_v29 = vsub.f32 %v53_v36, %v273_v0  ;;  %v121_v49 = vld [vmem:[%s9462_s1 + $0x290] sm:$0xff]  ;;  %v277_v45 = vand.u32 4294901760, %v55_v21  ;;  %v64_v11 = vld [vmem:[%s9462_s1 + $0xc8] sm:$0xff] }
  0x18   :  { %10317 = vst [vmem:[#allocation39_spill] sm:$0xff] %v6204_v51  ;;  %10318 = vst [vmem:[#allocation40_spill] sm:$0xff] %v6217_v56  ;;  %v6245_v30 = vpack.c.bf16 %v1743_v2, %v1739_v1  ;;  %v6247_v31 = vsub.f32 %v115_v37, %v1739_v1  ;;  %v6258_v59 = vsub.f32 %v117_v42, %v1743_v2  ;;  %v1749_v1 = vand.u32 4294901760, %v122_v14  ;;  %v66_v3 = vld [vmem:[%s9462_s1 + $0xd8] sm:$0xff] }
  0x19   :  { %10319 = vst [vmem:[#allocation41_spill] sm:$0xff] %v6219_v57  ;;  %10320 = vst [vmem:[#allocation42_spill] sm:$0xff] %v6221_v58  ;;  %v6260_v36 = vpack.c.bf16 %v279_v20, %v275_v19  ;;  %v6262_v0 = vsub.f32 %v56_v53, %v275_v19  ;;  %v6264_v37 = vsub.f32 %v58_v54, %v279_v20  ;;  %4693 = vmatpush1.bf16.msra.mxu1 %v6241_v28  ;;  %v124_v53 = vld [vmem:[%s9462_s1 + $0x2a8] sm:$0xff]  ;;  %v126_v54 = vld [vmem:[%s9462_s1 + $0x2b8] sm:$0xff] }
  0x1a   :  { %10321 = vst [vmem:[#allocation43_spill] sm:$0xff] %v6224_v63  ;;  %10322 = vst [vmem:[#allocation44_spill] sm:$0xff] %v6230_v7  ;;  %5269 = vmatpush1.bf16.msra.mxu0 %v6245_v30  ;;  %v6268_v60 = vsub.f32 %v120_v55, %v1745_v8  ;;  %v281_v24 = vand.u32 4294901760, %v57_v9  ;;  %v1747_v15 = vand.u32 4294901760, %v119_v26  ;;  %v1751_v42 = vand.u32 4294901760, %v121_v49 }
  0x1b   :  { %10323 = vst [vmem:[#allocation45_spill] sm:$0xff] %v6241_v28  ;;  %10324 = vst [vmem:[#allocation46_spill] sm:$0xff] %v6243_v29  ;;  %4695 = vmatprep.subr.bf16.mxu1 %v6260_v36  ;;  %v283_v2 = vand.u32 4294901760, %v60_v32  ;;  %v287_v57 = vand.u32 4294901760, %v62_v5  ;;  %v6277_v19 = vpack.c.bf16 %v1749_v1, %v1745_v8  ;;  %v6279_v55 = vsub.f32 %v122_v14, %v1749_v1 }
  0x1c   :  { %10325 = vst [vmem:[#allocation47_spill] sm:$0xff] %v6245_v30  ;;  %10326 = vst [vmem:[#allocation48_spill] sm:$0xff] %v6247_v31  ;;  %v6281_v20 = vpack.c.bf16 %v281_v24, %v277_v45  ;;  %v6283_v28 = vsub.f32 %v55_v21, %v277_v45  ;;  %v61_v30 = vld [vmem:[%s9462_s1 + $0xb0] sm:$0xff]  ;;  %v6294_v8 = vsub.f32 %v57_v9, %v281_v24  ;;  %v1753_v9 = vand.u32 4294901760, %v124_v53 }
  0x1d   :  { %10327 = vst [vmem:[#allocation49_spill] sm:$0xff] %v6258_v59  ;;  %10328 = vst [vmem:[#allocation50_spill] sm:$0xff] %v6260_v36  ;;  %v59_v36 = vld [vmem:[%s9462_s1 + $0xa0] sm:$0xff]  ;;  %v6296_v14 = vpack.c.bf16 %v1751_v42, %v1747_v15  ;;  %v6298_v1 = vsub.f32 %v119_v26, %v1747_v15  ;;  %v6300_v45 = vsub.f32 %v121_v49, %v1751_v42  ;;  %v125_v21 = vld [vmem:[%s9462_s1 + $0x2b0] sm:$0xff]  ;;  %5271 = vmatprep.subr.bf16.mxu0 %v6277_v19 }
  0x1e   :  { %10329 = vst [vmem:[#allocation51_spill] sm:$0xff] %v6262_v0  ;;  %10330 = vst [vmem:[#allocation52_spill] sm:$0xff] %v6264_v37  ;;  %4697 = vmatpush1.bf16.msra.mxu1 %v6281_v20  ;;  %v6313_v15 = vpack.c.bf16 %v287_v57, %v283_v2  ;;  %v6315_v24 = vsub.f32 %v60_v32, %v283_v2  ;;  %v6317_v49 = vsub.f32 %v62_v5, %v287_v57  ;;  %v128_v32 = vld [vmem:[%s9462_s1 + $0x2c8] sm:$0xff]  ;;  %v130_v5 = vld [vmem:[%s9462_s1 + $0x2d8] sm:$0xff] }
  0x1f   :  { %10331 = vst [vmem:[#allocation53_spill] sm:$0xff] %v6268_v60  ;;  %10332 = vst [vmem:[#allocation54_spill] sm:$0xff] %v6277_v19  ;;  %5273 = vmatpush1.bf16.msra.mxu0 %v6296_v14  ;;  %v1757_v26 = vand.u32 4294901760, %v126_v54  ;;  %v285_v42 = vand.u32 4294901760, %v59_v36  ;;  %v289_v47 = vand.u32 4294901760, %v61_v30  ;;  %v1755_v38 = vand.u32 4294901760, %v123_v35 }
  0x20   :  { %10333 = vst [vmem:[#allocation55_spill] sm:$0xff] %v6279_v55  ;;  %10334 = vst [vmem:[#allocation56_spill] sm:$0xff] %v6281_v20  ;;  %4699 = vmatprep.subr.bf16.mxu1 %v6313_v15  ;;  %v6321_v22 = vsub.f32 %v124_v53, %v1753_v9  ;;  %v1759_v19 = vand.u32 4294901760, %v125_v21  ;;  %v295_v20 = vand.u32 4294901760, %v66_v3  ;;  %v63_v53 = vld [vmem:[%s9462_s1 + $0xc0] sm:$0xff] }
  0x21   :  { %10335 = vst [vmem:[#allocation57_spill] sm:$0xff] %v6283_v28  ;;  %10336 = vst [vmem:[#allocation58_spill] sm:$0xff] %v6294_v8  ;;  %v6329_v57 = vpack.c.bf16 %v1757_v26, %v1753_v9  ;;  %v6331_v2 = vsub.f32 %v126_v54, %v1757_v26  ;;  %v6346_v9 = vsub.f32 %v61_v30, %v289_v47  ;;  %v1761_v30 = vand.u32 4294901760, %v128_v32 }
  0x22   :  { %10337 = vst [vmem:[#allocation59_spill] sm:$0xff] %v6296_v14  ;;  %10338 = vst [vmem:[#allocation60_spill] sm:$0xff] %v6298_v1  ;;  %v6333_v14 = vpack.c.bf16 %v289_v47, %v285_v42  ;;  %v6348_v54 = vpack.c.bf16 %v1759_v19, %v1755_v38  ;;  %v6350_v26 = vsub.f32 %v123_v35, %v1755_v38 }
  0x23   :  { %10339 = vst [vmem:[#allocation61_spill] sm:$0xff] %v6300_v45  ;;  %10340 = vst [vmem:[#allocation62_spill] sm:$0xff] %v6313_v15  ;;  %v291_v45 = vand.u32 4294901760, %v64_v11  ;;  %v6335_v15 = vsub.f32 %v59_v36, %v285_v42  ;;  %v6352_v36 = vsub.f32 %v125_v21, %v1759_v19  ;;  %v129_v42 = vld [vmem:[%s9462_s1 + $0x2d0] sm:$0xff]  ;;  %5275 = vmatprep.subr.bf16.mxu0 %v6329_v57  ;;  %v1765_v19 = vand.u32 4294901760, %v130_v5 }
  0x24   :  { %10341 = vst [vmem:[#allocation63_spill] sm:$0xff] %v6315_v24  ;;  %10342 = vst [vmem:[#allocation64_spill] sm:$0xff] %v6317_v49  ;;  %v127_v49 = vld [vmem:[%s9462_s1 + $0x2c0] sm:$0xff]  ;;  %4701 = vmatpush1.bf16.msra.mxu1 %v6333_v14  ;;  %v6369_v35 = vsub.f32 %v66_v3, %v295_v20  ;;  %5277 = vmatpush1.bf16.msra.mxu0 %v6348_v54  ;;  %v293_v21 = vand.u32 4294901760, %v63_v53  ;;  %v134_v3 = vld [vmem:[%s9462_s1 + $0x2f8] sm:$0xff] }
  0x25   :  { %10343 = vst [vmem:[#allocation65_spill] sm:$0xff] %v6321_v22  ;;  %10344 = vst [vmem:[#allocation66_spill] sm:$0xff] %v6329_v57  ;;  %v65_v22 = vld [vmem:[%s9462_s1 + $0xd0] sm:$0xff]  ;;  %v6365_v38 = vpack.c.bf16 %v295_v20, %v291_v45  ;;  %v6367_v47 = vsub.f32 %v64_v11, %v291_v45  ;;  %v1767_v57 = vand.u32 4294901760, %v129_v42  ;;  %v132_v11 = vld [vmem:[%s9462_s1 + $0x2e8] sm:$0xff]  ;;  %v6381_v20 = vpack.c.bf16 %v1765_v19, %v1761_v30 }
  0x26   :  { %10345 = vst [vmem:[#allocation67_spill] sm:$0xff] %v6331_v2  ;;  %10346 = vst [vmem:[#allocation68_spill] sm:$0xff] %v6333_v14  ;;  %v70_v2 = vld [vmem:[%s9462_s1 + $0xf8] sm:$0xff]  ;;  %v6383_v45 = vsub.f32 %v130_v5, %v1765_v19 }
  0x27   :  { %10347 = vst [vmem:[#allocation69_spill] sm:$0xff] %v6335_v15  ;;  %10348 = vst [vmem:[#allocation70_spill] sm:$0xff] %v6346_v9  ;;  %v68_v15 = vld [vmem:[%s9462_s1 + $0xe8] sm:$0xff]  ;;  %4703 = vmatprep.subr.bf16.mxu1 %v6365_v38  ;;  %v6373_v9 = vsub.f32 %v128_v32, %v1761_v30  ;;  %v303_v14 = vand.u32 4294901760, %v70_v2  ;;  %v67_v32 = vld [vmem:[%s9462_s1 + $0xe0] sm:$0xff]  ;;  %5279 = vmatprep.subr.bf16.mxu0 %v6381_v20 }
  0x28   :  { %10349 = vst [vmem:[#allocation71_spill] sm:$0xff] %v6348_v54  ;;  %10350 = vst [vmem:[#allocation72_spill] sm:$0xff] %v6350_v26  ;;  %v1763_v26 = vand.u32 4294901760, %v127_v49  ;;  %v299_v24 = vand.u32 4294901760, %v68_v15 }
  0x29   :  { %10351 = vst [vmem:[#allocation73_spill] sm:$0xff] %v6352_v36  ;;  %10352 = vst [vmem:[#allocation74_spill] sm:$0xff] %v6365_v38  ;;  %v297_v36 = vand.u32 4294901760, %v65_v22  ;;  %v6387_v38 = vsub.f32 %v63_v53, %v293_v21  ;;  %v6404_v53 = vsub.f32 %v129_v42, %v1767_v57  ;;  %v301_v42 = vand.u32 4294901760, %v67_v32 }
  0x2a   :  { %10353 = vst [vmem:[#allocation75_spill] sm:$0xff] %v6367_v47  ;;  %10354 = vst [vmem:[#allocation76_spill] sm:$0xff] %v6369_v35  ;;  %v131_v35 = vld [vmem:[%s9462_s1 + $0x2e0] sm:$0xff]  ;;  %v6400_v5 = vpack.c.bf16 %v1767_v57, %v1763_v26  ;;  %v6402_v19 = vsub.f32 %v127_v49, %v1763_v26  ;;  %v6419_v49 = vsub.f32 %v68_v15, %v299_v24  ;;  %v1769_v26 = vand.u32 4294901760, %v132_v11  ;;  %v136_v15 = vld [vmem:[%s9462_s1 + $0x308] sm:$0xff] }
  0x2b   :  { %10355 = vst [vmem:[#allocation77_spill] sm:$0xff] %v6373_v9  ;;  %10356 = vst [vmem:[#allocation78_spill] sm:$0xff] %v6381_v20  ;;  %v6385_v54 = vpack.c.bf16 %v297_v36, %v293_v21  ;;  %v69_v9 = vld [vmem:[%s9462_s1 + $0xf0] sm:$0xff]  ;;  %v6398_v30 = vsub.f32 %v65_v22, %v297_v36  ;;  %v6417_v22 = vpack.c.bf16 %v303_v14, %v299_v24  ;;  %v1773_v36 = vand.u32 4294901760, %v134_v3 }
  0x2c   :  { %10357 = vst [vmem:[#allocation79_spill] sm:$0xff] %v6383_v45  ;;  %10359 = vst [vmem:[#allocation81_spill] sm:$0xff] %v6387_v38  ;;  %v133_v21 = vld [vmem:[%s9462_s1 + $0x2f0] sm:$0xff]  ;;  %v72_v38 = vld [vmem:[%s9462_s1 + $0x108] sm:$0xff]  ;;  %v6421_v57 = vsub.f32 %v70_v2, %v303_v14  ;;  %5281 = vmatpush1.bf16.msra.mxu0 %v6400_v5 }
  0x2d   :  { %10358 = vst [vmem:[#allocation80_spill] sm:$0xff] %v6385_v54  ;;  %10360 = vst [vmem:[#allocation82_spill] sm:$0xff] %v6398_v30  ;;  %v74_v45 = vld [vmem:[%s9462_s1 + $0x118] sm:$0xff]  ;;  %4705 = vmatpush1.bf16.msra.mxu1 %v6385_v54  ;;  %v6425_v30 = vsub.f32 %v132_v11, %v1769_v26  ;;  %v1775_v20 = vand.u32 4294901760, %v133_v21  ;;  %v307_v47 = vand.u32 4294901760, %v72_v38  ;;  %v6433_v24 = vpack.c.bf16 %v1773_v36, %v1769_v26  ;;  %v71_v11 = vld [vmem:[%s9462_s1 + $0x100] sm:$0xff] }
  0x2e   :  { %10361 = vst [vmem:[#allocation83_spill] sm:$0xff] %v6400_v5  ;;  %10362 = vst [vmem:[#allocation84_spill] sm:$0xff] %v6402_v19  ;;  %v1771_v19 = vand.u32 4294901760, %v131_v35  ;;  %4707 = vmatprep.subr.bf16.mxu1 %v6417_v22  ;;  %v311_v54 = vand.u32 4294901760, %v74_v45  ;;  %v138_v14 = vld [vmem:[%s9462_s1 + $0x318] sm:$0xff]  ;;  %v6435_v2 = vsub.f32 %v134_v3, %v1773_v36 }
  0x2f   :  { %10363 = vst [vmem:[#allocation85_spill] sm:$0xff] %v6404_v53  ;;  %10364 = vst [vmem:[#allocation86_spill] sm:$0xff] %v6417_v22  ;;  %v305_v53 = vand.u32 4294901760, %v69_v9  ;;  %v6439_v22 = vsub.f32 %v67_v32, %v301_v42  ;;  %v6456_v32 = vsub.f32 %v133_v21, %v1775_v20  ;;  %5283 = vmatprep.subr.bf16.mxu0 %v6433_v24  ;;  %v309_v21 = vand.u32 4294901760, %v71_v11 }
  0x30   :  { %10365 = vst [vmem:[#allocation87_spill] sm:$0xff] %v6419_v49  ;;  %10366 = vst [vmem:[#allocation88_spill] sm:$0xff] %v6421_v57  ;;  %v135_v57 = vld [vmem:[%s9462_s1 + $0x300] sm:$0xff]  ;;  %v6452_v3 = vpack.c.bf16 %v1775_v20, %v1771_v19  ;;  %v6454_v36 = vsub.f32 %v131_v35, %v1771_v19  ;;  %v6471_v35 = vsub.f32 %v72_v38, %v307_v47  ;;  %v1777_v19 = vand.u32 4294901760, %v136_v15  ;;  %v140_v38 = vld [vmem:[%s9462_s1 + $0x328] sm:$0xff] }
  0x31   :  { %10367 = vst [vmem:[#allocation89_spill] sm:$0xff] %v6425_v30  ;;  %10368 = vst [vmem:[#allocation90_spill] sm:$0xff] %v6433_v24  ;;  %v6437_v5 = vpack.c.bf16 %v305_v53, %v301_v42  ;;  %v73_v30 = vld [vmem:[%s9462_s1 + $0x110] sm:$0xff]  ;;  %v6450_v26 = vsub.f32 %v69_v9, %v305_v53  ;;  %v6469_v9 = vpack.c.bf16 %v311_v54, %v307_v47  ;;  %v1781_v53 = vand.u32 4294901760, %v138_v14 }
  0x32   :  { %10369 = vst [vmem:[#allocation91_spill] sm:$0xff] %v6435_v2  ;;  %10371 = vst [vmem:[#allocation93_spill] sm:$0xff] %v6439_v22  ;;  %v137_v42 = vld [vmem:[%s9462_s1 + $0x310] sm:$0xff]  ;;  %v76_v22 = vld [vmem:[%s9462_s1 + $0x128] sm:$0xff]  ;;  %v6473_v20 = vsub.f32 %v74_v45, %v311_v54  ;;  %5285 = vmatpush1.bf16.msra.mxu0 %v6452_v3 }
  0x33   :  { %10370 = vst [vmem:[#allocation92_spill] sm:$0xff] %v6437_v5  ;;  %10372 = vst [vmem:[#allocation94_spill] sm:$0xff] %v6450_v26  ;;  %v78_v2 = vld [vmem:[%s9462_s1 + $0x138] sm:$0xff]  ;;  %4709 = vmatpush1.bf16.msra.mxu1 %v6437_v5  ;;  %v6477_v26 = vsub.f32 %v136_v15, %v1777_v19  ;;  %v1783_v24 = vand.u32 4294901760, %v137_v42  ;;  %v315_v49 = vand.u32 4294901760, %v76_v22  ;;  %v6485_v47 = vpack.c.bf16 %v1781_v53, %v1777_v19  ;;  %v75_v15 = vld [vmem:[%s9462_s1 + $0x120] sm:$0xff] }
  0x34   :  { %10373 = vst [vmem:[#allocation95_spill] sm:$0xff] %v6452_v3  ;;  %10374 = vst [vmem:[#allocation96_spill] sm:$0xff] %v6454_v36  ;;  %v1779_v36 = vand.u32 4294901760, %v135_v57  ;;  %4711 = vmatprep.subr.bf16.mxu1 %v6469_v9  ;;  %v319_v5 = vand.u32 4294901760, %v78_v2  ;;  %v142_v54 = vld [vmem:[%s9462_s1 + $0x338] sm:$0xff]  ;;  %v6487_v45 = vsub.f32 %v138_v14, %v1781_v53 }
  0x35   :  { %10375 = vst [vmem:[#allocation97_spill] sm:$0xff] %v6456_v32  ;;  %10376 = vst [vmem:[#allocation98_spill] sm:$0xff] %v6469_v9  ;;  %v313_v32 = vand.u32 4294901760, %v73_v30  ;;  %v6491_v9 = vsub.f32 %v71_v11, %v309_v21  ;;  %v6508_v11 = vsub.f32 %v137_v42, %v1783_v24  ;;  %5287 = vmatprep.subr.bf16.mxu0 %v6485_v47  ;;  %v317_v42 = vand.u32 4294901760, %v75_v15 }
  0x36   :  { %10377 = vst [vmem:[#allocation99_spill] sm:$0xff] %v6471_v35  ;;  %10378 = vst [vmem:[#allocation100_spill] sm:$0xff] %v6473_v20  ;;  %v139_v20 = vld [vmem:[%s9462_s1 + $0x320] sm:$0xff]  ;;  %v6504_v14 = vpack.c.bf16 %v1783_v24, %v1779_v36  ;;  %v6506_v53 = vsub.f32 %v135_v57, %v1779_v36  ;;  %v6523_v57 = vsub.f32 %v76_v22, %v315_v49  ;;  %v1785_v36 = vand.u32 4294901760, %v140_v38  ;;  %v144_v22 = vld [vmem:[%s9462_s1 + $0x348] sm:$0xff] }
  0x37   :  { %10379 = vst [vmem:[#allocation101_spill] sm:$0xff] %v6477_v26  ;;  %10380 = vst [vmem:[#allocation102_spill] sm:$0xff] %v6485_v47  ;;  %v6489_v3 = vpack.c.bf16 %v313_v32, %v309_v21  ;;  %v77_v26 = vld [vmem:[%s9462_s1 + $0x130] sm:$0xff]  ;;  %v6502_v19 = vsub.f32 %v73_v30, %v313_v32  ;;  %v6521_v30 = vpack.c.bf16 %v319_v5, %v315_v49  ;;  %v1789_v32 = vand.u32 4294901760, %v142_v54  ;;  %v79_v49 = vld [vmem:[%s9462_s1 + $0x140] sm:$0xff] }
  0x38   :  { %10381 = vst [vmem:[#allocation103_spill] sm:$0xff] %v6487_v45  ;;  %10383 = vst [vmem:[#allocation105_spill] sm:$0xff] %v6491_v9  ;;  %v141_v21 = vld [vmem:[%s9462_s1 + $0x330] sm:$0xff]  ;;  %v80_v9 = vld [vmem:[%s9462_s1 + $0x148] sm:$0xff]  ;;  %v6525_v24 = vsub.f32 %v78_v2, %v319_v5  ;;  %5289 = vmatpush1.bf16.msra.mxu0 %v6504_v14 }
  0x39   :  { %10382 = vst [vmem:[#allocation104_spill] sm:$0xff] %v6489_v3  ;;  %10384 = vst [vmem:[#allocation106_spill] sm:$0xff] %v6502_v19  ;;  %v82_v45 = vld [vmem:[%s9462_s1 + $0x158] sm:$0xff]  ;;  %4713 = vmatpush1.bf16.msra.mxu1 %v6489_v3  ;;  %v6529_v19 = vsub.f32 %v140_v38, %v1785_v36  ;;  %v1791_v47 = vand.u32 4294901760, %v141_v21  ;;  %v323_v35 = vand.u32 4294901760, %v80_v9  ;;  %v6540_v2 = vpack.c.bf16 %v1789_v32, %v1785_v36 }
  0x3a   :  { %10385 = vst [vmem:[#allocation107_spill] sm:$0xff] %v6504_v14  ;;  %10386 = vst [vmem:[#allocation108_spill] sm:$0xff] %v6506_v53  ;;  %v1787_v53 = vand.u32 4294901760, %v139_v20  ;;  %4715 = vmatprep.subr.bf16.mxu1 %v6521_v30  ;;  %v327_v3 = vand.u32 4294901760, %v82_v45  ;;  %v146_v5 = vld [vmem:[%s9462_s1 + $0x358] sm:$0xff]  ;;  %v6546_v14 = vsub.f32 %v75_v15, %v317_v42 }
  0x3b   :  { %10387 = vst [vmem:[#allocation109_spill] sm:$0xff] %v6508_v11  ;;  %10388 = vst [vmem:[#allocation110_spill] sm:$0xff] %v6521_v30  ;;  %v321_v11 = vand.u32 4294901760, %v77_v26  ;;  %v6542_v30 = vsub.f32 %v142_v54, %v1789_v32  ;;  %v6563_v15 = vsub.f32 %v141_v21, %v1791_v47 }
  0x3c   :  { %10389 = vst [vmem:[#allocation111_spill] sm:$0xff] %v6523_v57  ;;  %10390 = vst [vmem:[#allocation112_spill] sm:$0xff] %v6525_v24  ;;  %v143_v24 = vld [vmem:[%s9462_s1 + $0x340] sm:$0xff]  ;;  %v145_v57 = vld [vmem:[%s9462_s1 + $0x350] sm:$0xff]  ;;  %v6559_v54 = vpack.c.bf16 %v1791_v47, %v1787_v53  ;;  %v6561_v32 = vsub.f32 %v139_v20, %v1787_v53 }
  0x3d   :  { %10391 = vst [vmem:[#allocation113_spill] sm:$0xff] %v6529_v19  ;;  %10392 = vst [vmem:[#allocation114_spill] sm:$0xff] %v6540_v2  ;;  %v6544_v38 = vpack.c.bf16 %v321_v11, %v317_v42  ;;  %v81_v19 = vld [vmem:[%s9462_s1 + $0x150] sm:$0xff]  ;;  %v6557_v36 = vsub.f32 %v77_v26, %v321_v11  ;;  %v84_v42 = vld [vmem:[%s9462_s1 + $0x168] sm:$0xff] }
  0x3e   :  { %10393 = vst [vmem:[#allocation115_spill] sm:$0xff] %v6542_v30  ;;  %10395 = vst [vmem:[#allocation117_spill] sm:$0xff] %v6546_v14  ;;  %v86_v14 = vld [vmem:[%s9462_s1 + $0x178] sm:$0xff] }
  0x3f   :  { %10394 = vst [vmem:[#allocation116_spill] sm:$0xff] %v6544_v38  ;;  %10396 = vst [vmem:[#allocation118_spill] sm:$0xff] %v6557_v36 }
  0x40   :  { %10397 = vst [vmem:[#allocation119_spill] sm:$0xff] %v6559_v54  ;;  %10398 = vst [vmem:[#allocation120_spill] sm:$0xff] %v6561_v32 }
  0x41   :  { %10399 = vst [vmem:[#allocation121_spill] sm:$0xff] %v6563_v15 }
  0x42   :  { %8 = vsyncpa [#allocation3], 0  ;;  %5291 = vmatprep.subr.bf16.mxu0 %v6540_v2  ;;  %4717 = vmatpush1.bf16.msra.mxu1 %v6544_v38  ;;  %v6573_v26 = vpack.c.bf16 %v327_v3, %v323_v35  ;;  %v6575_v11 = vsub.f32 %v80_v9, %v323_v35  ;;  %v6577_v20 = vsub.f32 %v82_v45, %v327_v3  ;;  %v1793_v47 = vand.u32 4294901760, %v144_v22  ;;  %v148_v9 = vld [vmem:[%s9462_s1 + $0x368] sm:$0xff]  ;;  %v150_v3 = vld [vmem:[%s9462_s1 + $0x378] sm:$0xff] }
  0x43   :  { %5293 = vmatpush1.bf16.msra.mxu0 %v6559_v54  ;;  %v1797_v53 = vand.u32 4294901760, %v146_v5  ;;  %v325_v21 = vand.u32 4294901760, %v79_v49  ;;  %v329_v15 = vand.u32 4294901760, %v81_v19  ;;  %v1795_v32 = vand.u32 4294901760, %v143_v24 }
  0x44   :  { %10400 = vst [vmem:[#allocation122_spill] sm:$0xff] %v6573_v26  ;;  %10401 = vst [vmem:[#allocation123_spill] sm:$0xff] %v6575_v11  ;;  %4719 = vmatprep.subr.bf16.mxu1 %v6573_v26  ;;  %v6581_v36 = vsub.f32 %v144_v22, %v1793_v47  ;;  %v1799_v2 = vand.u32 4294901760, %v145_v57  ;;  %v331_v30 = vand.u32 4294901760, %v84_v42  ;;  %v335_v38 = vand.u32 4294901760, %v86_v14  ;;  %v83_v22 = vld [vmem:[%s9462_s1 + $0x160] sm:$0xff] }
  0x45   :  { %10402 = vst [vmem:[#allocation124_spill] sm:$0xff] %v6577_v20  ;;  %v6589_v35 = vpack.c.bf16 %v1797_v53, %v1793_v47  ;;  %v6591_v45 = vsub.f32 %v146_v5, %v1797_v53  ;;  %v6593_v54 = vpack.c.bf16 %v329_v15, %v325_v21  ;;  %v6595_v26 = vsub.f32 %v79_v49, %v325_v21  ;;  %v147_v20 = vld [vmem:[%s9462_s1 + $0x360] sm:$0xff]  ;;  %v149_v21 = vld [vmem:[%s9462_s1 + $0x370] sm:$0xff] }
  0x46   :  { %10403 = vst [vmem:[#allocation125_spill] sm:$0xff] %v6581_v36  ;;  %v85_v36 = vld [vmem:[%s9462_s1 + $0x170] sm:$0xff]  ;;  %v6606_v47 = vsub.f32 %v81_v19, %v329_v15  ;;  %v6608_v5 = vpack.c.bf16 %v1799_v2, %v1795_v32  ;;  %v6610_v53 = vsub.f32 %v143_v24, %v1795_v32  ;;  %v6612_v49 = vsub.f32 %v145_v57, %v1799_v2 }
  0x47   :  { %10404 = vst [vmem:[#allocation126_spill] sm:$0xff] %v6589_v35  ;;  %10405 = vst [vmem:[#allocation127_spill] sm:$0xff] %v6591_v45  ;;  %v90_v45 = vld [vmem:[%s9462_s1 + $0x198] sm:$0xff]  ;;  %5295 = vmatprep.subr.bf16.mxu0 %v6589_v35  ;;  %4721 = vmatpush1.bf16.msra.mxu1 %v6593_v54  ;;  %v6625_v19 = vpack.c.bf16 %v335_v38, %v331_v30  ;;  %v6627_v57 = vsub.f32 %v84_v42, %v331_v30  ;;  %v1801_v2 = vand.u32 4294901760, %v148_v9  ;;  %v152_v30 = vld [vmem:[%s9462_s1 + $0x388] sm:$0xff]  ;;  %vm4654_vm0 = vcmask 523264  }
  0x48   :  { %10406 = vst [vmem:[#allocation128_spill] sm:$0xff] %v6593_v54  ;;  %10407 = vst [vmem:[#allocation129_spill] sm:$0xff] %v6595_v26  ;;  %v88_v26 = vld [vmem:[%s9462_s1 + $0x188] sm:$0xff]  ;;  %v6629_v24 = vsub.f32 %v86_v14, %v335_v38  ;;  %5297 = vmatpush1.bf16.msra.mxu0 %v6608_v5  ;;  %v1805_v32 = vand.u32 4294901760, %v150_v3  ;;  %v333_v15 = vand.u32 4294901760, %v83_v22  ;;  %v1807_v35 = vand.u32 4294901760, %v149_v21 }
  0x49   :  { %10408 = vst [vmem:[#allocation130_spill] sm:$0xff] %v6606_v47  ;;  %10409 = vst [vmem:[#allocation131_spill] sm:$0xff] %v6608_v5  ;;  %4723 = vmatprep.subr.bf16.mxu1 %v6625_v19  ;;  %v6633_v47 = vsub.f32 %v148_v9, %v1801_v2  ;;  %v339_v11 = vand.u32 4294901760, %v88_v26  ;;  %v343_v54 = vand.u32 4294901760, %v90_v45  ;;  %v154_v14 = vld [vmem:[%s9462_s1 + $0x398] sm:$0xff]  ;;  %v87_v9 = vld [vmem:[%s9462_s1 + $0x180] sm:$0xff] }
  0x4a   :  { %10410 = vst [vmem:[#allocation132_spill] sm:$0xff] %v6610_v53  ;;  %10411 = vst [vmem:[#allocation133_spill] sm:$0xff] %v6612_v49  ;;  %v337_v49 = vand.u32 4294901760, %v85_v36  ;;  %v1803_v53 = vand.u32 4294901760, %v147_v20  ;;  %v6641_v38 = vpack.c.bf16 %v1805_v32, %v1801_v2  ;;  %v6643_v42 = vsub.f32 %v150_v3, %v1805_v32 }
  0x4b   :  { %10412 = vst [vmem:[#allocation134_spill] sm:$0xff] %v6625_v19  ;;  %10413 = vst [vmem:[#allocation135_spill] sm:$0xff] %v6627_v57  ;;  %v6647_v19 = vsub.f32 %v83_v22, %v333_v15  ;;  %v6664_v22 = vsub.f32 %v149_v21, %v1807_v35  ;;  %v341_v21 = vand.u32 4294901760, %v87_v9 }
  0x4c   :  { %10414 = vst [vmem:[#allocation136_spill] sm:$0xff] %v6629_v24  ;;  %10415 = vst [vmem:[#allocation137_spill] sm:$0xff] %v6633_v47  ;;  %v6645_v5 = vpack.c.bf16 %v337_v49, %v333_v15  ;;  %v89_v47 = vld [vmem:[%s9462_s1 + $0x190] sm:$0xff]  ;;  %v151_v24 = vld [vmem:[%s9462_s1 + $0x380] sm:$0xff]  ;;  %v6658_v2 = vsub.f32 %v85_v36, %v337_v49  ;;  %v6660_v3 = vpack.c.bf16 %v1807_v35, %v1803_v53  ;;  %5299 = vmatprep.subr.bf16.mxu0 %v6641_v38 }
  0x4d   :  { %10416 = vst [vmem:[#allocation138_spill] sm:$0xff] %v6641_v38  ;;  %10417 = vst [vmem:[#allocation139_spill] sm:$0xff] %v6643_v42  ;;  %v6662_v32 = vsub.f32 %v147_v20, %v1803_v53  ;;  %v153_v15 = vld [vmem:[%s9462_s1 + $0x390] sm:$0xff]  ;;  %v94_v42 = vld [vmem:[%s9462_s1 + $0x1b8] sm:$0xff]  ;;  %v6677_v36 = vpack.c.bf16 %v343_v54, %v339_v11  ;;  %v6679_v20 = vsub.f32 %v88_v26, %v339_v11  ;;  %v1809_v53 = vand.u32 4294901760, %v152_v30 }
  0x4e   :  { %10418 = vst [vmem:[#allocation140_spill] sm:$0xff] %v6645_v5  ;;  %10419 = vst [vmem:[#allocation141_spill] sm:$0xff] %v6647_v19  ;;  %v92_v19 = vld [vmem:[%s9462_s1 + $0x1a8] sm:$0xff]  ;;  %4725 = vmatpush1.bf16.msra.mxu1 %v6645_v5  ;;  %v6681_v35 = vsub.f32 %v90_v45, %v343_v54  ;;  %5301 = vmatpush1.bf16.msra.mxu0 %v6660_v3  ;;  %v1813_v49 = vand.u32 4294901760, %v154_v14  ;;  %v1815_v38 = vand.u32 4294901760, %v153_v15  ;;  %v351_v5 = vand.u32 4294901760, %v94_v42 }
  0x4f   :  { %10420 = vst [vmem:[#allocation142_spill] sm:$0xff] %v6658_v2  ;;  %10421 = vst [vmem:[#allocation143_spill] sm:$0xff] %v6660_v3  ;;  %4727 = vmatprep.subr.bf16.mxu1 %v6677_v36  ;;  %v6685_v2 = vsub.f32 %v152_v30, %v1809_v53  ;;  %v347_v57 = vand.u32 4294901760, %v92_v19  ;;  %v156_v26 = vld [vmem:[%s9462_s1 + $0x3a8] sm:$0xff]  ;;  %v158_v54 = vld [vmem:[%s9462_s1 + $0x3b8] sm:$0xff] }
  0x50   :  { %10422 = vst [vmem:[#allocation144_spill] sm:$0xff] %v6662_v32  ;;  %10423 = vst [vmem:[#allocation145_spill] sm:$0xff] %v6664_v22  ;;  %v345_v22 = vand.u32 4294901760, %v89_v47  ;;  %v1811_v32 = vand.u32 4294901760, %v151_v24  ;;  %v6693_v11 = vpack.c.bf16 %v1813_v49, %v1809_v53  ;;  %v6695_v45 = vsub.f32 %v154_v14, %v1813_v49  ;;  %v91_v30 = vld [vmem:[%s9462_s1 + $0x1a0] sm:$0xff] }
  0x51   :  { %10424 = vst [vmem:[#allocation146_spill] sm:$0xff] %v6677_v36  ;;  %10425 = vst [vmem:[#allocation147_spill] sm:$0xff] %v6679_v20  ;;  %v6699_v36 = vsub.f32 %v87_v9, %v341_v21  ;;  %v6716_v9 = vsub.f32 %v153_v15, %v1815_v38  ;;  %v349_v15 = vand.u32 4294901760, %v91_v30 }
  0x52   :  { %10426 = vst [vmem:[#allocation148_spill] sm:$0xff] %v6681_v35  ;;  %10427 = vst [vmem:[#allocation149_spill] sm:$0xff] %v6685_v2  ;;  %v6697_v3 = vpack.c.bf16 %v345_v22, %v341_v21  ;;  %v93_v2 = vld [vmem:[%s9462_s1 + $0x1b0] sm:$0xff]  ;;  %v155_v35 = vld [vmem:[%s9462_s1 + $0x3a0] sm:$0xff]  ;;  %v6710_v53 = vsub.f32 %v89_v47, %v345_v22  ;;  %v6712_v14 = vpack.c.bf16 %v1815_v38, %v1811_v32  ;;  %5303 = vmatprep.subr.bf16.mxu0 %v6693_v11 }
  0x53   :  { %10428 = vst [vmem:[#allocation150_spill] sm:$0xff] %v6693_v11  ;;  %10429 = vst [vmem:[#allocation151_spill] sm:$0xff] %v6695_v45  ;;  %v6714_v49 = vsub.f32 %v151_v24, %v1811_v32  ;;  %v157_v21 = vld [vmem:[%s9462_s1 + $0x3b0] sm:$0xff]  ;;  %v98_v45 = vld [vmem:[%s9462_s1 + $0x1d8] sm:$0xff]  ;;  %v6729_v47 = vpack.c.bf16 %v351_v5, %v347_v57  ;;  %v6731_v24 = vsub.f32 %v92_v19, %v347_v57  ;;  %v1817_v32 = vand.u32 4294901760, %v156_v26 }
  0x54   :  { %10430 = vst [vmem:[#allocation152_spill] sm:$0xff] %v6697_v3  ;;  %10431 = vst [vmem:[#allocation153_spill] sm:$0xff] %v6699_v36  ;;  %v96_v36 = vld [vmem:[%s9462_s1 + $0x1c8] sm:$0xff]  ;;  %4729 = vmatpush1.bf16.msra.mxu1 %v6697_v3  ;;  %v6733_v38 = vsub.f32 %v94_v42, %v351_v5  ;;  %5305 = vmatpush1.bf16.msra.mxu0 %v6712_v14  ;;  %v1821_v22 = vand.u32 4294901760, %v158_v54  ;;  %v1823_v11 = vand.u32 4294901760, %v157_v21  ;;  %v359_v3 = vand.u32 4294901760, %v98_v45 }
  0x55   :  { %10432 = vst [vmem:[#allocation154_spill] sm:$0xff] %v6710_v53  ;;  %10433 = vst [vmem:[#allocation155_spill] sm:$0xff] %v6712_v14  ;;  %4731 = vmatprep.subr.bf16.mxu1 %v6729_v47  ;;  %v6737_v53 = vsub.f32 %v156_v26, %v1817_v32  ;;  %v355_v20 = vand.u32 4294901760, %v96_v36  ;;  %v160_v19 = vld [vmem:[%s9462_s1 + $0x3c8] sm:$0xff]  ;;  %v162_v5 = vld [vmem:[%s9462_s1 + $0x3d8] sm:$0xff] }
  0x56   :  { %10434 = vst [vmem:[#allocation156_spill] sm:$0xff] %v6714_v49  ;;  %10435 = vst [vmem:[#allocation157_spill] sm:$0xff] %v6716_v9  ;;  %v353_v9 = vand.u32 4294901760, %v93_v2  ;;  %v1819_v49 = vand.u32 4294901760, %v155_v35  ;;  %v6745_v57 = vpack.c.bf16 %v1821_v22, %v1817_v32  ;;  %v6747_v42 = vsub.f32 %v158_v54, %v1821_v22  ;;  %v95_v26 = vld [vmem:[%s9462_s1 + $0x1c0] sm:$0xff] }
  0x57   :  { %10436 = vst [vmem:[#allocation158_spill] sm:$0xff] %v6729_v47  ;;  %10437 = vst [vmem:[#allocation159_spill] sm:$0xff] %v6731_v24  ;;  %v6751_v47 = vsub.f32 %v91_v30, %v349_v15  ;;  %v6768_v30 = vsub.f32 %v157_v21, %v1823_v11  ;;  %v357_v21 = vand.u32 4294901760, %v95_v26 }
  0x58   :  { %10438 = vst [vmem:[#allocation160_spill] sm:$0xff] %v6733_v38  ;;  %10439 = vst [vmem:[#allocation161_spill] sm:$0xff] %v6737_v53  ;;  %v6749_v14 = vpack.c.bf16 %v353_v9, %v349_v15  ;;  %v97_v53 = vld [vmem:[%s9462_s1 + $0x1d0] sm:$0xff]  ;;  %v159_v38 = vld [vmem:[%s9462_s1 + $0x3c0] sm:$0xff]  ;;  %v6762_v32 = vsub.f32 %v93_v2, %v353_v9  ;;  %v6764_v54 = vpack.c.bf16 %v1823_v11, %v1819_v49  ;;  %5307 = vmatprep.subr.bf16.mxu0 %v6745_v57 }
  0x59   :  { %10440 = vst [vmem:[#allocation162_spill] sm:$0xff] %v6745_v57  ;;  %10441 = vst [vmem:[#allocation163_spill] sm:$0xff] %v6747_v42  ;;  %v6766_v22 = vsub.f32 %v155_v35, %v1819_v49  ;;  %v161_v15 = vld [vmem:[%s9462_s1 + $0x3d0] sm:$0xff]  ;;  %v102_v42 = vld [vmem:[%s9462_s1 + $0x1f8] sm:$0xff]  ;;  %v6781_v2 = vpack.c.bf16 %v359_v3, %v355_v20  ;;  %v6783_v35 = vsub.f32 %v96_v36, %v355_v20  ;;  %v1825_v49 = vand.u32 4294901760, %v160_v19 }
  0x5a   :  { %10442 = vst [vmem:[#allocation164_spill] sm:$0xff] %v6749_v14  ;;  %10443 = vst [vmem:[#allocation165_spill] sm:$0xff] %v6751_v47  ;;  %v100_v47 = vld [vmem:[%s9462_s1 + $0x1e8] sm:$0xff]  ;;  %4733 = vmatpush1.bf16.msra.mxu1 %v6749_v14  ;;  %v6785_v11 = vsub.f32 %v98_v45, %v359_v3  ;;  %5309 = vmatpush1.bf16.msra.mxu0 %v6764_v54  ;;  %v1829_v9 = vand.u32 4294901760, %v162_v5  ;;  %v1831_v57 = vand.u32 4294901760, %v161_v15  ;;  %v367_v14 = vand.u32 4294901760, %v102_v42 }
  0x5b   :  { %10444 = vst [vmem:[#allocation166_spill] sm:$0xff] %v6762_v32  ;;  %10445 = vst [vmem:[#allocation167_spill] sm:$0xff] %v6764_v54  ;;  %4735 = vmatprep.subr.bf16.mxu1 %v6781_v2  ;;  %v6789_v32 = vsub.f32 %v160_v19, %v1825_v49  ;;  %v363_v24 = vand.u32 4294901760, %v100_v47  ;;  %v164_v36 = vld [vmem:[%s9462_s1 + $0x3e8] sm:$0xff]  ;;  %v166_v3 = vld [vmem:[%s9462_s1 + $0x3f8] sm:$0xff] }
  0x5c   :  { %10446 = vst [vmem:[#allocation168_spill] sm:$0xff] %v6766_v22  ;;  %10447 = vst [vmem:[#allocation169_spill] sm:$0xff] %v6768_v30  ;;  %v361_v30 = vand.u32 4294901760, %v97_v53  ;;  %v1827_v22 = vand.u32 4294901760, %v159_v38  ;;  %v6797_v20 = vpack.c.bf16 %v1829_v9, %v1825_v49  ;;  %v6799_v45 = vsub.f32 %v162_v5, %v1829_v9  ;;  %v99_v19 = vld [vmem:[%s9462_s1 + $0x1e0] sm:$0xff] }
  0x5d   :  { %10448 = vst [vmem:[#allocation170_spill] sm:$0xff] %v6781_v2  ;;  %10449 = vst [vmem:[#allocation171_spill] sm:$0xff] %v6783_v35  ;;  %v6803_v2 = vsub.f32 %v95_v26, %v357_v21  ;;  %v6820_v26 = vsub.f32 %v161_v15, %v1831_v57  ;;  %v365_v15 = vand.u32 4294901760, %v99_v19 }
  0x5e   :  { %10450 = vst [vmem:[#allocation172_spill] sm:$0xff] %v6785_v11  ;;  %10451 = vst [vmem:[#allocation173_spill] sm:$0xff] %v6789_v32  ;;  %v6801_v54 = vpack.c.bf16 %v361_v30, %v357_v21  ;;  %v101_v32 = vld [vmem:[%s9462_s1 + $0x1f0] sm:$0xff]  ;;  %v163_v11 = vld [vmem:[%s9462_s1 + $0x3e0] sm:$0xff]  ;;  %v6814_v49 = vsub.f32 %v97_v53, %v361_v30  ;;  %v6816_v5 = vpack.c.bf16 %v1831_v57, %v1827_v22  ;;  %5311 = vmatprep.subr.bf16.mxu0 %v6797_v20 }
  0x5f   :  { %10452 = vst [vmem:[#allocation174_spill] sm:$0xff] %v6797_v20  ;;  %10453 = vst [vmem:[#allocation175_spill] sm:$0xff] %v6799_v45  ;;  %v6818_v9 = vsub.f32 %v159_v38, %v1827_v22  ;;  %v165_v21 = vld [vmem:[%s9462_s1 + $0x3f0] sm:$0xff]  ;;  %v6830_v53 = vpack.c.bf16 %v367_v14, %v363_v24  ;;  %v6832_v30 = vsub.f32 %v100_v47, %v363_v24  ;;  %v1833_v57 = vand.u32 4294901760, %v164_v36 }
  0x60   :  { %10454 = vst [vmem:[#allocation176_spill] sm:$0xff] %v6801_v54  ;;  %10455 = vst [vmem:[#allocation177_spill] sm:$0xff] %v6803_v2  ;;  %v16_v2 = vld [vmem:[%s9461_s0 + $0x8] sm:$0xff]  ;;  %4737 = vmatpush1.bf16.msra.mxu1 %v6801_v54  ;;  %v6834_v38 = vsub.f32 %v102_v42, %v367_v14  ;;  %5313 = vmatpush1.bf16.msra.mxu0 %v6816_v5  ;;  %v1837_v22 = vand.u32 4294901760, %v166_v3  ;;  %v1839_v20 = vand.u32 4294901760, %v165_v21  ;;  %v18_v14 = vld [vmem:[%s9461_s0 + $0x18] sm:$0xff] }
  0x61   :  { %10456 = vst [vmem:[#allocation178_spill] sm:$0xff] %v6814_v49  ;;  %10457 = vst [vmem:[#allocation179_spill] sm:$0xff] %v6816_v5  ;;  %4739 = vmatprep.subr.bf16.mxu1 %v6830_v53  ;;  %v6838_v49 = vsub.f32 %v164_v36, %v1833_v57  ;;  %v6840_v45 = vand.u32 4294901760, %v16_v2  ;;  %v6852_v5 = vsub.f32 %v99_v19, %v365_v15  ;;  %v15_v36 = vld [vmem:[%s9461_s0] sm:$0xff]  ;;  %v10474_v19 = vand.u32 4294901760, %v6053_v16 }
  0x62   :  { %10458 = vst [vmem:[#allocation180_spill] sm:$0xff] %v6818_v9  ;;  %10459 = vst [vmem:[#allocation181_spill] sm:$0xff] %v6820_v26  ;;  %v369_v26 = vand.u32 4294901760, %v101_v32  ;;  %v1835_v9 = vand.u32 4294901760, %v163_v11  ;;  %v6846_v47 = vpack.c.bf16 %v1837_v22, %v1833_v57  ;;  %v6848_v24 = vsub.f32 %v166_v3, %v1837_v22 }
  0x63   :  { %10460 = vst [vmem:[#allocation182_spill] sm:$0xff] %v6830_v53  ;;  %10461 = vst [vmem:[#allocation183_spill] sm:$0xff] %v6832_v30  ;;  %v6868_v3 = vsub.f32 %v16_v2, %v6840_v45  ;;  %v439_v57 = vsub.f32 %v6053_v16, %v10474_v19  ;;  %v17_v2 = vld [vmem:[%s9461_s0 + $0x10] sm:$0xff] }
  0x64   :  { %10462 = vst [vmem:[#allocation184_spill] sm:$0xff] %v6834_v38  ;;  %10463 = vst [vmem:[#allocation185_spill] sm:$0xff] %v6838_v49  ;;  %v6850_v42 = vpack.c.bf16 %v369_v26, %v365_v15  ;;  %v6857_v53 = vsub.f32 %v101_v32, %v369_v26  ;;  %v6859_v49 = vpack.c.bf16 %v1839_v20, %v1835_v9  ;;  %5315 = vmatprep.subr.bf16.mxu0 %v6846_v47 }
  0x65   :  { %10464 = vst [vmem:[#allocation186_spill] sm:$0xff] %v6840_v45  ;;  %10465 = vst [vmem:[#allocation187_spill] sm:$0xff] %v6846_v47  ;;  %v6861_v54 = vsub.f32 %v163_v11, %v1835_v9  ;;  %v6863_v38 = vsub.f32 %v165_v21, %v1839_v20  ;;  %v9677_v32 = vand.u32 4294901760, %v6055_v17  ;;  %v6874_v26 = vand.u32 4294901760, %v18_v14 }
  0x66   :  { %10466 = vst [vmem:[#allocation188_spill] sm:$0xff] %v6848_v24  ;;  %10467 = vst [vmem:[#allocation189_spill] sm:$0xff] %v6850_v42  ;;  %4741 = vmatpush1.bf16.msra.mxu1 %v6850_v42  ;;  %5317 = vmatpush1.bf16.msra.mxu0 %v6859_v49  ;;  %v9683_v11 = vand.u32 4294901760, %v6057_v18  ;;  %v9682_v20 = vand.u32 4294901760, %v6070_v23  ;;  %v6879_v9 = vand.u32 4294901760, %v15_v36  ;;  %v440_v15 = vand.u32 4294901760, %v439_v57 }
  0x67   :  { %10468 = vst [vmem:[#allocation190_spill] sm:$0xff] %v6852_v5  ;;  %10469 = vst [vmem:[#allocation191_spill] sm:$0xff] %v6857_v53  ;;  %v451_v19 = vsub.f32 %v6055_v17, %v9677_v32  ;;  %v6890_v42 = vsub.f32 %v18_v14, %v6874_v26  ;;  %v10479_v47 = vand.u32 4294901760, %v6074_v25  ;;  %v9691_v57 = vand.u32 4294901760, %v6080_v27 }
  0x68   :  { %10470 = vst [vmem:[#allocation192_spill] sm:$0xff] %v6859_v49  ;;  %10471 = vst [vmem:[#allocation193_spill] sm:$0xff] %v6861_v54  ;;  %v5318_v49 = vpack.c.bf16 %v9682_v20, %v9683_v11  ;;  %v6897_v21 = vsub.f32 %v15_v36, %v6879_v9  ;;  %v10480_v45 = vand.u32 4294901760, %v6868_v3  ;;  %v6907_v18 = vand.u32 4294901760, %v17_v2 }
  0x69   :  { %10472 = vst [vmem:[#allocation194_spill] sm:$0xff] %v6863_v38  ;;  %10473 = vst [vmem:[#allocation195_spill] sm:$0xff] %v6868_v3  ;;  %v445_v22 = vsub.f32 %v6074_v25, %v10479_v47  ;;  %v452_v14 = vand.u32 4294901760, %v451_v19  ;;  %v457_v11 = vsub.f32 %v6080_v27, %v9691_v57  ;;  %v9693_v47 = vand.u32 4294901760, %v6095_v39  ;;  %v10515_v39 = vld [vmem:[#allocation103_spill] sm:$0xff] }
  0x6a   :  { %10475 = vst [vmem:[#allocation196_spill] sm:$0xff] %v6874_v26  ;;  %10476 = vst [vmem:[#allocation197_spill] sm:$0xff] %v6879_v9  ;;  %v374_v32 = vsub.f32 %v6868_v3, %v10480_v45  ;;  %v9690_v26 = vand.u32 4294901760, %v6890_v42  ;;  %5319 = vmatprep.subr.bf16.mxu0 %v5318_v49  ;;  %v9695_v20 = vand.u32 4294901760, %v6897_v21  ;;  %v6917_v45 = vsub.f32 %v17_v2, %v6907_v18 }
  0x6b   :  { %10477 = vst [vmem:[#allocation198_spill] sm:$0xff] %v6890_v42  ;;  %10478 = vst [vmem:[#allocation199_spill] sm:$0xff] %v6897_v21  ;;  %v446_v36 = vand.u32 4294901760, %v445_v22  ;;  %v4742_v9 = vpack.c.bf16 %v452_v14, %v440_v15  ;;  %v458_v19 = vand.u32 4294901760, %v457_v11  ;;  %v9692_v22 = vand.u32 4294901760, %v6097_v40 }
  0x6c   :  { %10481 = vst [vmem:[#allocation200_spill] sm:$0xff] %v6907_v18  ;;  %v375_v23 = vand.u32 4294901760, %v374_v32  ;;  %2687 = vmatprep.mubr.f32.mxu0 %v9690_v26  ;;  %10482 = vst [vmem:[#allocation201_spill] sm:$0xff] %v6917_v45  ;;  %v380_v49 = vsub.f32 %v6897_v21, %v9695_v20  ;;  %v9700_v3 = vand.u32 4294901760, %v6099_v41  ;;  %v9694_v32 = vand.u32 4294901760, %v6917_v45 }
  0x6d   :  { %4743 = vmatprep.subr.bf16.mxu1 %v4742_v9  ;;  %v9696_v15 = vand.u32 4294901760, %v6112_v46  ;;  %v9698_v14 = vand.u32 4294901760, %v6116_v48  ;;  %v9697_v2 = vand.u32 4294901760, %v6122_v50  ;;  %v4744_v57 = vpack.c.bf16 %v458_v19, %v446_v36 }
  0x6e   :  { %376 = vmatprep.mubr.f32.mxu1 %v375_v23  ;;  %v381_v26 = vand.u32 4294901760, %v380_v49  ;;  %v5320_v11 = vpack.c.bf16 %v9692_v22, %v9693_v47  ;;  %v463_v23 = vsub.f32 %v6099_v41, %v9700_v3  ;;  %2691 = vmatmul.mubr.f32.vlgmr.msra.gmra.mrb[0].mxu0 %v9694_v32  ;;  %v9699_v49 = vand.u32 4294901760, %v6124_v52 }
  0x6f   :  { %v475_v9 = vsub.f32 %v6112_v46, %v9696_v15  ;;  %v5322_v36 = vpack.c.bf16 %v9697_v2, %v9698_v14  ;;  %v9701_v22 = vand.u32 4294901760, %v6136_v61  ;;  %v9703_v47 = vand.u32 4294901760, %v6138_v62  ;;  %v10506_v62 = vld [vmem:[#allocation91_spill] sm:$0xff] }
  0x70   :  { %382 = vmatmul.mubr.f32.vlgmr.msra.gmra.mrb[0].mxu1 %v381_v26  ;;  %5321 = vmatpush1.bf16.msra.mxu0 %v5320_v11  ;;  %v464_v19 = vand.u32 4294901760, %v463_v23  ;;  %v9702_v32 = vand.u32 4294901760, %v6151_v4  ;;  %v469_v15 = vsub.f32 %v6124_v52, %v9699_v49  ;;  %v9704_v2 = vand.u32 4294901760, %v6155_v6 }
  0x71   :  { %4745 = vmatpush1.bf16.msra.mxu1 %v4744_v57  ;;  %v476_v20 = vand.u32 4294901760, %v475_v9  ;;  %5323 = vmatprep.subr.bf16.mxu0 %v5322_v36  ;;  %v481_v26 = vsub.f32 %v6136_v61, %v9701_v22  ;;  %v9705_v23 = vand.u32 4294901760, %v6167_v10  ;;  %v9706_v49 = vand.u32 4294901760, %v6173_v13 }
  0x72   :  { %v5324_v11 = vpack.c.bf16 %v9702_v32, %v9703_v47  ;;  %v470_v36 = vand.u32 4294901760, %v469_v15  ;;  %v487_v14 = vsub.f32 %v6155_v6, %v9704_v2  ;;  %v9707_v32 = vand.u32 4294901760, %v6183_v33 }
  0x73   :  { %v4746_v9 = vpack.c.bf16 %v476_v20, %v464_v19  ;;  %v482_v3 = vand.u32 4294901760, %v481_v26  ;;  %v499_v22 = vsub.f32 %v6167_v10, %v9705_v23  ;;  %v9712_v47 = vand.u32 4294901760, %v6185_v34 }
  0x74   :  { %5325 = vmatpush1.bf16.msra.mxu0 %v5324_v11  ;;  %v488_v57 = vand.u32 4294901760, %v487_v14  ;;  %v10483_v20 = vand.u32 4294901760, %v6171_v12  ;;  %v9711_v19 = vand.u32 4294901760, %v6198_v43  ;;  %v9710_v26 = vand.u32 4294901760, %v6200_v44  ;;  %v10497_v43 = vld [vmem:[#allocation79_spill] sm:$0xff] }
  0x75   :  { %4747 = vmatprep.subr.bf16.mxu1 %v4746_v9  ;;  %v4748_v11 = vpack.c.bf16 %v482_v3, %v470_v36  ;;  %v500_v2 = vand.u32 4294901760, %v499_v22  ;;  %v493_v23 = vsub.f32 %v6183_v33, %v9707_v32  ;;  %v505_v9 = vsub.f32 %v6185_v34, %v9712_v47 }
  0x76   :  { %v5326_v15 = vpack.c.bf16 %v9706_v49, %v10483_v20  ;;  %v5328_v14 = vpack.c.bf16 %v9710_v26, %v9711_v19  ;;  %v9717_v20 = vand.u32 4294901760, %v6204_v51  ;;  %v9713_v49 = vand.u32 4294901760, %v6217_v56 }
  0x77   :  { %v9715_v3 = vand.u32 4294901760, %v6221_v58  ;;  %4749 = vmatpush1.bf16.msra.mxu1 %v4748_v11  ;;  %v4750_v22 = vpack.c.bf16 %v500_v2, %v488_v57  ;;  %v494_v36 = vand.u32 4294901760, %v493_v23  ;;  %v506_v32 = vand.u32 4294901760, %v505_v9 }
  0x78   :  { %5327 = vmatprep.subr.bf16.mxu0 %v5326_v15  ;;  %v9714_v13 = vand.u32 4294901760, %v6224_v63  ;;  %v511_v15 = vsub.f32 %v6204_v51, %v9717_v20  ;;  %v523_v26 = vsub.f32 %v6217_v56, %v9713_v49  ;;  %v9716_v19 = vand.u32 4294901760, %v6230_v7 }
  0x79   :  { %5329 = vmatpush1.bf16.msra.mxu0 %v5328_v14  ;;  %v9720_v47 = vand.u32 4294901760, %v6243_v29  ;;  %4751 = vmatprep.subr.bf16.mxu1 %v4750_v22  ;;  %v4752_v11 = vpack.c.bf16 %v506_v32, %v494_v36  ;;  %v9719_v23 = vand.u32 4294901760, %v6247_v31  ;;  %v9718_v57 = vand.u32 4294901760, %v6258_v59  ;;  %v10488_v31 = vld [vmem:[#allocation67_spill] sm:$0xff] }
  0x7a   :  { %v5330_v2 = vpack.c.bf16 %v9714_v13, %v9715_v3  ;;  %v512_v9 = vand.u32 4294901760, %v511_v15  ;;  %v524_v14 = vand.u32 4294901760, %v523_v26  ;;  %v517_v49 = vsub.f32 %v6230_v7, %v9716_v19  ;;  %v10551_v7 = vld [vmem:[#allocation151_spill] sm:$0xff] }
  0x7b   :  { %v529_v22 = vsub.f32 %v6243_v29, %v9720_v47  ;;  %4753 = vmatpush1.bf16.msra.mxu1 %v4752_v11  ;;  %v5332_v32 = vpack.c.bf16 %v9718_v57, %v9719_v23  ;;  %v9721_v36 = vand.u32 4294901760, %v6262_v0  ;;  %v9722_v15 = vand.u32 4294901760, %v6264_v37 }
  0x7c   :  { %5331 = vmatprep.subr.bf16.mxu0 %v5330_v2  ;;  %v9724_v26 = vand.u32 4294901760, %v6268_v60  ;;  %v4754_v13 = vpack.c.bf16 %v524_v14, %v512_v9  ;;  %v518_v3 = vand.u32 4294901760, %v517_v49  ;;  %v9723_v20 = vand.u32 4294901760, %v6279_v55  ;;  %v10484_v14 = vld [vmem:[#allocation61_spill] sm:$0xff] }
  0x7d   :  { %v530_v19 = vand.u32 4294901760, %v529_v22  ;;  %5333 = vmatpush1.bf16.msra.mxu0 %v5332_v32  ;;  %v535_v11 = vsub.f32 %v6262_v0, %v9721_v36  ;;  %v547_v2 = vsub.f32 %v6264_v37, %v9722_v15  ;;  %v9731_v57 = vand.u32 4294901760, %v6283_v28 }
  0x7e   :  { %v9738_v23 = vand.u32 4294901760, %v6294_v8  ;;  %4755 = vmatprep.subr.bf16.mxu1 %v4754_v13  ;;  %v5334_v49 = vpack.c.bf16 %v9723_v20, %v9724_v26  ;;  %v9737_v9 = vand.u32 4294901760, %v6298_v1  ;;  %v9736_v22 = vand.u32 4294901760, %v10484_v14  ;;  %v10486_v26 = vld [vmem:[#allocation64_spill] sm:$0xff] }
  0x7f   :  { %v4756_v47 = vpack.c.bf16 %v530_v19, %v518_v3  ;;  %v536_v32 = vand.u32 4294901760, %v535_v11  ;;  %v548_v36 = vand.u32 4294901760, %v547_v2  ;;  %v541_v15 = vsub.f32 %v6283_v28, %v9731_v57  ;;  %v10485_v3 = vld [vmem:[#allocation63_spill] sm:$0xff]  ;;  %v10487_v2 = vld [vmem:[#allocation65_spill] sm:$0xff] }
  0x80   :  { %v553_v13 = vsub.f32 %v6294_v8, %v9738_v23  ;;  %5335 = vmatprep.subr.bf16.mxu0 %v5334_v49  ;;  %v5336_v19 = vpack.c.bf16 %v9736_v22, %v9737_v9  ;;  %v9742_v20 = vand.u32 4294901760, %v10485_v3  ;;  %v9745_v11 = vand.u32 4294901760, %v10486_v26  ;;  %v10489_v22 = vld [vmem:[#allocation69_spill] sm:$0xff]  ;;  %v10490_v23 = vld [vmem:[#allocation70_spill] sm:$0xff]  ;;  %v10542_v28 = vld [vmem:[#allocation139_spill] sm:$0xff] }
  0x81   :  { %4757 = vmatpush1.bf16.msra.mxu1 %v4756_v47  ;;  %v4758_v60 = vpack.c.bf16 %v548_v36, %v536_v32  ;;  %v542_v59 = vand.u32 4294901760, %v541_v15  ;;  %v9746_v63 = vand.u32 4294901760, %v10488_v31  ;;  %v9751_v9 = vand.u32 4294901760, %v10489_v22  ;;  %v10492_v32 = vld [vmem:[#allocation72_spill] sm:$0xff] }
  0x82   :  { %v554_v57 = vand.u32 4294901760, %v553_v13  ;;  %5337 = vmatpush1.bf16.msra.mxu0 %v5336_v19  ;;  %v559_v47 = vsub.f32 %v10485_v3, %v9742_v20  ;;  %v571_v49 = vsub.f32 %v10486_v26, %v9745_v11  ;;  %v9758_v14 = vand.u32 4294901760, %v10490_v23  ;;  %v10493_v19 = vld [vmem:[#allocation73_spill] sm:$0xff] }
  0x83   :  { %4759 = vmatprep.subr.bf16.mxu1 %v4758_v60  ;;  %v10491_v36 = vand.u32 4294901760, %v10487_v2  ;;  %v9757_v13 = vand.u32 4294901760, %v10492_v32  ;;  %v9756_v1 = vand.u32 4294901760, %v10493_v19  ;;  %v565_v11 = vsub.f32 %v10489_v22, %v9751_v9  ;;  %v10533_v22 = vld [vmem:[#allocation127_spill] sm:$0xff] }
  0x84   :  { %v4760_v55 = vpack.c.bf16 %v554_v57, %v542_v59  ;;  %v560_v20 = vand.u32 4294901760, %v559_v47  ;;  %v572_v58 = vand.u32 4294901760, %v571_v49  ;;  %v577_v60 = vsub.f32 %v10490_v23, %v9758_v14  ;;  %v10494_v57 = vld [vmem:[#allocation75_spill] sm:$0xff]  ;;  %v10496_v49 = vld [vmem:[#allocation77_spill] sm:$0xff]  ;;  %v10499_v14 = vld [vmem:[#allocation82_spill] sm:$0xff] }
  0x85   :  { %v5338_v15 = vpack.c.bf16 %v9746_v63, %v10491_v36  ;;  %v5340_v59 = vpack.c.bf16 %v9756_v1, %v9757_v13  ;;  %v9761_v36 = vand.u32 4294901760, %v10494_v57  ;;  %v10495_v63 = vld [vmem:[#allocation76_spill] sm:$0xff]  ;;  %v566_v44 = vand.u32 4294901760, %v565_v11  ;;  %v10498_v1 = vld [vmem:[#allocation81_spill] sm:$0xff] }
  0x86   :  { %4761 = vmatpush1.bf16.msra.mxu1 %v4760_v55  ;;  %v9764_v47 = vand.u32 4294901760, %v10495_v63  ;;  %v4762_v2 = vpack.c.bf16 %v572_v58, %v560_v20  ;;  %v578_v9 = vand.u32 4294901760, %v577_v60  ;;  %v9765_v12 = vand.u32 4294901760, %v10497_v43  ;;  %v10501_v11 = vld [vmem:[#allocation84_spill] sm:$0xff] }
  0x87   :  { %5339 = vmatprep.subr.bf16.mxu0 %v5338_v15  ;;  %v583_v55 = vsub.f32 %v10494_v57, %v9761_v36  ;;  %v9770_v13 = vand.u32 4294901760, %v10498_v1  ;;  %v9777_v19 = vand.u32 4294901760, %v10499_v14  ;;  %v10500_v58 = vand.u32 4294901760, %v10496_v49 }
  0x88   :  { %5341 = vmatpush1.bf16.msra.mxu0 %v5340_v59  ;;  %v595_v15 = vsub.f32 %v10495_v63, %v9764_v47  ;;  %4763 = vmatprep.subr.bf16.mxu1 %v4762_v2  ;;  %v4764_v31 = vpack.c.bf16 %v578_v9, %v566_v44  ;;  %v9776_v60 = vand.u32 4294901760, %v10501_v11  ;;  %v10502_v59 = vld [vmem:[#allocation85_spill] sm:$0xff]  ;;  %v10503_v9 = vld [vmem:[#allocation87_spill] sm:$0xff]  ;;  %v9784_v50 = vand.u32 4294901760, %v10506_v62 }
  0x89   :  { %v5342_v20 = vpack.c.bf16 %v9765_v12, %v10500_v58  ;;  %v9775_v32 = vand.u32 4294901760, %v10502_v59  ;;  %v584_v36 = vand.u32 4294901760, %v583_v55  ;;  %v589_v47 = vsub.f32 %v10498_v1, %v9770_v13  ;;  %v10504_v12 = vld [vmem:[#allocation88_spill] sm:$0xff]  ;;  %v10524_v1 = vld [vmem:[#allocation115_spill] sm:$0xff] }
  0x8a   :  { %v596_v45 = vand.u32 4294901760, %v595_v15  ;;  %v601_v2 = vsub.f32 %v10499_v14, %v9777_v19  ;;  %4765 = vmatpush1.bf16.msra.mxu1 %v4764_v31  ;;  %v9780_v58 = vand.u32 4294901760, %v10503_v9  ;;  %v9783_v55 = vand.u32 4294901760, %v10504_v12  ;;  %v10505_v15 = vld [vmem:[#allocation89_spill] sm:$0xff]  ;;  %v10508_v19 = vld [vmem:[#allocation94_spill] sm:$0xff] }
  0x8b   :  { %5343 = vmatprep.subr.bf16.mxu0 %v5342_v20  ;;  %v5344_v44 = vpack.c.bf16 %v9775_v32, %v9776_v60  ;;  %v590_v4 = vand.u32 4294901760, %v589_v47  ;;  %v10507_v32 = vld [vmem:[#allocation93_spill] sm:$0xff]  ;;  %v9796_v59 = vand.u32 4294901760, %v10508_v19  ;;  %v10510_v47 = vld [vmem:[#allocation96_spill] sm:$0xff]  ;;  %v9803_v42 = vand.u32 4294901760, %v10515_v39 }
  0x8c   :  { %v4766_v49 = vpack.c.bf16 %v596_v45, %v584_v36  ;;  %v602_v13 = vand.u32 4294901760, %v601_v2  ;;  %v607_v31 = vsub.f32 %v10503_v9, %v9780_v58  ;;  %v619_v20 = vsub.f32 %v10504_v12, %v9783_v55 }
  0x8d   :  { %5345 = vmatpush1.bf16.msra.mxu0 %v5344_v44  ;;  %v9789_v60 = vand.u32 4294901760, %v10507_v32  ;;  %v10509_v45 = vand.u32 4294901760, %v10505_v15  ;;  %v9795_v2 = vand.u32 4294901760, %v10510_v47  ;;  %v10511_v44 = vld [vmem:[#allocation97_spill] sm:$0xff]  ;;  %v9818_v63 = vand.u32 4294901760, %v10524_v1 }
  0x8e   :  { %4767 = vmatprep.subr.bf16.mxu1 %v4766_v49  ;;  %v4768_v43 = vpack.c.bf16 %v602_v13, %v590_v4  ;;  %v9794_v11 = vand.u32 4294901760, %v10511_v44  ;;  %v608_v58 = vand.u32 4294901760, %v607_v31  ;;  %v620_v48 = vand.u32 4294901760, %v619_v20  ;;  %v10512_v13 = vld [vmem:[#allocation99_spill] sm:$0xff]  ;;  %v10514_v20 = vld [vmem:[#allocation101_spill] sm:$0xff] }
  0x8f   :  { %v5346_v36 = vpack.c.bf16 %v9784_v50, %v10509_v45  ;;  %v613_v55 = vsub.f32 %v10507_v32, %v9789_v60  ;;  %v625_v49 = vsub.f32 %v10508_v19, %v9796_v59  ;;  %v9799_v45 = vand.u32 4294901760, %v10512_v13  ;;  %v10513_v50 = vld [vmem:[#allocation100_spill] sm:$0xff]  ;;  %v10517_v59 = vld [vmem:[#allocation106_spill] sm:$0xff] }
  0x90   :  { %4769 = vmatpush1.bf16.msra.mxu1 %v4768_v43  ;;  %v5348_v4 = vpack.c.bf16 %v9794_v11, %v9795_v2  ;;  %v9802_v31 = vand.u32 4294901760, %v10513_v50  ;;  %v4770_v15 = vpack.c.bf16 %v620_v48, %v608_v58  ;;  %v10516_v11 = vld [vmem:[#allocation105_spill] sm:$0xff]  ;;  %v9812_v44 = vand.u32 4294901760, %v10517_v59 }
  0x91   :  { %5347 = vmatprep.subr.bf16.mxu0 %v5346_v36  ;;  %v614_v40 = vand.u32 4294901760, %v613_v55  ;;  %v626_v60 = vand.u32 4294901760, %v625_v49  ;;  %v631_v43 = vsub.f32 %v10512_v13, %v9799_v45  ;;  %v9807_v2 = vand.u32 4294901760, %v10516_v11  ;;  %v10519_v55 = vld [vmem:[#allocation108_spill] sm:$0xff] }
  0x92   :  { %5349 = vmatpush1.bf16.msra.mxu0 %v5348_v4  ;;  %v643_v36 = vsub.f32 %v10513_v50, %v9802_v31  ;;  %4771 = vmatprep.subr.bf16.mxu1 %v4770_v15  ;;  %v10518_v48 = vand.u32 4294901760, %v10514_v20  ;;  %v9811_v49 = vand.u32 4294901760, %v10519_v55  ;;  %v10520_v4 = vld [vmem:[#allocation109_spill] sm:$0xff]  ;;  %v649_v15 = vsub.f32 %v10517_v59, %v9812_v44  ;;  %v10526_v44 = vld [vmem:[#allocation118_spill] sm:$0xff] }
  0x93   :  { %v4772_v62 = vpack.c.bf16 %v626_v60, %v614_v40  ;;  %v9810_v47 = vand.u32 4294901760, %v10520_v4  ;;  %v632_v45 = vand.u32 4294901760, %v631_v43  ;;  %v637_v31 = vsub.f32 %v10516_v11, %v9807_v2  ;;  %v10521_v60 = vld [vmem:[#allocation111_spill] sm:$0xff] }
  0x94   :  { %v5350_v58 = vpack.c.bf16 %v9803_v42, %v10518_v48  ;;  %v644_v21 = vand.u32 4294901760, %v643_v36  ;;  %v9815_v48 = vand.u32 4294901760, %v10521_v60  ;;  %v10522_v42 = vld [vmem:[#allocation112_spill] sm:$0xff]  ;;  %v10523_v36 = vld [vmem:[#allocation113_spill] sm:$0xff]  ;;  %v650_v2 = vand.u32 4294901760, %v649_v15 }
  0x95   :  { %4773 = vmatpush1.bf16.msra.mxu1 %v4772_v62  ;;  %v5352_v40 = vpack.c.bf16 %v9810_v47, %v9811_v49  ;;  %v9817_v43 = vand.u32 4294901760, %v10522_v42  ;;  %v638_v14 = vand.u32 4294901760, %v637_v31  ;;  %v10525_v47 = vld [vmem:[#allocation117_spill] sm:$0xff]  ;;  %v9827_v4 = vand.u32 4294901760, %v10526_v44  ;;  %v10528_v31 = vld [vmem:[#allocation120_spill] sm:$0xff] }
  0x96   :  { %5351 = vmatprep.subr.bf16.mxu0 %v5350_v58  ;;  %v4774_v20 = vpack.c.bf16 %v644_v21, %v632_v45  ;;  %v655_v62 = vsub.f32 %v10521_v60, %v9815_v48  ;;  %v9822_v49 = vand.u32 4294901760, %v10525_v47  ;;  %v10527_v21 = vand.u32 4294901760, %v10523_v36 }
  0x97   :  { %5353 = vmatpush1.bf16.msra.mxu0 %v5352_v40  ;;  %v667_v58 = vsub.f32 %v10522_v42, %v9817_v43  ;;  %v4776_v39 = vpack.c.bf16 %v650_v2, %v638_v14  ;;  %v9826_v15 = vand.u32 4294901760, %v10528_v31  ;;  %v10529_v40 = vld [vmem:[#allocation121_spill] sm:$0xff]  ;;  %v10530_v2 = vld [vmem:[#allocation123_spill] sm:$0xff]  ;;  %v9833_v26 = vand.u32 4294901760, %v10533_v22 }
  0x98   :  { %4775 = vmatprep.subr.bf16.mxu1 %v4774_v20  ;;  %v5354_v45 = vpack.c.bf16 %v9818_v63, %v10527_v21  ;;  %v9825_v55 = vand.u32 4294901760, %v10529_v40  ;;  %v656_v48 = vand.u32 4294901760, %v655_v62  ;;  %v661_v43 = vsub.f32 %v10525_v47, %v9822_v49  ;;  %v10531_v63 = vld [vmem:[#allocation124_spill] sm:$0xff] }
  0x99   :  { %v668_v57 = vand.u32 4294901760, %v667_v58  ;;  %v673_v20 = vsub.f32 %v10526_v44, %v9827_v4  ;;  %4777 = vmatpush1.bf16.msra.mxu1 %v4776_v39  ;;  %v9830_v21 = vand.u32 4294901760, %v10530_v2  ;;  %v9832_v62 = vand.u32 4294901760, %v10531_v63  ;;  %v10532_v58 = vld [vmem:[#allocation125_spill] sm:$0xff]  ;;  %v10535_v4 = vld [vmem:[#allocation130_spill] sm:$0xff] }
  0x9a   :  { %5355 = vmatprep.subr.bf16.mxu0 %v5354_v45  ;;  %v5356_v14 = vpack.c.bf16 %v9825_v55, %v9826_v15  ;;  %v662_v23 = vand.u32 4294901760, %v661_v43  ;;  %v10534_v55 = vld [vmem:[#allocation129_spill] sm:$0xff]  ;;  %v9845_v40 = vand.u32 4294901760, %v10535_v4  ;;  %v10537_v43 = vld [vmem:[#allocation132_spill] sm:$0xff]  ;;  %v9852_v37 = vand.u32 4294901760, %v10542_v28 }
  0x9b   :  { %v4778_v36 = vpack.c.bf16 %v668_v57, %v656_v48  ;;  %v674_v49 = vand.u32 4294901760, %v673_v20  ;;  %v679_v39 = vsub.f32 %v10530_v2, %v9830_v21  ;;  %v691_v45 = vsub.f32 %v10531_v63, %v9832_v62 }
  0x9c   :  { %5357 = vmatpush1.bf16.msra.mxu0 %v5356_v14  ;;  %v9838_v15 = vand.u32 4294901760, %v10534_v55  ;;  %v10536_v57 = vand.u32 4294901760, %v10532_v58  ;;  %v9844_v20 = vand.u32 4294901760, %v10537_v43  ;;  %v10538_v14 = vld [vmem:[#allocation133_spill] sm:$0xff]  ;;  %v9871_v56 = vand.u32 4294901760, %v10551_v7  ;;  %v10559_v7 = vld [vmem:[#allocation159_spill] sm:$0xff] }
  0x9d   :  { %4779 = vmatprep.subr.bf16.mxu1 %v4778_v36  ;;  %v4780_v1 = vpack.c.bf16 %v674_v49, %v662_v23  ;;  %v9843_v31 = vand.u32 4294901760, %v10538_v14  ;;  %v680_v21 = vand.u32 4294901760, %v679_v39  ;;  %v692_v3 = vand.u32 4294901760, %v691_v45  ;;  %v10539_v49 = vld [vmem:[#allocation135_spill] sm:$0xff]  ;;  %v10541_v45 = vld [vmem:[#allocation137_spill] sm:$0xff] }
  0x9e   :  { %v5358_v48 = vpack.c.bf16 %v9833_v26, %v10536_v57  ;;  %v685_v62 = vsub.f32 %v10534_v55, %v9838_v15  ;;  %v697_v36 = vsub.f32 %v10535_v4, %v9845_v40  ;;  %v9848_v57 = vand.u32 4294901760, %v10539_v49  ;;  %v10540_v26 = vld [vmem:[#allocation136_spill] sm:$0xff]  ;;  %v10544_v40 = vld [vmem:[#allocation142_spill] sm:$0xff] }
  0x9f   :  { %4781 = vmatpush1.bf16.msra.mxu1 %v4780_v1  ;;  %v5360_v23 = vpack.c.bf16 %v9843_v31, %v9844_v20  ;;  %v9851_v39 = vand.u32 4294901760, %v10540_v26  ;;  %v4782_v58 = vpack.c.bf16 %v692_v3, %v680_v21  ;;  %v10543_v31 = vld [vmem:[#allocation141_spill] sm:$0xff]  ;;  %v9864_v14 = vand.u32 4294901760, %v10544_v40 }
  0xa0   :  { %5359 = vmatprep.subr.bf16.mxu0 %v5358_v48  ;;  %v686_v8 = vand.u32 4294901760, %v685_v62  ;;  %v698_v15 = vand.u32 4294901760, %v697_v36  ;;  %v703_v1 = vsub.f32 %v10539_v49, %v9848_v57  ;;  %v9857_v20 = vand.u32 4294901760, %v10543_v31  ;;  %v10546_v62 = vld [vmem:[#allocation144_spill] sm:$0xff] }
  0xa1   :  { %5361 = vmatpush1.bf16.msra.mxu0 %v5360_v23  ;;  %v715_v48 = vsub.f32 %v10540_v26, %v9851_v39  ;;  %4783 = vmatprep.subr.bf16.mxu1 %v4782_v58  ;;  %v10545_v3 = vand.u32 4294901760, %v10541_v45  ;;  %v9863_v36 = vand.u32 4294901760, %v10546_v62  ;;  %v10547_v23 = vld [vmem:[#allocation145_spill] sm:$0xff]  ;;  %v721_v58 = vsub.f32 %v10544_v40, %v9864_v14  ;;  %v10553_v14 = vld [vmem:[#allocation154_spill] sm:$0xff] }
  0xa2   :  { %v4784_v22 = vpack.c.bf16 %v698_v15, %v686_v8  ;;  %v9862_v43 = vand.u32 4294901760, %v10547_v23  ;;  %v704_v57 = vand.u32 4294901760, %v703_v1  ;;  %v709_v39 = vsub.f32 %v10543_v31, %v9857_v20  ;;  %v10548_v15 = vld [vmem:[#allocation147_spill] sm:$0xff] }
  0xa3   :  { %v5362_v21 = vpack.c.bf16 %v9852_v37, %v10545_v3  ;;  %v716_v0 = vand.u32 4294901760, %v715_v48  ;;  %v9866_v3 = vand.u32 4294901760, %v10548_v15  ;;  %v10549_v37 = vld [vmem:[#allocation148_spill] sm:$0xff]  ;;  %v10550_v48 = vld [vmem:[#allocation149_spill] sm:$0xff]  ;;  %v722_v20 = vand.u32 4294901760, %v721_v58 }
  0xa4   :  { %4785 = vmatpush1.bf16.msra.mxu1 %v4784_v22  ;;  %v5364_v8 = vpack.c.bf16 %v9862_v43, %v9863_v36  ;;  %v9868_v1 = vand.u32 4294901760, %v10549_v37  ;;  %v9872_v28 = vand.u32 4294901760, %v10550_v48  ;;  %v710_v29 = vand.u32 4294901760, %v709_v39  ;;  %v10552_v43 = vld [vmem:[#allocation153_spill] sm:$0xff]  ;;  %v10554_v58 = vld [vmem:[#allocation156_spill] sm:$0xff] }
  0xa5   :  { %5363 = vmatprep.subr.bf16.mxu0 %v5362_v21  ;;  %v4786_v45 = vpack.c.bf16 %v716_v0, %v704_v57  ;;  %v727_v22 = vsub.f32 %v10548_v15, %v9866_v3  ;;  %v22_v0 = vld [vmem:[%s9461_s0 + $0x38] sm:$0xff]  ;;  %v10555_v3 = vld [vmem:[#allocation157_spill] sm:$0xff]  ;;  %v10556_v51 = vand.u32 4294901760, %v10552_v43 }
  0xa6   :  { %5365 = vmatpush1.bf16.msra.mxu0 %v5364_v8  ;;  %v739_v21 = vsub.f32 %v10549_v37, %v9868_v1  ;;  %v4788_v57 = vpack.c.bf16 %v722_v20, %v710_v29  ;;  %v5366_v39 = vpack.c.bf16 %v9871_v56, %v9872_v28  ;;  %v9880_v8 = vand.u32 4294901760, %v10554_v58  ;;  %v24_v1 = vld [vmem:[%s9461_s0 + $0x48] sm:$0xff] }
  0xa7   :  { %4787 = vmatprep.subr.bf16.mxu1 %v4786_v45  ;;  %v9879_v62 = vand.u32 4294901760, %v10555_v3  ;;  %v728_v23 = vand.u32 4294901760, %v727_v22  ;;  %v733_v45 = vsub.f32 %v10552_v43, %v10556_v51  ;;  %v10557_v29 = vand.u32 4294901760, %v10553_v14  ;;  %v21_v51 = vld [vmem:[%s9461_s0 + $0x30] sm:$0xff]  ;;  %v10563_v3 = vld [vmem:[#allocation161_spill] sm:$0xff] }
  0xa8   :  { %v740_v36 = vand.u32 4294901760, %v739_v21  ;;  %4789 = vmatpush1.bf16.msra.mxu1 %v4788_v57  ;;  %5367 = vmatprep.subr.bf16.mxu0 %v5366_v39  ;;  %v7272_v28 = vand.u32 4294901760, %v22_v0  ;;  %v9883_v22 = vand.u32 4294901760, %v10559_v7  ;;  %v10560_v21 = vld [vmem:[#allocation160_spill] sm:$0xff]  ;;  %v7279_v57 = vand.u32 4294901760, %v24_v1 }
  0xa9   :  { %v745_v20 = vsub.f32 %v10553_v14, %v10557_v29  ;;  %v5368_v56 = vpack.c.bf16 %v9879_v62, %v9880_v8  ;;  %v9888_v48 = vand.u32 4294901760, %v10560_v21  ;;  %v734_v33 = vand.u32 4294901760, %v733_v45  ;;  %v10565_v45 = vld [vmem:[#allocation163_spill] sm:$0xff] }
  0xaa   :  { %10558 = vst [vmem:[#allocation202_spill] sm:$0xff] %v7272_v28  ;;  %v4790_v34 = vpack.c.bf16 %v740_v36, %v728_v23  ;;  %10561 = vst [vmem:[#allocation203_spill] sm:$0xff] %v7279_v57  ;;  %v7282_v39 = vsub.f32 %v22_v0, %v7272_v28  ;;  %v751_v62 = vsub.f32 %v10559_v7, %v9883_v22  ;;  %v9895_v58 = vand.u32 4294901760, %v10563_v3  ;;  %v23_v0 = vld [vmem:[%s9461_s0 + $0x40] sm:$0xff]  ;;  %v10572_v3 = vld [vmem:[#allocation168_spill] sm:$0xff] }
  0xab   :  { %v746_v29 = vand.u32 4294901760, %v745_v20  ;;  %5369 = vmatpush1.bf16.msra.mxu0 %v5368_v56  ;;  %v763_v8 = vsub.f32 %v10560_v21, %v9888_v48  ;;  %v7292_v23 = vsub.f32 %v24_v1, %v7279_v57  ;;  %v9894_v56 = vand.u32 4294901760, %v10565_v45  ;;  %v10567_v48 = vld [vmem:[#allocation165_spill] sm:$0xff] }
  0xac   :  { %10562 = vst [vmem:[#allocation204_spill] sm:$0xff] %v7282_v39  ;;  %4791 = vmatprep.subr.bf16.mxu1 %v4790_v34  ;;  %v7295_v20 = vand.u32 4294901760, %v21_v51  ;;  %v9899_v22 = vand.u32 4294901760, %v7282_v39  ;;  %v752_v28 = vand.u32 4294901760, %v751_v62  ;;  %v9900_v6 = vand.u32 4294901760, %v10567_v48  ;;  %v28_v62 = vld [vmem:[%s9461_s0 + $0x68] sm:$0xff] }
  0xad   :  { %v4792_v36 = vpack.c.bf16 %v746_v29, %v734_v33  ;;  %10564 = vst [vmem:[#allocation205_spill] sm:$0xff] %v7292_v23  ;;  %v764_v10 = vand.u32 4294901760, %v763_v8  ;;  %v5370_v34 = vpack.c.bf16 %v9894_v56, %v9895_v58  ;;  %v10569_v29 = vld [vmem:[#allocation166_spill] sm:$0xff]  ;;  %v7320_v45 = vand.u32 4294901760, %v23_v0 }
  0xae   :  { %10566 = vst [vmem:[#allocation206_spill] sm:$0xff] %v7295_v20  ;;  %v7308_v1 = vsub.f32 %v21_v51, %v7295_v20  ;;  %v9903_v57 = vand.u32 4294901760, %v10569_v29  ;;  %v390_v8 = vsub.f32 %v7282_v39, %v9899_v22  ;;  %v757_v33 = vsub.f32 %v10567_v48, %v9900_v6  ;;  %v10573_v22 = vld [vmem:[#allocation169_spill] sm:$0xff] }
  0xaf   :  { %4793 = vmatpush1.bf16.msra.mxu1 %v4792_v36  ;;  %v4794_v36 = vpack.c.bf16 %v764_v10, %v752_v28  ;;  %10570 = vst [vmem:[#allocation208_spill] sm:$0xff] %v7320_v45  ;;  %v10571_v51 = vand.u32 4294901760, %v7292_v23  ;;  %5371 = vmatprep.subr.bf16.mxu0 %v5370_v34  ;;  %v9913_v20 = vand.u32 4294901760, %v10572_v3  ;;  %v9912_v10 = vand.u32 4294901760, %v10573_v22  ;;  %v30_v28 = vld [vmem:[%s9461_s0 + $0x78] sm:$0xff] }
  0xb0   :  { %10568 = vst [vmem:[#allocation207_spill] sm:$0xff] %v7308_v1  ;;  %v9910_v56 = vand.u32 4294901760, %v7308_v1  ;;  %v769_v58 = vsub.f32 %v10569_v29, %v9903_v57  ;;  %v391_v6 = vand.u32 4294901760, %v390_v8  ;;  %v758_v39 = vand.u32 4294901760, %v757_v33  ;;  %v10577_v8 = vld [vmem:[#allocation172_spill] sm:$0xff] }
  0xb1   :  { %2699 = vmatprep.mubr.f32.mxu0 %v10571_v51  ;;  %4795 = vmatprep.subr.bf16.mxu1 %v4794_v36  ;;  %v7334_v51 = vsub.f32 %v23_v0, %v7320_v45  ;;  %v7336_v34 = vand.u32 4294901760, %v28_v62  ;;  %v5372_v29 = vpack.c.bf16 %v9912_v10, %v9913_v20  ;;  %v9917_v48 = vand.u32 4294901760, %v6783_v35  ;;  %v10579_v10 = vld [vmem:[#allocation173_spill] sm:$0xff] }
  0xb2   :  { %v396_v57 = vsub.f32 %v7308_v1, %v9910_v56  ;;  %v770_v23 = vand.u32 4294901760, %v769_v58  ;;  %392 = vmatprep.mubr.f32.mxu1 %v391_v6  ;;  %v9921_v36 = vand.u32 4294901760, %v10577_v8  ;;  %v7351_v45 = vand.u32 4294901760, %v30_v28  ;;  %v27_v58 = vld [vmem:[%s9461_s0 + $0x60] sm:$0xff] }
  0xb3   :  { %10574 = vst [vmem:[#allocation209_spill] sm:$0xff] %v7334_v51  ;;  %10575 = vst [vmem:[#allocation210_spill] sm:$0xff] %v7336_v34  ;;  %v9918_v33 = vand.u32 4294901760, %v7334_v51  ;;  %v7348_v0 = vsub.f32 %v28_v62, %v7336_v34  ;;  %5373 = vmatpush1.bf16.msra.mxu0 %v5372_v29  ;;  %v775_v6 = vsub.f32 %v6783_v35, %v9917_v48  ;;  %v7373_v48 = vand.u32 4294901760, %v27_v58  ;;  %v10584_v62 = vld [vmem:[#allocation178_spill] sm:$0xff] }
  0xb4   :  { %10578 = vst [vmem:[#allocation212_spill] sm:$0xff] %v7351_v45  ;;  %v397_v56 = vand.u32 4294901760, %v396_v57  ;;  %v4796_v3 = vpack.c.bf16 %v770_v23, %v758_v39  ;;  %v787_v22 = vsub.f32 %v10577_v8, %v9921_v36  ;;  %v7367_v1 = vsub.f32 %v30_v28, %v7351_v45  ;;  %v10581_v57 = vld [vmem:[#allocation175_spill] sm:$0xff] }
  0xb5   :  { %10576 = vst [vmem:[#allocation211_spill] sm:$0xff] %v7348_v0  ;;  %2703 = vmatmul.mubr.f32.gmra.mrb[2].mxu0 %v9918_v33  ;;  %v29_v23 = vld [vmem:[%s9461_s0 + $0x70] sm:$0xff]  ;;  %v776_v29 = vand.u32 4294901760, %v775_v6  ;;  %10582 = vst [vmem:[#allocation214_spill] sm:$0xff] %v7373_v48  ;;  %v10583_v33 = vld [vmem:[#allocation177_spill] sm:$0xff]  ;;  %v10585_v36 = vand.u32 4294901760, %v7348_v0  ;;  %v7386_v6 = vsub.f32 %v27_v58, %v7373_v48 }
  0xb6   :  { %10580 = vst [vmem:[#allocation213_spill] sm:$0xff] %v7367_v1  ;;  %398 = vmatmul.mubr.f32.gmra.mrb[2].mxu1 %v397_v56  ;;  %v9931_v20 = vand.u32 4294901760, %v10583_v33  ;;  %v788_v45 = vand.u32 4294901760, %v787_v22  ;;  %v10586_v34 = vand.u32 4294901760, %v10579_v10  ;;  %v10587_v8 = vand.u32 4294901760, %v10581_v57  ;;  %v34_v22 = vld [vmem:[%s9461_s0 + $0x98] sm:$0xff] }
  0xb7   :  { %4797 = vmatpush1.bf16.msra.mxu1 %v4796_v3  ;;  %v406_v28 = vsub.f32 %v7348_v0, %v10585_v36  ;;  %10588 = vst [vmem:[#allocation215_spill] sm:$0xff] %v7386_v6  ;;  %v10589_v3 = vand.u32 4294901760, %v10584_v62  ;;  %v7394_v36 = vand.u32 4294901760, %v29_v23  ;;  %v10593_v10 = vld [vmem:[#allocation181_spill] sm:$0xff]  ;;  %v9944_v0 = vand.u32 4294901760, %v7386_v6 }
  0xb8   :  { %v5374_v56 = vpack.c.bf16 %v10587_v8, %v10586_v34  ;;  %v781_v51 = vsub.f32 %v10583_v33, %v9931_v20  ;;  %v4798_v57 = vpack.c.bf16 %v788_v45, %v776_v29  ;;  %v10591_v34 = vand.u32 4294901760, %v7367_v1  ;;  %v10592_v8 = vld [vmem:[#allocation180_spill] sm:$0xff] }
  0xb9   :  { %v793_v35 = vsub.f32 %v10584_v62, %v10589_v3  ;;  %10590 = vst [vmem:[#allocation216_spill] sm:$0xff] %v7394_v36  ;;  %v407_v39 = vand.u32 4294901760, %v406_v28  ;;  %v9939_v58 = vand.u32 4294901760, %v10592_v8  ;;  %v9938_v20 = vand.u32 4294901760, %v10593_v10  ;;  %v36_v3 = vld [vmem:[%s9461_s0 + $0xa8] sm:$0xff]  ;;  %v10599_v8 = vld [vmem:[#allocation185_spill] sm:$0xff] }
  0xba   :  { %2711 = vmatprep.mubr.f32.mxu0 %v10591_v34  ;;  %5375 = vmatprep.subr.bf16.mxu0 %v5374_v56  ;;  %v782_v48 = vand.u32 4294901760, %v781_v51  ;;  %v7408_v33 = vsub.f32 %v29_v23, %v7394_v36  ;;  %v7414_v29 = vand.u32 4294901760, %v34_v22  ;;  %v9946_v28 = vand.u32 4294901760, %v6832_v30  ;;  %v10596_v56 = vld [vmem:[#allocation184_spill] sm:$0xff] }
  0xbb   :  { %v794_v62 = vand.u32 4294901760, %v793_v35  ;;  %408 = vmatprep.mubr.f32.mxu1 %v407_v39  ;;  %4799 = vmatprep.subr.bf16.mxu1 %v4798_v57  ;;  %v5376_v45 = vpack.c.bf16 %v9938_v20, %v9939_v58  ;;  %v9945_v34 = vand.u32 4294901760, %v10596_v56  ;;  %v33_v35 = vld [vmem:[%s9461_s0 + $0x90] sm:$0xff]  ;;  %v412_v51 = vsub.f32 %v7386_v6, %v9944_v0 }
  0xbc   :  { %10594 = vst [vmem:[#allocation217_spill] sm:$0xff] %v7408_v33  ;;  %10595 = vst [vmem:[#allocation218_spill] sm:$0xff] %v7414_v29  ;;  %v9947_v39 = vand.u32 4294901760, %v7408_v33  ;;  %v7425_v23 = vand.u32 4294901760, %v36_v3  ;;  %v7428_v20 = vsub.f32 %v34_v22, %v7414_v29  ;;  %v799_v58 = vsub.f32 %v6832_v30, %v9946_v28 }
  0xbd   :  { %v4800_v57 = vpack.c.bf16 %v794_v62, %v782_v48  ;;  %5377 = vmatpush1.bf16.msra.mxu0 %v5376_v45  ;;  %v811_v10 = vsub.f32 %v10596_v56, %v9945_v34  ;;  %v413_v0 = vand.u32 4294901760, %v412_v51  ;;  %v9953_v62 = vand.u32 4294901760, %v6848_v24  ;;  %v35_v45 = vld [vmem:[%s9461_s0 + $0xa0] sm:$0xff] }
  0xbe   :  { %10597 = vst [vmem:[#allocation219_spill] sm:$0xff] %v7425_v23  ;;  %10598 = vst [vmem:[#allocation220_spill] sm:$0xff] %v7428_v20  ;;  %2715 = vmatmul.mubr.f32.gmra.mrb[4].mxu0 %v9947_v39  ;;  %v7440_v48 = vsub.f32 %v36_v3, %v7425_v23  ;;  %v7443_v22 = vand.u32 4294901760, %v33_v35  ;;  %v9954_v34 = vand.u32 4294901760, %v7428_v20  ;;  %v800_v28 = vand.u32 4294901760, %v799_v58 }
  0xbf   :  { %4801 = vmatpush1.bf16.msra.mxu1 %v4800_v57  ;;  %v812_v1 = vand.u32 4294901760, %v811_v10  ;;  %v9955_v51 = vand.u32 4294901760, %v6852_v5  ;;  %v10602_v3 = vand.u32 4294901760, %v10599_v8  ;;  %v9956_v6 = vand.u32 4294901760, %v6857_v53 }
  0xc0   :  { %10600 = vst [vmem:[#allocation221_spill] sm:$0xff] %v7440_v48  ;;  %10601 = vst [vmem:[#allocation222_spill] sm:$0xff] %v7443_v22  ;;  %414 = vmatmul.mubr.f32.gmra.mrb[4].mxu1 %v413_v0  ;;  %v7456_v33 = vsub.f32 %v33_v35, %v7443_v22  ;;  %v422_v58 = vsub.f32 %v7428_v20, %v9954_v34  ;;  %v7465_v57 = vand.u32 4294901760, %v35_v45  ;;  %v10605_v8 = vand.u32 4294901760, %v7440_v48 }
  0xc1   :  { %v5378_v39 = vpack.c.bf16 %v9953_v62, %v10602_v3  ;;  %v4802_v10 = vpack.c.bf16 %v812_v1, %v800_v28  ;;  %v805_v0 = vsub.f32 %v6852_v5, %v9955_v51  ;;  %v817_v3 = vsub.f32 %v6857_v53, %v9956_v6 }
  0xc2   :  { %10603 = vst [vmem:[#allocation223_spill] sm:$0xff] %v7456_v33  ;;  %10604 = vst [vmem:[#allocation224_spill] sm:$0xff] %v7465_v57  ;;  %2723 = vmatprep.mubr.f32.mxu0 %v10605_v8  ;;  %v9964_v35 = vand.u32 4294901760, %v7456_v33  ;;  %v9962_v62 = vand.u32 4294901760, %v6861_v54  ;;  %v9961_v1 = vand.u32 4294901760, %v6863_v38  ;;  %v423_v28 = vand.u32 4294901760, %v422_v58 }
  0xc3   :  { %5379 = vmatprep.subr.bf16.mxu0 %v5378_v39  ;;  %4803 = vmatprep.subr.bf16.mxu1 %v4802_v10  ;;  %v806_v34 = vand.u32 4294901760, %v805_v0  ;;  %v7476_v51 = vsub.f32 %v35_v45, %v7465_v57  ;;  %v818_v39 = vand.u32 4294901760, %v817_v3  ;;  %v4806_v45 = vpack.c.bf16 %v6055_v17, %v6053_v16  ;;  %v10607_v10 = vld [vmem:[#allocation7_spill] sm:$0xff]  ;;  %v10608_v0 = vld [vmem:[#allocation196_spill] sm:$0xff] }
  0xc4   :  { %v428_v8 = vsub.f32 %v7456_v33, %v9964_v35  ;;  %v5380_v6 = vpack.c.bf16 %v9961_v1, %v9962_v62  ;;  %424 = vmatprep.mubr.f32.mxu1 %v423_v28  ;;  %v4808_v3 = vpack.c.bf16 %v6080_v27, %v6074_v25  ;;  %v4810_v28 = vpack.c.bf16 %v6112_v46, %v6099_v41  ;;  %v10613_v35 = vld [vmem:[#allocation165_spill] sm:$0xff]  ;;  %v10615_v1 = vld [vmem:[#allocation171_spill] sm:$0xff]  ;;  %v10616_v54 = vld [vmem:[#allocation172_spill] sm:$0xff] }
  0xc5   :  { %10606 = vst [vmem:[#allocation225_spill] sm:$0xff] %v7476_v51  ;;  %v9963_v24 = vand.u32 4294901760, %v7476_v51  ;;  %v4804_v58 = vpack.c.bf16 %v818_v39, %v806_v34  ;;  %v10609_v34 = vld [vmem:[#allocation186_spill] sm:$0xff]  ;;  %v10610_v39 = vld [vmem:[#allocation197_spill] sm:$0xff]  ;;  %v10619_v62 = vld [vmem:[#allocation27_spill] sm:$0xff] }
  0xc6   :  { %v429_v48 = vand.u32 4294901760, %v428_v8  ;;  %5381 = vmatpush1.bf16.msra.mxu0 %v5380_v6  ;;  %v4812_v6 = vpack.c.bf16 %v6136_v61, %v6124_v52  ;;  %v10614_v8 = vld [vmem:[#allocation166_spill] sm:$0xff]  ;;  %v10623_v38 = vld [vmem:[#allocation24_spill] sm:$0xff]  ;;  %v10633_v27 = vld [vmem:[#allocation35_spill] sm:$0xff] }
  0xc7   :  { %2727 = vmatmul.mubr.f32.gmra.mrb[6].mxu0 %v9963_v24  ;;  %5383 = vmatprep.subr.bf16.mxu0 %v10607_v10  ;;  %v10617_v10 = vld [vmem:[#allocation177_spill] sm:$0xff]  ;;  %v10624_v51 = vld [vmem:[#allocation206_spill] sm:$0xff]  ;;  %v10632_v24 = vld [vmem:[#allocation212_spill] sm:$0xff] }
  0xc8   :  { %430 = vmatmul.mubr.f32.gmra.mrb[6].mxu1 %v429_v48  ;;  %2990 = vmatprep.mubr.f32.mxu0 %v10608_v0  ;;  %v10621_v48 = vld [vmem:[#allocation202_spill] sm:$0xff] }
  0xc9   :  { %4805 = vmatpush1.bf16.msra.mxu1 %v4804_v58  ;;  %821 = vmatprep.mubr.f32.mxu1 %v10609_v34  ;;  %v10611_v58 = vld [vmem:[#allocation11_spill] sm:$0xff]  ;;  %v10620_v34 = vld [vmem:[#allocation28_spill] sm:$0xff]  ;;  %v10627_v52 = vld [vmem:[#allocation34_spill] sm:$0xff] }
  0xca   :  { %4807 = vmatprep.subr.bf16.mxu1 %v4806_v45  ;;  %v10612_v45 = vld [vmem:[#allocation17_spill] sm:$0xff]  ;;  %v4814_v61 = vpack.c.bf16 %v10620_v34, %v10619_v62  ;;  %v10629_v62 = vld [vmem:[#allocation40_spill] sm:$0xff]  ;;  %v10631_v41 = vld [vmem:[#allocation210_spill] sm:$0xff] }
  0xcb   :  { %2992 = vmatmul.mubr.f32.vlgmr.msra.gmra.mrb[0].mxu0 %v6907_v18 }
  0xcc   :  { %823 = vmatmul.mubr.f32.vlgmr.msra.gmra.mrb[0].mxu1 %v10610_v39  ;;  %5385 = vmatpush1.bf16.msra.mxu0 %v10611_v58  ;;  %v10618_v58 = vld [vmem:[#allocation178_spill] sm:$0xff]  ;;  %v10625_v39 = vld [vmem:[#allocation29_spill] sm:$0xff] }
  0xcd   :  { %4809 = vmatpush1.bf16.msra.mxu1 %v4808_v3  ;;  %5387 = vmatprep.subr.bf16.mxu0 %v10612_v45  ;;  %v10622_v45 = vld [vmem:[#allocation203_spill] sm:$0xff]  ;;  %v10630_v3 = vld [vmem:[#allocation208_spill] sm:$0xff] }
  0xce   :  { %4811 = vmatprep.subr.bf16.mxu1 %v4810_v28  ;;  %829 = vmatprep.mubr.f32.mxu1 %v10621_v48  ;;  %v10626_v28 = vld [vmem:[#allocation33_spill] sm:$0xff]  ;;  %v10628_v48 = vld [vmem:[#allocation39_spill] sm:$0xff] }
  0xcf   :  { %2998 = vmatprep.mubr.f32.mxu0 %v10622_v45  ;;  %v4816_v34 = vpack.c.bf16 %v10627_v52, %v10626_v28  ;;  %v4818_v46 = vpack.c.bf16 %v10629_v62, %v10628_v48  ;;  %v10639_v28 = vld [vmem:[#allocation52_spill] sm:$0xff]  ;;  %v10656_v48 = vld [vmem:[#allocation82_spill] sm:$0xff] }
  0xd0   :  { %5389 = vmatpush1.bf16.msra.mxu0 %v10623_v38  ;;  %831 = vmatmul.mubr.f32.gmra.mrb[2].mxu1 %v10624_v51  ;;  %v10634_v38 = vld [vmem:[#allocation214_spill] sm:$0xff] }
  0xd1   :  { %4813 = vmatpush1.bf16.msra.mxu1 %v4812_v6  ;;  %5391 = vmatprep.subr.bf16.mxu0 %v10625_v39  ;;  %v10635_v6 = vld [vmem:[#allocation41_spill] sm:$0xff]  ;;  %v10636_v39 = vld [vmem:[#allocation44_spill] sm:$0xff]  ;;  %v10637_v51 = vld [vmem:[#allocation46_spill] sm:$0xff] }
  0xd2   :  { %4815 = vmatprep.subr.bf16.mxu1 %v4814_v61  ;;  %3000 = vmatmul.mubr.f32.gmra.mrb[2].mxu0 %v10630_v3  ;;  %v4820_v52 = vpack.c.bf16 %v10637_v51, %v10636_v39  ;;  %v10638_v61 = vld [vmem:[#allocation51_spill] sm:$0xff]  ;;  %v10645_v51 = vld [vmem:[#allocation64_spill] sm:$0xff] }
  0xd3   :  { %837 = vmatprep.mubr.f32.mxu1 %v10631_v41  ;;  %3006 = vmatprep.mubr.f32.mxu0 %v10632_v24  ;;  %v4822_v62 = vpack.c.bf16 %v10639_v28, %v10638_v61  ;;  %v10640_v41 = vld [vmem:[#allocation47_spill] sm:$0xff] }
  0xd4   :  { %5393 = vmatpush1.bf16.msra.mxu0 %v10633_v27  ;;  %839 = vmatmul.mubr.f32.gmra.mrb[4].mxu1 %v10634_v38  ;;  %v10643_v27 = vld [vmem:[#allocation58_spill] sm:$0xff]  ;;  %v10646_v61 = vld [vmem:[#allocation195_spill] sm:$0xff] }
  0xd5   :  { %4817 = vmatpush1.bf16.msra.mxu1 %v4816_v34  ;;  %5395 = vmatprep.subr.bf16.mxu0 %v10635_v6  ;;  %v10641_v34 = vld [vmem:[#allocation54_spill] sm:$0xff]  ;;  %v10642_v6 = vld [vmem:[#allocation57_spill] sm:$0xff]  ;;  %v10653_v39 = vld [vmem:[#allocation71_spill] sm:$0xff] }
  0xd6   :  { %4819 = vmatprep.subr.bf16.mxu1 %v4818_v46  ;;  %3008 = vmatmul.mubr.f32.gmra.mrb[4].mxu0 %v7394_v36  ;;  %v4824_v38 = vpack.c.bf16 %v10643_v27, %v10642_v6  ;;  %v10644_v46 = vld [vmem:[#allocation63_spill] sm:$0xff] }
  0xd7   :  { %845 = vmatprep.mubr.f32.mxu1 %v7414_v29  ;;  %3014 = vmatprep.mubr.f32.mxu0 %v7425_v23  ;;  %v4826_v28 = vpack.c.bf16 %v10645_v51, %v10644_v46  ;;  %v10647_v29 = vld [vmem:[#allocation59_spill] sm:$0xff]  ;;  %v10654_v51 = vld [vmem:[#allocation78_spill] sm:$0xff]  ;;  %v10655_v46 = vld [vmem:[#allocation81_spill] sm:$0xff] }
  0xd8   :  { %5397 = vmatpush1.bf16.msra.mxu0 %v10640_v41  ;;  %847 = vmatmul.mubr.f32.gmra.mrb[6].mxu1 %v7443_v22  ;;  %v10648_v41 = vld [vmem:[#allocation66_spill] sm:$0xff]  ;;  %v10651_v27 = vld [vmem:[#allocation75_spill] sm:$0xff] }
  0xd9   :  { %4821 = vmatpush1.bf16.msra.mxu1 %v4820_v52  ;;  %5399 = vmatprep.subr.bf16.mxu0 %v10641_v34  ;;  %v10649_v52 = vld [vmem:[#allocation69_spill] sm:$0xff]  ;;  %v10650_v34 = vld [vmem:[#allocation70_spill] sm:$0xff] }
  0xda   :  { %4823 = vmatprep.subr.bf16.mxu1 %v4822_v62  ;;  %3016 = vmatmul.mubr.f32.gmra.mrb[6].mxu0 %v7465_v57  ;;  %v4828_v22 = vpack.c.bf16 %v10650_v34, %v10649_v52  ;;  %v10652_v62 = vld [vmem:[#allocation76_spill] sm:$0xff]  ;;  %v195_v52 = vld [vmem:[%s9462_s1 + $0x4e0] sm:$0xff] }
  0xdb   :  { %1047 = vmatprep.mubr.f32.mxu1 %v10646_v61  ;;  %3151 = vmatprep.mubr.f32.mxu0 %v10608_v0  ;;  %v4830_v6 = vpack.c.bf16 %v10652_v62, %v10651_v27  ;;  %v4832_v0 = vpack.c.bf16 %v10656_v48, %v10655_v46  ;;  %v191_v48 = vld [vmem:[%s9462_s1 + $0x4c0] sm:$0xff]  ;;  %v193_v46 = vld [vmem:[%s9462_s1 + $0x4d0] sm:$0xff]  ;;  %v10730_v27 = vld [vmem:[#allocation26_spill] sm:$0xff] }
  0xdc   :  { %5401 = vmatpush1.bf16.msra.mxu0 %v10647_v29  ;;  %v10657_v29 = vld [vmem:[#allocation83_spill] sm:$0xff]  ;;  %v3237_v34 = vand.u32 4294901760, %v193_v46 }
  0xdd   :  { %4825 = vmatpush1.bf16.msra.mxu1 %v4824_v38  ;;  %5403 = vmatprep.subr.bf16.mxu0 %v10648_v41  ;;  %v10658_v38 = vld [vmem:[#allocation90_spill] sm:$0xff]  ;;  %v10660_v41 = vld [vmem:[#allocation95_spill] sm:$0xff] }
  0xde   :  { %4827 = vmatprep.subr.bf16.mxu1 %v4826_v28  ;;  %v10659_v28 = vpack.c.bf16 %v10504_v12, %v10503_v9  ;;  %v10726_v62 = vld [vmem:[#allocation207_spill] sm:$0xff] }
  0xe0   :  { %5405 = vmatpush1.bf16.msra.mxu0 %v10653_v39 }
  0xe1   :  { %4829 = vmatpush1.bf16.msra.mxu1 %v4828_v22  ;;  %5407 = vmatprep.subr.bf16.mxu0 %v10654_v51  ;;  %v10661_v22 = vpack.c.bf16 %v10508_v19, %v10507_v32  ;;  %v10662_v51 = vld [vmem:[#allocation102_spill] sm:$0xff] }
  0xe2   :  { %4831 = vmatprep.subr.bf16.mxu1 %v4830_v6  ;;  %v10663_v6 = vpack.c.bf16 %v10513_v50, %v10512_v13 }
  0xe4   :  { %5409 = vmatpush1.bf16.msra.mxu0 %v10657_v29  ;;  %v10664_v29 = vld [vmem:[#allocation107_spill] sm:$0xff] }
  0xe5   :  { %4833 = vmatpush1.bf16.msra.mxu1 %v4832_v0  ;;  %5411 = vmatprep.subr.bf16.mxu0 %v10658_v38  ;;  %v10665_v0 = vpack.c.bf16 %v10517_v59, %v10516_v11  ;;  %v10666_v38 = vld [vmem:[#allocation114_spill] sm:$0xff]  ;;  %v10705_v59 = vld [vmem:[#allocation5_spill] sm:$0xff] }
  0xe6   :  { %4835 = vmatprep.subr.bf16.mxu1 %v10659_v28  ;;  %v10667_v28 = vpack.c.bf16 %v10522_v42, %v10521_v60  ;;  %v179_v42 = vld [vmem:[%s9462_s1 + $0x460] sm:$0xff]  ;;  %v186_v60 = vld [vmem:[%s9462_s1 + $0x498] sm:$0xff] }
  0xe7   :  { %v183_v11 = vld [vmem:[%s9462_s1 + $0x480] sm:$0xff] }
  0xe8   :  { %5413 = vmatpush1.bf16.msra.mxu0 %v10660_v41  ;;  %v10668_v41 = vld [vmem:[#allocation119_spill] sm:$0xff]  ;;  %v3217_v32 = vand.u32 4294901760, %v183_v11 }
  0xe9   :  { %4837 = vmatpush1.bf16.msra.mxu1 %v10661_v22  ;;  %5415 = vmatprep.subr.bf16.mxu0 %v10662_v51  ;;  %v10669_v22 = vpack.c.bf16 %v10526_v44, %v10525_v47  ;;  %v10670_v51 = vld [vmem:[#allocation126_spill] sm:$0xff] }
  0xea   :  { %4839 = vmatprep.subr.bf16.mxu1 %v10663_v6  ;;  %v10671_v6 = vpack.c.bf16 %v10531_v63, %v10530_v2 }
  0xec   :  { %5417 = vmatpush1.bf16.msra.mxu0 %v10664_v29  ;;  %v10672_v29 = vld [vmem:[#allocation131_spill] sm:$0xff] }
  0xed   :  { %4841 = vmatpush1.bf16.msra.mxu1 %v10665_v0  ;;  %5419 = vmatprep.subr.bf16.mxu0 %v10666_v38  ;;  %v10673_v0 = vpack.c.bf16 %v10535_v4, %v10534_v55  ;;  %v10674_v38 = vld [vmem:[#allocation138_spill] sm:$0xff]  ;;  %v177_v4 = vld [vmem:[%s9462_s1 + $0x450] sm:$0xff] }
  0xee   :  { %4843 = vmatprep.subr.bf16.mxu1 %v10667_v28  ;;  %v10675_v28 = vpack.c.bf16 %v10540_v26, %v10539_v49  ;;  %v3205_v47 = vand.u32 4294901760, %v177_v4 }
  0xf0   :  { %5421 = vmatpush1.bf16.msra.mxu0 %v10668_v41  ;;  %v10676_v41 = vld [vmem:[#allocation143_spill] sm:$0xff]  ;;  %v7771_v50 = vsub.f32 %v177_v4, %v3205_v47  ;;  %v10721_v4 = vld [vmem:[#allocation204_spill] sm:$0xff] }
  0xf1   :  { %4845 = vmatpush1.bf16.msra.mxu1 %v10669_v22  ;;  %5423 = vmatprep.subr.bf16.mxu0 %v10670_v51  ;;  %v10677_v22 = vpack.c.bf16 %v10544_v40, %v10543_v31  ;;  %v10678_v51 = vld [vmem:[#allocation150_spill] sm:$0xff]  ;;  %v10690_v40 = vld [vmem:[#allocation187_spill] sm:$0xff] }
  0xf2   :  { %4847 = vmatprep.subr.bf16.mxu1 %v10671_v6  ;;  %v10679_v6 = vpack.c.bf16 %v10549_v37, %v10548_v15  ;;  %v20_v37 = vld [vmem:[%s9461_s0 + $0x28] sm:$0xff]  ;;  %v10689_v15 = vpack.c.bf16 %v10618_v58, %v10617_v10  ;;  %v10694_v58 = vpack.c.bf16 %v10596_v56, %v6832_v30  ;;  %10716 = vst [vmem:[#allocation244_spill] sm:$0xff] %v7771_v50 }
  0xf3   :  { %v7709_v56 = vand.u32 4294901760, %v20_v37 }
  0xf4   :  { %5425 = vmatpush1.bf16.msra.mxu0 %v10672_v29  ;;  %v10680_v29 = vld [vmem:[#allocation155_spill] sm:$0xff] }
  0xf5   :  { %4849 = vmatpush1.bf16.msra.mxu1 %v10673_v0  ;;  %5427 = vmatprep.subr.bf16.mxu0 %v10674_v38  ;;  %v10681_v0 = vpack.c.bf16 %v10553_v14, %v10552_v43  ;;  %v10682_v38 = vld [vmem:[#allocation162_spill] sm:$0xff]  ;;  %v178_v43 = vld [vmem:[%s9462_s1 + $0x458] sm:$0xff]  ;;  %10698 = vst [vmem:[#allocation231_spill] sm:$0xff] %v7709_v56 }
  0xf6   :  { %4851 = vmatprep.subr.bf16.mxu1 %v10675_v28  ;;  %v10683_v28 = vpack.c.bf16 %v10560_v21, %v10559_v7  ;;  %v174_v21 = vld [vmem:[%s9462_s1 + $0x438] sm:$0xff]  ;;  %v10687_v7 = vpack.c.bf16 %v10616_v54, %v10615_v1  ;;  %v176_v14 = vld [vmem:[%s9462_s1 + $0x448] sm:$0xff]  ;;  %v10688_v54 = vld [vmem:[#allocation179_spill] sm:$0xff]  ;;  %v3203_v55 = vand.u32 4294901760, %v178_v43 }
  0xf7   :  { %v3195_v1 = vand.u32 4294901760, %v174_v21  ;;  %v3199_v10 = vand.u32 4294901760, %v176_v14 }
  0xf8   :  { %5429 = vmatpush1.bf16.msra.mxu0 %v10676_v41 }
  0xf9   :  { %4853 = vmatpush1.bf16.msra.mxu1 %v10677_v22  ;;  %5431 = vmatprep.subr.bf16.mxu0 %v10678_v51  ;;  %v168_v22 = vld [vmem:[%s9462_s1 + $0x408] sm:$0xff]  ;;  %v10684_v51 = vld [vmem:[#allocation167_spill] sm:$0xff] }
  0xfa   :  { %4855 = vmatprep.subr.bf16.mxu1 %v10679_v6  ;;  %v170_v6 = vld [vmem:[%s9462_s1 + $0x418] sm:$0xff]  ;;  %v3183_v41 = vand.u32 4294901760, %v168_v22 }
  0xfb   :  { %v3187_v39 = vand.u32 4294901760, %v170_v6 }
  0xfc   :  { %5433 = vmatpush1.bf16.msra.mxu0 %v10680_v29  ;;  %v10686_v29 = vld [vmem:[#allocation174_spill] sm:$0xff]  ;;  %v7684_v26 = vsub.f32 %v168_v22, %v3183_v41 }
  0xfd   :  { %4857 = vmatpush1.bf16.msra.mxu1 %v10681_v0  ;;  %5435 = vmatprep.subr.bf16.mxu0 %v10682_v38  ;;  %v167_v0 = vld [vmem:[%s9462_s1 + $0x400] sm:$0xff]  ;;  %v169_v38 = vld [vmem:[%s9462_s1 + $0x410] sm:$0xff]  ;;  %v7682_v31 = vpack.c.bf16 %v3187_v39, %v3183_v41  ;;  %v7686_v49 = vsub.f32 %v170_v6, %v3187_v39  ;;  %v180_v41 = vld [vmem:[%s9462_s1 + $0x468] sm:$0xff] }
  0xfe   :  { %4859 = vmatprep.subr.bf16.mxu1 %v10683_v28  ;;  %v10685_v28 = vpack.c.bf16 %v10614_v8, %v10613_v35  ;;  %v3185_v8 = vand.u32 4294901760, %v167_v0  ;;  %v173_v35 = vld [vmem:[%s9462_s1 + $0x430] sm:$0xff]  ;;  %10692 = vst [vmem:[#allocation226_spill] sm:$0xff] %v7684_v26  ;;  %v182_v39 = vld [vmem:[%s9462_s1 + $0x478] sm:$0xff] }
  0xff   :  { %10691 = vst [vmem:[#allocation195_spill] sm:$0xff] %v7682_v31  ;;  %10693 = vst [vmem:[#allocation227_spill] sm:$0xff] %v7686_v49 }
 0x100   :  { %5437 = vmatpush1.bf16.msra.mxu0 %v10684_v51  ;;  %v172_v51 = vld [vmem:[%s9462_s1 + $0x428] sm:$0xff]  ;;  %v7705_v6 = vsub.f32 %v167_v0, %v3185_v8  ;;  %v3207_v0 = vand.u32 4294901760, %v180_v41 }
 0x101   :  { %4861 = vmatpush1.bf16.msra.mxu1 %v10685_v28  ;;  %5439 = vmatprep.subr.bf16.mxu0 %v10686_v29  ;;  %v171_v28 = vld [vmem:[%s9462_s1 + $0x420] sm:$0xff]  ;;  %v3189_v29 = vand.u32 4294901760, %v169_v38 }
 0x102   :  { %4863 = vmatprep.subr.bf16.mxu1 %v10687_v7  ;;  %v3191_v7 = vand.u32 4294901760, %v172_v51  ;;  %10696 = vst [vmem:[#allocation229_spill] sm:$0xff] %v7705_v6 }
 0x103   :  { %v7703_v22 = vpack.c.bf16 %v3189_v29, %v3185_v8  ;;  %v7707_v63 = vsub.f32 %v169_v38, %v3189_v29  ;;  %v181_v8 = vld [vmem:[%s9462_s1 + $0x470] sm:$0xff]  ;;  %v10702_v29 = vpack.c.bf16 %v6857_v53, %v6852_v5  ;;  %v7726_v38 = vsub.f32 %v174_v21, %v3195_v1 }
 0x104   :  { %5441 = vmatpush1.bf16.msra.mxu0 %v10688_v54  ;;  %v175_v54 = vld [vmem:[%s9462_s1 + $0x440] sm:$0xff]  ;;  %v7712_v30 = vpack.c.bf16 %v3195_v1, %v3191_v7  ;;  %v7714_v2 = vsub.f32 %v172_v51, %v3191_v7  ;;  %v3211_v7 = vand.u32 4294901760, %v182_v39  ;;  %v7741_v21 = vpack.c.bf16 %v3203_v55, %v3199_v10 }
 0x105   :  { %4865 = vmatpush1.bf16.msra.mxu1 %v10689_v15  ;;  %5443 = vmatprep.subr.bf16.mxu0 %v10690_v40  ;;  %v3193_v15 = vand.u32 4294901760, %v171_v28  ;;  %v3197_v40 = vand.u32 4294901760, %v173_v35  ;;  %10695 = vst [vmem:[#allocation228_spill] sm:$0xff] %v7703_v22  ;;  %10697 = vst [vmem:[#allocation230_spill] sm:$0xff] %v7707_v63  ;;  %v3201_v44 = vand.u32 4294901760, %v175_v54  ;;  %v7743_v1 = vsub.f32 %v176_v14, %v3199_v10 }
 0x106   :  { %4867 = vmatprep.subr.bf16.mxu1 %v10694_v58  ;;  %v10699_v58 = vld [vmem:[#allocation192_spill] sm:$0xff]  ;;  %10700 = vst [vmem:[#allocation232_spill] sm:$0xff] %v7712_v30  ;;  %10701 = vst [vmem:[#allocation233_spill] sm:$0xff] %v7714_v2  ;;  %v3213_v5 = vand.u32 4294901760, %v181_v8  ;;  %v3219_v10 = vand.u32 4294901760, %v186_v60  ;;  %v7778_v13 = vsub.f32 %v182_v39, %v3211_v7 }
 0x107   :  { %10703 = vst [vmem:[#allocation234_spill] sm:$0xff] %v7726_v38  ;;  %v7728_v51 = vsub.f32 %v171_v28, %v3193_v15  ;;  %v7737_v53 = vpack.c.bf16 %v3197_v40, %v3193_v15  ;;  %10708 = vst [vmem:[#allocation238_spill] sm:$0xff] %v7741_v21  ;;  %v7746_v28 = vsub.f32 %v178_v43, %v3203_v55  ;;  %v185_v15 = vld [vmem:[%s9462_s1 + $0x490] sm:$0xff]  ;;  %v194_v39 = vld [vmem:[%s9462_s1 + $0x4d8] sm:$0xff] }
 0x108   :  { %5445 = vmatpush1.bf16.msra.mxu0 %v10699_v58  ;;  %v184_v58 = vld [vmem:[%s9462_s1 + $0x488] sm:$0xff]  ;;  %10709 = vst [vmem:[#allocation239_spill] sm:$0xff] %v7743_v1  ;;  %v7759_v14 = vpack.c.bf16 %v3205_v47, %v3201_v44  ;;  %v7761_v55 = vsub.f32 %v175_v54, %v3201_v44  ;;  %v7775_v54 = vsub.f32 %v180_v41, %v3207_v0  ;;  %v10719_v44 = vld [vmem:[#allocation15_spill] sm:$0xff]  ;;  %10720 = vst [vmem:[#allocation247_spill] sm:$0xff] %v7778_v13 }
 0x109   :  { %4869 = vmatpush1.bf16.msra.mxu1 %v10702_v29  ;;  %5447 = vmatprep.subr.bf16.mxu0 %v7682_v31  ;;  %10704 = vst [vmem:[#allocation235_spill] sm:$0xff] %v7728_v51  ;;  %10706 = vst [vmem:[#allocation236_spill] sm:$0xff] %v7737_v53  ;;  %v7739_v29 = vsub.f32 %v173_v35, %v3197_v40  ;;  %v3209_v31 = vand.u32 4294901760, %v179_v42  ;;  %v7755_v40 = vsub.f32 %v20_v37, %v7709_v56  ;;  %v10712_v35 = vld [vmem:[#allocation199_spill] sm:$0xff]  ;;  %v10715_v37 = vld [vmem:[#allocation9_spill] sm:$0xff] }
 0x10a   :  { %4871 = vmatprep.subr.bf16.mxu1 %v10705_v59  ;;  %10710 = vst [vmem:[#allocation240_spill] sm:$0xff] %v7746_v28  ;;  %10713 = vst [vmem:[#allocation242_spill] sm:$0xff] %v7759_v14  ;;  %v3215_v43 = vand.u32 4294901760, %v184_v58  ;;  %v190_v59 = vld [vmem:[%s9462_s1 + $0x4b8] sm:$0xff]  ;;  %v3221_v12 = vand.u32 4294901760, %v185_v15  ;;  %v189_v47 = vld [vmem:[%s9462_s1 + $0x4b0] sm:$0xff] }
 0x10b   :  { %10707 = vst [vmem:[#allocation237_spill] sm:$0xff] %v7739_v29  ;;  %3153 = vmatmul.mubr.f32.vlgmr.msra.gmra.mrb[0].mxu0 %v6907_v18  ;;  %10711 = vst [vmem:[#allocation241_spill] sm:$0xff] %v7755_v40  ;;  %v188_v18 = vld [vmem:[%s9462_s1 + $0x4a8] sm:$0xff]  ;;  %v7780_v19 = vsub.f32 %v179_v42, %v3209_v31  ;;  %v7789_v41 = vpack.c.bf16 %v3213_v5, %v3209_v31 }
 0x10c   :  { %1050 = vmatmul.mubr.f32.vlgmr.msra.gmra.mrb[0].mxu1 %v10712_v35  ;;  %5449 = vmatpush1.bf16.msra.mxu0 %v7703_v22  ;;  %10714 = vst [vmem:[#allocation243_spill] sm:$0xff] %v7761_v55  ;;  %v7773_v22 = vpack.c.bf16 %v3211_v7, %v3207_v0  ;;  %10718 = vst [vmem:[#allocation246_spill] sm:$0xff] %v7775_v54  ;;  %v3223_v0 = vand.u32 4294901760, %v188_v18  ;;  %v192_v42 = vld [vmem:[%s9462_s1 + $0x4c8] sm:$0xff]  ;;  %v7802_v31 = vpack.c.bf16 %v3219_v10, %v3215_v43 }
 0x10d   :  { %4873 = vmatpush1.bf16.msra.mxu1 %v10715_v37  ;;  %5451 = vmatprep.subr.bf16.mxu0 %v7712_v30  ;;  %v187_v37 = vld [vmem:[%s9462_s1 + $0x4a0] sm:$0xff]  ;;  %10722 = vst [vmem:[#allocation248_spill] sm:$0xff] %v7789_v41  ;;  %v3227_v30 = vand.u32 4294901760, %v190_v59  ;;  %v7804_v9 = vsub.f32 %v184_v58, %v3215_v43  ;;  %v3229_v43 = vand.u32 4294901760, %v189_v47  ;;  %v196_v7 = vld [vmem:[%s9462_s1 + $0x4e8] sm:$0xff]  ;;  %v7826_v56 = vpack.c.bf16 %v3221_v12, %v3217_v32 }
 0x10e   :  { %10717 = vst [vmem:[#allocation245_spill] sm:$0xff] %v7773_v22  ;;  %4875 = vmatprep.subr.bf16.mxu1 %v10719_v44  ;;  %1057 = vmatprep.mubr.f32.mxu1 %v10721_v4  ;;  %v7800_v44 = vsub.f32 %v181_v8, %v3213_v5  ;;  %10724 = vst [vmem:[#allocation250_spill] sm:$0xff] %v7802_v31  ;;  %v7815_v5 = vsub.f32 %v186_v60, %v3219_v10  ;;  %v3225_v58 = vand.u32 4294901760, %v187_v37 }
 0x10f   :  { %3159 = vmatprep.mubr.f32.mxu0 %v10622_v45  ;;  %10725 = vst [vmem:[#allocation251_spill] sm:$0xff] %v7804_v9  ;;  %v10727_v45 = vld [vmem:[#allocation21_spill] sm:$0xff]  ;;  %v7817_v8 = vsub.f32 %v183_v11, %v3217_v32  ;;  %10731 = vst [vmem:[#allocation254_spill] sm:$0xff] %v7826_v56  ;;  %v3231_v60 = vand.u32 4294901760, %v192_v42  ;;  %v3235_v10 = vand.u32 4294901760, %v194_v39  ;;  %v7831_v11 = vpack.c.bf16 %v3227_v30, %v3223_v0  ;;  %v10734_v32 = vld [vmem:[#allocation211_spill] sm:$0xff] }
 0x110   :  { %5453 = vmatpush1.bf16.msra.mxu0 %v7737_v53  ;;  %10723 = vst [vmem:[#allocation249_spill] sm:$0xff] %v7800_v44  ;;  %1060 = vmatmul.mubr.f32.gmra.mrb[2].mxu1 %v10726_v62  ;;  %10728 = vst [vmem:[#allocation252_spill] sm:$0xff] %v7815_v5  ;;  %v198_v53 = vld [vmem:[%s9462_s1 + $0x4f8] sm:$0xff]  ;;  %v7847_v62 = vsub.f32 %v190_v59, %v3227_v30  ;;  %v3239_v4 = vand.u32 4294901760, %v196_v7  ;;  %v7856_v5 = vsub.f32 %v189_v47, %v3229_v43  ;;  %v10743_v59 = vld [vmem:[#allocation38_spill] sm:$0xff] }
 0x111   :  { %4877 = vmatpush1.bf16.msra.mxu1 %v10727_v45  ;;  %5455 = vmatprep.subr.bf16.mxu0 %v7741_v21  ;;  %10729 = vst [vmem:[#allocation253_spill] sm:$0xff] %v7817_v8  ;;  %v7828_v45 = vsub.f32 %v185_v15, %v3221_v12  ;;  %10733 = vst [vmem:[#allocation256_spill] sm:$0xff] %v7831_v11  ;;  %v3233_v21 = vand.u32 4294901760, %v191_v48  ;;  %v10735_v12 = vand.u32 4294901760, %v7755_v40  ;;  %v3243_v35 = vand.u32 4294901760, %v198_v53  ;;  %v10739_v8 = vld [vmem:[#allocation32_spill] sm:$0xff] }
 0x112   :  { %4879 = vmatprep.subr.bf16.mxu1 %v10730_v27  ;;  %3161 = vmatmul.mubr.f32.gmra.mrb[2].mxu0 %v10630_v3  ;;  %v197_v27 = vld [vmem:[%s9462_s1 + $0x4f0] sm:$0xff]  ;;  %v7845_v3 = vsub.f32 %v188_v18, %v3223_v0  ;;  %10737 = vst [vmem:[#allocation258_spill] sm:$0xff] %v7847_v62  ;;  %10742 = vst [vmem:[#allocation261_spill] sm:$0xff] %v7856_v5  ;;  %v200_v18 = vld [vmem:[%s9462_s1 + $0x508] sm:$0xff]  ;;  %v7865_v0 = vpack.c.bf16 %v3235_v10, %v3231_v60 }
 0x113   :  { %10732 = vst [vmem:[#allocation255_spill] sm:$0xff] %v7828_v45  ;;  %1067 = vmatprep.mubr.f32.mxu1 %v10734_v32  ;;  %3167 = vmatprep.mubr.f32.mxu0 %v10632_v24  ;;  %v3314_v15 = vsub.f32 %v7755_v40, %v10735_v12  ;;  %v10738_v45 = vld [vmem:[#allocation215_spill] sm:$0xff]  ;;  %v7852_v32 = vpack.c.bf16 %v3229_v43, %v3225_v58  ;;  %v202_v30 = vld [vmem:[%s9462_s1 + $0x518] sm:$0xff] }
 0x114   :  { %5457 = vmatpush1.bf16.msra.mxu0 %v7759_v14  ;;  %10736 = vst [vmem:[#allocation257_spill] sm:$0xff] %v7845_v3  ;;  %1070 = vmatmul.mubr.f32.gmra.mrb[4].mxu1 %v10738_v45  ;;  %v7854_v24 = vsub.f32 %v187_v37, %v3225_v58  ;;  %10744 = vst [vmem:[#allocation262_spill] sm:$0xff] %v7865_v0  ;;  %v7867_v12 = vsub.f32 %v192_v42, %v3231_v60  ;;  %v3245_v14 = vand.u32 4294901760, %v197_v27  ;;  %v199_v37 = vld [vmem:[%s9462_s1 + $0x500] sm:$0xff]  ;;  %v201_v47 = vld [vmem:[%s9462_s1 + $0x510] sm:$0xff] }
 0x115   :  { %4881 = vmatpush1.bf16.msra.mxu1 %v10739_v8  ;;  %5459 = vmatprep.subr.bf16.mxu0 %v7773_v22  ;;  %10740 = vst [vmem:[#allocation259_spill] sm:$0xff] %v7852_v32  ;;  %v3241_v22 = vand.u32 4294901760, %v195_v52  ;;  %v7876_v58 = vsub.f32 %v194_v39, %v3235_v10  ;;  %v7878_v43 = vpack.c.bf16 %v3237_v34, %v3233_v21  ;;  %v204_v42 = vld [vmem:[%s9462_s1 + $0x528] sm:$0xff]  ;;  %v206_v60 = vld [vmem:[%s9462_s1 + $0x538] sm:$0xff]  ;;  %v205_v8 = vld [vmem:[%s9462_s1 + $0x530] sm:$0xff] }
 0x116   :  { %10741 = vst [vmem:[#allocation260_spill] sm:$0xff] %v7854_v24  ;;  %4883 = vmatprep.subr.bf16.mxu1 %v10743_v59  ;;  %10745 = vst [vmem:[#allocation263_spill] sm:$0xff] %v7867_v12  ;;  %3169 = vmatmul.mubr.f32.gmra.mrb[4].mxu0 %v7394_v36  ;;  %v7880_v40 = vsub.f32 %v191_v48, %v3233_v21  ;;  %v3315_v59 = vand.u32 4294901760, %v3314_v15  ;;  %v7891_v39 = vsub.f32 %v193_v46, %v3237_v34  ;;  %v203_v36 = vld [vmem:[%s9462_s1 + $0x520] sm:$0xff]  ;;  %v210_v45 = vld [vmem:[%s9462_s1 + $0x558] sm:$0xff] }
 0x117   :  { %10746 = vst [vmem:[#allocation264_spill] sm:$0xff] %v7876_v58  ;;  %10747 = vst [vmem:[#allocation265_spill] sm:$0xff] %v7878_v43  ;;  %1077 = vmatprep.mubr.f32.mxu1 %v7428_v20  ;;  %3175 = vmatprep.mubr.f32.mxu0 %v7425_v23  ;;  %v7893_v10 = vpack.c.bf16 %v3243_v35, %v3239_v4  ;;  %v3247_v48 = vand.u32 4294901760, %v200_v18  ;;  %v3251_v21 = vand.u32 4294901760, %v202_v30  ;;  %v10751_v23 = vld [vmem:[#allocation45_spill] sm:$0xff]  ;;  %v3249_v15 = vand.u32 4294901760, %v199_v37 }
 0x118   :  { %10748 = vst [vmem:[#allocation266_spill] sm:$0xff] %v7880_v40  ;;  %5461 = vmatpush1.bf16.msra.mxu0 %v7789_v41  ;;  %10749 = vst [vmem:[#allocation267_spill] sm:$0xff] %v7891_v39  ;;  %1080 = vmatmul.mubr.f32.gmra.mrb[6].mxu1 %v7456_v33  ;;  %v7904_v34 = vsub.f32 %v196_v7, %v3239_v4  ;;  %v7906_v46 = vsub.f32 %v198_v53, %v3243_v35  ;;  %v3253_v41 = vand.u32 4294901760, %v201_v47  ;;  %v208_v20 = vld [vmem:[%s9462_s1 + $0x548] sm:$0xff]  ;;  %v207_v53 = vld [vmem:[%s9462_s1 + $0x540] sm:$0xff] }
 0x119   :  { %10750 = vst [vmem:[#allocation268_spill] sm:$0xff] %v7893_v10  ;;  %4885 = vmatpush1.bf16.msra.mxu1 %v10751_v23  ;;  %5463 = vmatprep.subr.bf16.mxu0 %v7802_v31  ;;  %v10754_v39 = vld [vmem:[#allocation50_spill] sm:$0xff]  ;;  %v7915_v33 = vpack.c.bf16 %v3245_v14, %v3241_v22  ;;  %v7917_v23 = vsub.f32 %v195_v52, %v3241_v22  ;;  %v3255_v4 = vand.u32 4294901760, %v204_v42  ;;  %v3259_v7 = vand.u32 4294901760, %v206_v60  ;;  %v209_v35 = vld [vmem:[%s9462_s1 + $0x550] sm:$0xff] }
 0x11a   :  { %10752 = vst [vmem:[#allocation269_spill] sm:$0xff] %v7904_v34  ;;  %10753 = vst [vmem:[#allocation270_spill] sm:$0xff] %v7906_v46  ;;  %4887 = vmatprep.subr.bf16.mxu1 %v10754_v39  ;;  %3177 = vmatmul.mubr.f32.gmra.mrb[6].mxu0 %v7465_v57  ;;  %v7926_v31 = vsub.f32 %v197_v27, %v3245_v14  ;;  %v7928_v46 = vsub.f32 %v200_v18, %v3247_v48  ;;  %v3257_v39 = vand.u32 4294901760, %v203_v36  ;;  %v212_v27 = vld [vmem:[%s9462_s1 + $0x568] sm:$0xff]  ;;  %v214_v14 = vld [vmem:[%s9462_s1 + $0x578] sm:$0xff] }
 0x11b   :  { %10755 = vst [vmem:[#allocation271_spill] sm:$0xff] %v7915_v33  ;;  %10756 = vst [vmem:[#allocation272_spill] sm:$0xff] %v7917_v23  ;;  %v3261_v34 = vand.u32 4294901760, %v205_v8  ;;  %v10759_v52 = vand.u32 4294901760, %v10646_v61  ;;  %3316 = vmatprep.mubr.f32.mxu0 %v3315_v59  ;;  %v7933_v22 = vpack.c.bf16 %v3251_v21, %v3247_v48  ;;  %v7935_v23 = vsub.f32 %v202_v30, %v3251_v21  ;;  %v10762_v18 = vld [vmem:[#allocation56_spill] sm:$0xff]  ;;  %v10765_v21 = vld [vmem:[#allocation62_spill] sm:$0xff] }
 0x11c   :  { %10757 = vst [vmem:[#allocation273_spill] sm:$0xff] %v7926_v31  ;;  %10758 = vst [vmem:[#allocation274_spill] sm:$0xff] %v7928_v46  ;;  %5465 = vmatpush1.bf16.msra.mxu0 %v7826_v56  ;;  %v3263_v40 = vand.u32 4294901760, %v208_v20  ;;  %v3267_v58 = vand.u32 4294901760, %v210_v45  ;;  %v7945_v61 = vpack.c.bf16 %v3253_v41, %v3249_v15  ;;  %v7947_v59 = vsub.f32 %v199_v37, %v3249_v15  ;;  %v213_v37 = vld [vmem:[%s9462_s1 + $0x570] sm:$0xff]  ;;  %v216_v15 = vld [vmem:[%s9462_s1 + $0x588] sm:$0xff] }
 0x11d   :  { %1217 = vmatprep.mubr.f32.mxu1 %v10759_v52  ;;  %10760 = vst [vmem:[#allocation275_spill] sm:$0xff] %v7933_v22  ;;  %10761 = vst [vmem:[#allocation276_spill] sm:$0xff] %v7935_v23  ;;  %4889 = vmatpush1.bf16.msra.mxu1 %v10762_v18  ;;  %v3265_v30 = vand.u32 4294901760, %v207_v53  ;;  %v3269_v48 = vand.u32 4294901760, %v209_v35  ;;  %v7950_v52 = vsub.f32 %v201_v47, %v3253_v41 }
 0x11e   :  { %5467 = vmatprep.subr.bf16.mxu0 %v7831_v11  ;;  %10763 = vst [vmem:[#allocation277_spill] sm:$0xff] %v7945_v61  ;;  %10764 = vst [vmem:[#allocation278_spill] sm:$0xff] %v7947_v59  ;;  %4891 = vmatprep.subr.bf16.mxu1 %v10765_v21  ;;  %v7952_v57 = vpack.c.bf16 %v3259_v7, %v3255_v4  ;;  %v7954_v56 = vsub.f32 %v204_v42, %v3255_v4  ;;  %v211_v11 = vld [vmem:[%s9462_s1 + $0x560] sm:$0xff]  ;;  %v3271_v42 = vand.u32 4294901760, %v212_v27  ;;  %v217_v21 = vld [vmem:[%s9462_s1 + $0x590] sm:$0xff] }
 0x11f   :  { %10766 = vst [vmem:[#allocation279_spill] sm:$0xff] %v7950_v52  ;;  %v7956_v23 = vsub.f32 %v206_v60, %v3259_v7  ;;  %v7967_v41 = vpack.c.bf16 %v3261_v34, %v3257_v39  ;;  %v7969_v47 = vsub.f32 %v203_v36, %v3257_v39  ;;  %v3275_v4 = vand.u32 4294901760, %v214_v14  ;;  %v218_v60 = vld [vmem:[%s9462_s1 + $0x598] sm:$0xff]  ;;  %v215_v7 = vld [vmem:[%s9462_s1 + $0x580] sm:$0xff] }
 0x120   :  { %10767 = vst [vmem:[#allocation280_spill] sm:$0xff] %v7952_v57  ;;  %10768 = vst [vmem:[#allocation281_spill] sm:$0xff] %v7954_v56  ;;  %5469 = vmatpush1.bf16.msra.mxu0 %v7852_v32  ;;  %v7981_v18 = vsub.f32 %v205_v8, %v3261_v34  ;;  %v7983_v36 = vpack.c.bf16 %v3267_v58, %v3263_v40  ;;  %v7985_v39 = vsub.f32 %v208_v20, %v3263_v40  ;;  %v10776_v56 = vld [vmem:[#allocation68_spill] sm:$0xff]  ;;  %v221_v40 = vld [vmem:[%s9462_s1 + $0x5b0] sm:$0xff] }
 0x121   :  { %10769 = vst [vmem:[#allocation282_spill] sm:$0xff] %v7956_v23  ;;  %10770 = vst [vmem:[#allocation283_spill] sm:$0xff] %v7967_v41  ;;  %v220_v23 = vld [vmem:[%s9462_s1 + $0x5a8] sm:$0xff]  ;;  %4893 = vmatpush1.bf16.msra.mxu1 %v10776_v56  ;;  %5471 = vmatprep.subr.bf16.mxu0 %v7865_v0  ;;  %v7994_v52 = vpack.c.bf16 %v3269_v48, %v3265_v30  ;;  %v7996_v59 = vsub.f32 %v207_v53, %v3265_v30  ;;  %v3273_v8 = vand.u32 4294901760, %v211_v11  ;;  %v222_v20 = vld [vmem:[%s9462_s1 + $0x5b8] sm:$0xff] }
 0x122   :  { %10771 = vst [vmem:[#allocation284_spill] sm:$0xff] %v7969_v47  ;;  %10772 = vst [vmem:[#allocation285_spill] sm:$0xff] %v7981_v18  ;;  %v7987_v47 = vsub.f32 %v210_v45, %v3267_v58  ;;  %v3277_v34 = vand.u32 4294901760, %v213_v37  ;;  %v219_v45 = vld [vmem:[%s9462_s1 + $0x5a0] sm:$0xff]  ;;  %v10779_v58 = vld [vmem:[#allocation74_spill] sm:$0xff]  ;;  %v3279_v0 = vand.u32 4294901760, %v216_v15  ;;  %v8008_v56 = vsub.f32 %v209_v35, %v3269_v48 }
 0x123   :  { %10773 = vst [vmem:[#allocation286_spill] sm:$0xff] %v7983_v36  ;;  %10774 = vst [vmem:[#allocation287_spill] sm:$0xff] %v7985_v39  ;;  %4895 = vmatprep.subr.bf16.mxu1 %v10779_v58  ;;  %v3283_v32 = vand.u32 4294901760, %v218_v60  ;;  %v3281_v53 = vand.u32 4294901760, %v215_v7  ;;  %v3285_v30 = vand.u32 4294901760, %v217_v21  ;;  %v8014_v39 = vsub.f32 %v214_v14, %v3275_v4  ;;  %v224_v58 = vld [vmem:[%s9462_s1 + $0x5c8] sm:$0xff] }
 0x124   :  { %10775 = vst [vmem:[#allocation288_spill] sm:$0xff] %v7987_v47  ;;  %10777 = vst [vmem:[#allocation289_spill] sm:$0xff] %v7994_v52  ;;  %v8012_v47 = vsub.f32 %v212_v27, %v3271_v42  ;;  %5473 = vmatpush1.bf16.msra.mxu0 %v7878_v43  ;;  %v3287_v18 = vand.u32 4294901760, %v220_v23  ;;  %v3291_v46 = vand.u32 4294901760, %v222_v20  ;;  %v3289_v31 = vand.u32 4294901760, %v219_v45  ;;  %v226_v35 = vld [vmem:[%s9462_s1 + $0x5d8] sm:$0xff] }
 0x125   :  { %10778 = vst [vmem:[#allocation290_spill] sm:$0xff] %v7996_v59  ;;  %10780 = vst [vmem:[#allocation291_spill] sm:$0xff] %v8008_v56  ;;  %v8010_v59 = vpack.c.bf16 %v3275_v4, %v3271_v42  ;;  %v3293_v12 = vand.u32 4294901760, %v221_v40  ;;  %v10784_v48 = vld [vmem:[#allocation80_spill] sm:$0xff]  ;;  %5475 = vmatprep.subr.bf16.mxu0 %v7893_v10  ;;  %v8025_v27 = vpack.c.bf16 %v3277_v34, %v3273_v8  ;;  %v10788_v4 = vld [vmem:[#allocation86_spill] sm:$0xff] }
 0x126   :  { %10782 = vst [vmem:[#allocation293_spill] sm:$0xff] %v8012_v47  ;;  %10783 = vst [vmem:[#allocation294_spill] sm:$0xff] %v8014_v39  ;;  %4897 = vmatpush1.bf16.msra.mxu1 %v10784_v48  ;;  %v8027_v14 = vsub.f32 %v211_v11, %v3273_v8  ;;  %v8029_v42 = vsub.f32 %v213_v37, %v3277_v34  ;;  %v8032_v43 = vpack.c.bf16 %v3283_v32, %v3279_v0  ;;  %v223_v10 = vld [vmem:[%s9462_s1 + $0x5c0] sm:$0xff]  ;;  %v225_v11 = vld [vmem:[%s9462_s1 + $0x5d0] sm:$0xff] }
 0x127   :  { %10781 = vst [vmem:[#allocation292_spill] sm:$0xff] %v8010_v59  ;;  %10785 = vst [vmem:[#allocation295_spill] sm:$0xff] %v8025_v27  ;;  %4899 = vmatprep.subr.bf16.mxu1 %v10788_v4  ;;  %v8034_v39 = vsub.f32 %v216_v15, %v3279_v0  ;;  %v8036_v47 = vsub.f32 %v218_v60, %v3283_v32  ;;  %v8038_v56 = vpack.c.bf16 %v3285_v30, %v3281_v53  ;;  %v19_v37 = vld [vmem:[%s9461_s0 + $0x20] sm:$0xff]  ;;  %v228_v60 = vld [vmem:[%s9462_s1 + $0x5e8] sm:$0xff] }
 0x128   :  { %10786 = vst [vmem:[#allocation296_spill] sm:$0xff] %v8027_v14  ;;  %10787 = vst [vmem:[#allocation297_spill] sm:$0xff] %v8029_v42  ;;  %v8049_v8 = vsub.f32 %v215_v7, %v3281_v53  ;;  %v8051_v0 = vsub.f32 %v217_v21, %v3285_v30  ;;  %v3295_v32 = vand.u32 4294901760, %v224_v58  ;;  %v3299_v15 = vand.u32 4294901760, %v226_v35  ;;  %v230_v34 = vld [vmem:[%s9462_s1 + $0x5f8] sm:$0xff]  ;;  %5477 = vmatpush1.bf16.msra.mxu0 %v7915_v33  ;;  %v227_v33 = vld [vmem:[%s9462_s1 + $0x5e0] sm:$0xff] }
 0x129   :  { %10789 = vst [vmem:[#allocation298_spill] sm:$0xff] %v8032_v43  ;;  %10790 = vst [vmem:[#allocation299_spill] sm:$0xff] %v8034_v39  ;;  %v8060_v4 = vpack.c.bf16 %v3291_v46, %v3287_v18  ;;  %v8062_v48 = vsub.f32 %v220_v23, %v3287_v18  ;;  %v8064_v7 = vsub.f32 %v222_v20, %v3291_v46  ;;  %v10799_v53 = vld [vmem:[#allocation92_spill] sm:$0xff]  ;;  %5479 = vmatprep.subr.bf16.mxu0 %v7933_v22  ;;  %v10802_v23 = vld [vmem:[#allocation98_spill] sm:$0xff] }
 0x12a   :  { %10791 = vst [vmem:[#allocation300_spill] sm:$0xff] %v8036_v47  ;;  %10792 = vst [vmem:[#allocation301_spill] sm:$0xff] %v8038_v56  ;;  %v8066_v21 = vpack.c.bf16 %v3293_v12, %v3289_v31  ;;  %4901 = vmatpush1.bf16.msra.mxu1 %v10799_v53  ;;  %v8070_v30 = vsub.f32 %v219_v45, %v3289_v31  ;;  %v8075_v47 = vand.u32 4294901760, %v19_v37  ;;  %v3303_v46 = vand.u32 4294901760, %v228_v60  ;;  %v229_v20 = vld [vmem:[%s9462_s1 + $0x5f0] sm:$0xff]  ;;  %v10808_v22 = vld [vmem:[#allocation104_spill] sm:$0xff] }
 0x12b   :  { %10793 = vst [vmem:[#allocation302_spill] sm:$0xff] %v8049_v8  ;;  %10794 = vst [vmem:[#allocation303_spill] sm:$0xff] %v8051_v0  ;;  %v3297_v0 = vand.u32 4294901760, %v223_v10  ;;  %v3301_v8 = vand.u32 4294901760, %v225_v11  ;;  %4903 = vmatprep.subr.bf16.mxu1 %v10802_v23  ;;  %v3307_v18 = vand.u32 4294901760, %v230_v34  ;;  %v8083_v45 = vsub.f32 %v221_v40, %v3293_v12 }
 0x12c   :  { %10795 = vst [vmem:[#allocation304_spill] sm:$0xff] %v8060_v4  ;;  %10796 = vst [vmem:[#allocation305_spill] sm:$0xff] %v8062_v48  ;;  %v8085_v53 = vpack.c.bf16 %v3299_v15, %v3295_v32  ;;  %5481 = vmatpush1.bf16.msra.mxu0 %v7945_v61  ;;  %v3305_v48 = vand.u32 4294901760, %v227_v33  ;;  %v10815_v42 = vand.u32 4294901760, %v6055_v17  ;;  %v10816_v31 = vand.u32 4294901760, %v7684_v26  ;;  %v10826_v61 = vld [vmem:[#allocation122_spill] sm:$0xff] }
 0x12d   :  { %10797 = vst [vmem:[#allocation306_spill] sm:$0xff] %v8064_v7  ;;  %10798 = vst [vmem:[#allocation307_spill] sm:$0xff] %v8066_v21  ;;  %v8089_v7 = vsub.f32 %v226_v35, %v3299_v15  ;;  %v8092_v23 = vsub.f32 %v223_v10, %v3297_v0  ;;  %5483 = vmatprep.subr.bf16.mxu0 %v7952_v57  ;;  %v8098_v12 = vpack.c.bf16 %v3301_v8, %v3297_v0 }
 0x12e   :  { %10800 = vst [vmem:[#allocation308_spill] sm:$0xff] %v8070_v30  ;;  %10801 = vst [vmem:[#allocation309_spill] sm:$0xff] %v8075_v47  ;;  %v8087_v30 = vsub.f32 %v224_v58, %v3295_v32  ;;  %4905 = vmatpush1.bf16.msra.mxu1 %v10808_v22  ;;  %v8100_v40 = vsub.f32 %v225_v11, %v3301_v8  ;;  %v3309_v58 = vand.u32 4294901760, %v229_v20  ;;  %v10812_v32 = vld [vmem:[#allocation110_spill] sm:$0xff]  ;;  %v10814_v15 = vand.u32 4294901760, %v6053_v16 }
 0x12f   :  { %10803 = vst [vmem:[#allocation310_spill] sm:$0xff] %v8083_v45  ;;  %10804 = vst [vmem:[#allocation311_spill] sm:$0xff] %v8085_v53  ;;  %v8103_v35 = vsub.f32 %v19_v37, %v8075_v47  ;;  %4907 = vmatprep.subr.bf16.mxu1 %v10812_v32  ;;  %v8106_v10 = vpack.c.bf16 %v3307_v18, %v3303_v46  ;;  %v3379_v0 = vsub.f32 %v7684_v26, %v10816_v31  ;;  %v10828_v22 = vld [vmem:[#allocation10_spill] sm:$0xff] }
 0x130   :  { %10805 = vst [vmem:[#allocation312_spill] sm:$0xff] %v8087_v30  ;;  %10806 = vst [vmem:[#allocation313_spill] sm:$0xff] %v8089_v7  ;;  %v8112_v39 = vpack.c.bf16 %v10815_v42, %v10814_v15  ;;  %v10817_v11 = vand.u32 4294901760, %v7686_v49  ;;  %v8120_v37 = vsub.f32 %v228_v60, %v3303_v46  ;;  %v8122_v57 = vsub.f32 %v230_v34, %v3307_v18  ;;  %v26_v34 = vld [vmem:[%s9461_s0 + $0x58] sm:$0xff] }
 0x131   :  { %10807 = vst [vmem:[#allocation314_spill] sm:$0xff] %v8092_v23  ;;  %10809 = vst [vmem:[#allocation315_spill] sm:$0xff] %v8098_v12  ;;  %5485 = vmatpush1.bf16.msra.mxu0 %v7967_v41  ;;  %v10820_v17 = vand.u32 4294901760, %v7705_v6  ;;  %v10821_v31 = vand.u32 4294901760, %v7707_v63  ;;  %v10822_v46 = vld [vmem:[#allocation116_spill] sm:$0xff]  ;;  %v8140_v18 = vpack.c.bf16 %v3309_v58, %v3305_v48  ;;  %v8142_v16 = vsub.f32 %v227_v33, %v3305_v48 }
 0x132   :  { %10810 = vst [vmem:[#allocation316_spill] sm:$0xff] %v8100_v40  ;;  %10811 = vst [vmem:[#allocation317_spill] sm:$0xff] %v8103_v35  ;;  %v3391_v8 = vsub.f32 %v7686_v49, %v10817_v11  ;;  %4909 = vmatpush1.bf16.msra.mxu1 %v10822_v46  ;;  %5487 = vmatprep.subr.bf16.mxu0 %v7983_v36  ;;  %v3380_v11 = vand.u32 4294901760, %v3379_v0  ;;  %v10827_v46 = vand.u32 4294901760, %v6074_v25  ;;  %v10829_v36 = vand.u32 4294901760, %v10828_v22  ;;  %v10835_v41 = vld [vmem:[#allocation128_spill] sm:$0xff] }
 0x133   :  { %10813 = vst [vmem:[#allocation318_spill] sm:$0xff] %v8106_v10  ;;  %10818 = vst [vmem:[#allocation319_spill] sm:$0xff] %v8120_v37  ;;  %v3385_v42 = vsub.f32 %v7705_v6, %v10820_v17  ;;  %v3397_v15 = vsub.f32 %v7707_v63, %v10821_v31  ;;  %v8144_v17 = vsub.f32 %v229_v20, %v3309_v58  ;;  %v10113_v31 = vand.u32 4294901760, %v8103_v35  ;;  %v10861_v6 = vld [vmem:[#allocation34_spill] sm:$0xff] }
 0x134   :  { %10819 = vst [vmem:[#allocation320_spill] sm:$0xff] %v8122_v57  ;;  %10823 = vst [vmem:[#allocation321_spill] sm:$0xff] %v8140_v18  ;;  %4911 = vmatprep.subr.bf16.mxu1 %v10826_v61  ;;  %v3392_v60 = vand.u32 4294901760, %v3391_v8  ;;  %v8154_v47 = vpack.c.bf16 %v10829_v36, %v10827_v46  ;;  %v10830_v33 = vand.u32 4294901760, %v7714_v2  ;;  %v10831_v20 = vand.u32 4294901760, %v7726_v38 }
 0x135   :  { %10824 = vst [vmem:[#allocation322_spill] sm:$0xff] %v8142_v16  ;;  %10825 = vst [vmem:[#allocation323_spill] sm:$0xff] %v8144_v17  ;;  %v8162_v0 = vand.u32 4294901760, %v26_v34  ;;  %5489 = vmatpush1.bf16.msra.mxu0 %v7994_v52  ;;  %v3386_v8 = vand.u32 4294901760, %v3385_v42  ;;  %v3398_v32 = vand.u32 4294901760, %v3397_v15  ;;  %v10833_v25 = vand.u32 4294901760, %v7728_v51 }
 0x136   :  { %v3403_v48 = vsub.f32 %v7714_v2, %v10830_v33  ;;  %v3415_v58 = vsub.f32 %v7726_v38, %v10831_v20  ;;  %v10834_v36 = vand.u32 4294901760, %v7739_v29  ;;  %4913 = vmatpush1.bf16.msra.mxu1 %v10835_v41  ;;  %5491 = vmatprep.subr.bf16.mxu0 %v8010_v59  ;;  %v8176_v33 = vsub.f32 %v8103_v35, %v10113_v31  ;;  %v10836_v20 = vld [vmem:[#allocation14_spill] sm:$0xff]  ;;  %v10838_v15 = vld [vmem:[#allocation16_spill] sm:$0xff]  ;;  %v10859_v2 = vld [vmem:[#allocation33_spill] sm:$0xff] }
 0x137   :  { %10832 = vst [vmem:[#allocation10_spill] sm:$0xff] %v8162_v0  ;;  %v3409_v22 = vsub.f32 %v7728_v51, %v10833_v25  ;;  %v10837_v42 = vand.u32 4294901760, %v10836_v20  ;;  %v10839_v52 = vand.u32 4294901760, %v10838_v15  ;;  %v10840_v59 = vld [vmem:[#allocation134_spill] sm:$0xff]  ;;  %v8190_v41 = vpack.c.bf16 %v3392_v60, %v3380_v11  ;;  %v10841_v31 = vld [vmem:[#allocation20_spill] sm:$0xff] }
 0x138   :  { %v3421_v46 = vsub.f32 %v7739_v29, %v10834_v36  ;;  %v25_v36 = vld [vmem:[%s9461_s0 + $0x50] sm:$0xff]  ;;  %4915 = vmatprep.subr.bf16.mxu1 %v10840_v59  ;;  %v10842_v35 = vand.u32 4294901760, %v10841_v31  ;;  %v10843_v29 = vld [vmem:[#allocation22_spill] sm:$0xff]  ;;  %v10846_v15 = vand.u32 4294901760, %v7746_v28  ;;  %v3404_v11 = vand.u32 4294901760, %v3403_v48 }
 0x139   :  { %v8182_v61 = vpack.c.bf16 %v10839_v52, %v10837_v42  ;;  %v10844_v20 = vand.u32 4294901760, %v10843_v29  ;;  %v10845_v52 = vand.u32 4294901760, %v7743_v1  ;;  %v32_v25 = vld [vmem:[%s9461_s0 + $0x88] sm:$0xff]  ;;  %v3416_v60 = vand.u32 4294901760, %v3415_v58  ;;  %5493 = vmatpush1.bf16.msra.mxu0 %v8025_v27 }
 0x13a   :  { %v3439_v51 = vsub.f32 %v7746_v28, %v10846_v15  ;;  %v8209_v29 = vsub.f32 %v26_v34, %v8162_v0  ;;  %v8214_v59 = vand.u32 4294901760, %v25_v36  ;;  %v10849_v15 = vld [vmem:[#allocation140_spill] sm:$0xff]  ;;  %5495 = vmatprep.subr.bf16.mxu0 %v8032_v43  ;;  %v10850_v58 = vand.u32 4294901760, %v7761_v55 }
 0x13b   :  { %v8196_v38 = vpack.c.bf16 %v10844_v20, %v10842_v35  ;;  %v3427_v42 = vsub.f32 %v7743_v1, %v10845_v52  ;;  %v8212_v35 = vpack.c.bf16 %v3398_v32, %v3386_v8  ;;  %v3410_v20 = vand.u32 4294901760, %v3409_v22  ;;  %4917 = vmatpush1.bf16.msra.mxu1 %v10849_v15  ;;  %v10853_v22 = vld [vmem:[#allocation146_spill] sm:$0xff]  ;;  %v10856_v15 = vld [vmem:[#allocation28_spill] sm:$0xff]  ;;  %v31_v1 = vld [vmem:[%s9461_s0 + $0x80] sm:$0xff] }
 0x13c   :  { %10847 = vst [vmem:[#allocation14_spill] sm:$0xff] %v8209_v29  ;;  %v3422_v52 = vand.u32 4294901760, %v3421_v46  ;;  %10848 = vst [vmem:[#allocation16_spill] sm:$0xff] %v8214_v59  ;;  %v8222_v31 = vsub.f32 %v7761_v55, %v10850_v58  ;;  %v10851_v34 = vand.u32 4294901760, %v7771_v50  ;;  %v8229_v8 = vand.u32 4294901760, %v32_v25  ;;  %4919 = vmatprep.subr.bf16.mxu1 %v10853_v22  ;;  %v10854_v46 = vld [vmem:[#allocation27_spill] sm:$0xff] }
 0x13d   :  { %v10855_v27 = vand.u32 4294901760, %v10854_v46  ;;  %v10857_v43 = vand.u32 4294901760, %v10856_v15  ;;  %v3428_v48 = vand.u32 4294901760, %v3427_v42  ;;  %v3440_v28 = vand.u32 4294901760, %v3439_v51  ;;  %5497 = vmatpush1.bf16.msra.mxu0 %v8038_v56 }
 0x13e   :  { %v8227_v32 = vsub.f32 %v7771_v50, %v10851_v34  ;;  %10852 = vst [vmem:[#allocation20_spill] sm:$0xff] %v8229_v8  ;;  %v8242_v34 = vpack.c.bf16 %v3416_v60, %v3404_v11  ;;  %v10860_v63 = vand.u32 4294901760, %v10859_v2  ;;  %v10862_v22 = vand.u32 4294901760, %v10861_v6  ;;  %v10865_v2 = vld [vmem:[#allocation39_spill] sm:$0xff]  ;;  %v10867_v6 = vld [vmem:[#allocation40_spill] sm:$0xff]  ;;  %5499 = vmatprep.subr.bf16.mxu0 %v8060_v4  ;;  %v10917_v50 = vld [vmem:[#allocation293_spill] sm:$0xff] }
 0x13f   :  { %v8236_v0 = vpack.c.bf16 %v10857_v43, %v10855_v27  ;;  %v10864_v15 = vand.u32 4294901760, %v7775_v54  ;;  %v38_v27 = vld [vmem:[%s9461_s0 + $0xb8] sm:$0xff]  ;;  %v8260_v42 = vpack.c.bf16 %v3422_v52, %v3410_v20  ;;  %v10866_v11 = vand.u32 4294901760, %v10865_v2 }
 0x140   :  { %v8248_v49 = vpack.c.bf16 %v10862_v22, %v10860_v63  ;;  %v10868_v63 = vand.u32 4294901760, %v10867_v6  ;;  %v10870_v22 = vld [vmem:[#allocation44_spill] sm:$0xff]  ;;  %v8275_v51 = vsub.f32 %v25_v36, %v8214_v59  ;;  %v3434_v20 = vand.u32 4294901760, %v8222_v31  ;;  %v10879_v6 = vld [vmem:[#allocation158_spill] sm:$0xff]  ;;  %v10892_v31 = vld [vmem:[#allocation255_spill] sm:$0xff] }
 0x141   :  { %10858 = vst [vmem:[#allocation22_spill] sm:$0xff] %v8236_v0  ;;  %v8253_v43 = vsub.f32 %v7775_v54, %v10864_v15  ;;  %v10871_v46 = vand.u32 4294901760, %v10870_v22  ;;  %v10872_v15 = vld [vmem:[#allocation46_spill] sm:$0xff]  ;;  %v3446_v52 = vand.u32 4294901760, %v8227_v32  ;;  %v8282_v2 = vsub.f32 %v32_v25, %v8229_v8  ;;  %v10882_v32 = vld [vmem:[#allocation51_spill] sm:$0xff]  ;;  %v10884_v4 = vld [vmem:[#allocation52_spill] sm:$0xff]  ;;  %5501 = vmatpush1.bf16.msra.mxu0 %v8066_v21 }
 0x142   :  { %10863 = vst [vmem:[#allocation27_spill] sm:$0xff] %v8248_v49  ;;  %v8266_v60 = vpack.c.bf16 %v10868_v63, %v10866_v11  ;;  %v10873_v58 = vand.u32 4294901760, %v10872_v15  ;;  %10875 = vst [vmem:[#allocation34_spill] sm:$0xff] %v8275_v51  ;;  %v10876_v49 = vld [vmem:[#allocation152_spill] sm:$0xff]  ;;  %v8284_v11 = vand.u32 4294901760, %v31_v1  ;;  %v10880_v36 = vand.u32 4294901760, %v7778_v13  ;;  %5503 = vmatprep.subr.bf16.mxu0 %v8085_v53 }
 0x143   :  { %4921 = vmatpush1.bf16.msra.mxu1 %v10876_v49  ;;  %10877 = vst [vmem:[#allocation39_spill] sm:$0xff] %v8282_v2  ;;  %v10883_v15 = vand.u32 4294901760, %v10882_v32  ;;  %v10885_v56 = vand.u32 4294901760, %v10884_v4  ;;  %v10891_v22 = vld [vmem:[#allocation253_spill] sm:$0xff]  ;;  %v37_v4 = vld [vmem:[%s9461_s0 + $0xb0] sm:$0xff]  ;;  %v10913_v54 = vld [vmem:[#allocation176_spill] sm:$0xff]  ;;  %v8386_v21 = vpack.c.bf16 %v3446_v52, %v3434_v20 }
 0x144   :  { %10869 = vst [vmem:[#allocation28_spill] sm:$0xff] %v8266_v60  ;;  %v8272_v26 = vpack.c.bf16 %v10873_v58, %v10871_v46  ;;  %10878 = vst [vmem:[#allocation40_spill] sm:$0xff] %v8284_v11  ;;  %4923 = vmatprep.subr.bf16.mxu1 %v10879_v6  ;;  %v8287_v58 = vpack.c.bf16 %v3440_v28, %v3428_v48  ;;  %v8292_v63 = vsub.f32 %v7778_v13, %v10880_v36  ;;  %v10895_v53 = vld [vmem:[#allocation263_spill] sm:$0xff]  ;;  %v10915_v59 = vld [vmem:[#allocation290_spill] sm:$0xff] }
 0x145   :  { %v8295_v46 = vand.u32 4294901760, %v38_v27  ;;  %v8303_v6 = vpack.c.bf16 %v10885_v56, %v10883_v15  ;;  %v10887_v28 = vand.u32 4294901760, %v8209_v29  ;;  %v10888_v56 = vld [vmem:[#allocation164_spill] sm:$0xff]  ;;  %v8322_v15 = vsub.f32 %v31_v1, %v8284_v11  ;;  %5505 = vmatpush1.bf16.msra.mxu0 %v8098_v12  ;;  %v10916_v12 = vld [vmem:[#allocation291_spill] sm:$0xff]  ;;  %v10918_v1 = vld [vmem:[#allocation294_spill] sm:$0xff] }
 0x146   :  { %10874 = vst [vmem:[#allocation33_spill] sm:$0xff] %v8272_v26  ;;  %5507 = vmatprep.subr.bf16.mxu0 %v8106_v10  ;;  %v8360_v55 = vand.u32 4294901760, %v37_v4  ;;  %v10920_v26 = vld [vmem:[#allocation182_spill] sm:$0xff]  ;;  %v10921_v11 = vld [vmem:[#allocation299_spill] sm:$0xff]  ;;  %v10922_v36 = vld [vmem:[#allocation300_spill] sm:$0xff]  ;;  %v3464_v60 = vand.u32 4294901760, %v8292_v63 }
 0x147   :  { %10881 = vst [vmem:[#allocation44_spill] sm:$0xff] %v8295_v46  ;;  %10886 = vst [vmem:[#allocation46_spill] sm:$0xff] %v8303_v6  ;;  %v8308_v48 = vsub.f32 %v8209_v29, %v10887_v28  ;;  %4925 = vmatpush1.bf16.msra.mxu1 %v10888_v56  ;;  %v10890_v28 = vld [vmem:[#allocation252_spill] sm:$0xff]  ;;  %v10893_v29 = vld [vmem:[#allocation170_spill] sm:$0xff]  ;;  %v8330_v25 = vsub.f32 %v38_v27, %v8295_v46  ;;  %v10930_v45 = vand.u32 4294901760, %v8275_v51  ;;  %v10932_v32 = vand.u32 4294901760, %v8176_v33 }
 0x148   :  { %10889 = vst [vmem:[#allocation51_spill] sm:$0xff] %v8322_v15  ;;  %4927 = vmatprep.subr.bf16.mxu1 %v10893_v29  ;;  %v10899_v29 = vld [vmem:[#allocation269_spill] sm:$0xff]  ;;  %v10901_v46 = vld [vmem:[#allocation272_spill] sm:$0xff]  ;;  %10914 = vst [vmem:[#allocation324_spill] sm:$0xff] %v8360_v55  ;;  %v8406_v63 = vsub.f32 %v37_v4, %v8360_v55  ;;  %v10934_v52 = vand.u32 4294901760, %v8282_v2  ;;  %v10937_v33 = vand.u32 4294901760, %v7804_v9 }
 0x149   :  { %10894 = vst [vmem:[#allocation52_spill] sm:$0xff] %v8330_v25  ;;  %v10919_v56 = vld [vmem:[#allocation297_spill] sm:$0xff]  ;;  %v10923_v49 = vld [vmem:[#allocation302_spill] sm:$0xff]  ;;  %v10927_v13 = vld [vmem:[#allocation308_spill] sm:$0xff]  ;;  %5509 = vmatpush1.bf16.msra.mxu0 %v8140_v18  ;;  %v3336_v8 = vsub.f32 %v8275_v51, %v10930_v45  ;;  %v10942_v45 = vand.u32 4294901760, %v7845_v3 }
 0x14a   :  { %v10925_v10 = vld [vmem:[#allocation305_spill] sm:$0xff]  ;;  %v10926_v0 = vld [vmem:[#allocation306_spill] sm:$0xff]  ;;  %5511 = vmatprep.subr.bf16.mxu0 %v8190_v41  ;;  %10931 = vst [vmem:[#allocation290_spill] sm:$0xff] %v8406_v63  ;;  %v3346_v18 = vsub.f32 %v8282_v2, %v10934_v52  ;;  %v10935_v51 = vld [vmem:[#allocation199_spill] sm:$0xff]  ;;  %v3475_v4 = vsub.f32 %v7804_v9, %v10937_v33 }
 0x14b   :  { %4929 = vmatpush1.bf16.msra.mxu1 %v10913_v54  ;;  %v10924_v54 = vld [vmem:[#allocation303_spill] sm:$0xff]  ;;  %v10928_v6 = vld [vmem:[#allocation189_spill] sm:$0xff]  ;;  %v10936_v41 = vand.u32 4294901760, %v10935_v51  ;;  %v10940_v51 = vand.u32 4294901760, %v8253_v43  ;;  %v10944_v2 = vld [vmem:[#allocation204_spill] sm:$0xff]  ;;  %v3337_v43 = vand.u32 4294901760, %v3336_v8 }
 0x14c   :  { %4931 = vmatprep.subr.bf16.mxu1 %v10920_v26  ;;  %v10929_v26 = vand.u32 4294901760, %v7780_v19  ;;  %3322 = vmatmul.mubr.f32.vlgmr.msra.gmra.mrb[0].mxu0 %v10932_v32  ;;  %v10938_v32 = vand.u32 4294901760, %v10890_v28  ;;  %v3476_v8 = vand.u32 4294901760, %v3475_v4  ;;  %v10953_v4 = vld [vmem:[#allocation267_spill] sm:$0xff] }
 0x14d   :  { %5513 = vmatpush1.bf16.msra.mxu0 %v8212_v35  ;;  %v5522_v52 = vpack.c.bf16 %v3464_v60, %v10940_v51  ;;  %v10946_v60 = vand.u32 4294901760, %v8322_v15 }
 0x14e   :  { %v3457_v27 = vsub.f32 %v7780_v19, %v10929_v26  ;;  %v10933_v26 = vand.u32 4294901760, %v7800_v44  ;;  %5515 = vmatprep.subr.bf16.mxu0 %v8242_v34  ;;  %v10945_v34 = vand.u32 4294901760, %v10944_v2 }
 0x14f   :  { %4933 = vmatpush1.bf16.msra.mxu1 %v10928_v6 }
 0x150   :  { %4935 = vmatprep.subr.bf16.mxu1 %v8112_v39  ;;  %v3469_v20 = vsub.f32 %v7800_v44, %v10933_v26  ;;  %v3331_v39 = vand.u32 4294901760, %v8308_v48  ;;  %v3487_v26 = vsub.f32 %v10890_v28, %v10938_v32  ;;  %v10939_v48 = vand.u32 4294901760, %v10891_v22 }
 0x151   :  { %v3458_v35 = vand.u32 4294901760, %v3457_v27  ;;  %v3499_v32 = vsub.f32 %v7845_v3, %v10942_v45  ;;  %v3352_v27 = vsub.f32 %v8322_v15, %v10946_v60  ;;  %v10947_v3 = vand.u32 4294901760, %v8330_v25  ;;  %5517 = vmatpush1.bf16.msra.mxu0 %v8260_v42  ;;  %v10952_v42 = vld [vmem:[#allocation266_spill] sm:$0xff]  ;;  %v10963_v15 = vld [vmem:[#allocation215_spill] sm:$0xff] }
 0x152   :  { %1221 = vmatmul.mubr.f32.vlgmr.msra.gmra.mrb[0].mxu1 %v10936_v41  ;;  %v3481_v6 = vsub.f32 %v10891_v22, %v10939_v48  ;;  %v10941_v41 = vand.u32 4294901760, %v10892_v31  ;;  %v10943_v48 = vand.u32 4294901760, %v7847_v62  ;;  %3332 = vmatprep.mubr.f32.mxu0 %v3331_v39  ;;  %v3470_v2 = vand.u32 4294901760, %v3469_v20  ;;  %v10948_v22 = vld [vmem:[#allocation207_spill] sm:$0xff]  ;;  %v10959_v20 = vld [vmem:[#allocation57_spill] sm:$0xff] }
 0x153   :  { %4937 = vmatpush1.bf16.msra.mxu1 %v8154_v47  ;;  %1229 = vmatprep.mubr.f32.mxu1 %v10945_v34  ;;  %v3488_v34 = vand.u32 4294901760, %v3487_v26  ;;  %v10949_v60 = vand.u32 4294901760, %v10948_v22  ;;  %v3500_v39 = vand.u32 4294901760, %v3499_v32  ;;  %v10954_v22 = vand.u32 4294901760, %v8406_v63 }
 0x154   :  { %v3493_v33 = vsub.f32 %v10892_v31, %v10941_v41  ;;  %4939 = vmatprep.subr.bf16.mxu1 %v8182_v61  ;;  %v3511_v47 = vsub.f32 %v7847_v62, %v10943_v48  ;;  %v3347_v61 = vand.u32 4294901760, %v3346_v18  ;;  %v3362_v48 = vsub.f32 %v8330_v25, %v10947_v3  ;;  %5519 = vmatprep.subr.bf16.mxu0 %v8287_v58  ;;  %v10950_v41 = vld [vmem:[#allocation264_spill] sm:$0xff]  ;;  %v10951_v3 = vld [vmem:[#allocation22_spill] sm:$0xff] }
 0x155   :  { %v3482_v62 = vand.u32 4294901760, %v3481_v6  ;;  %3338 = vmatmul.mubr.f32.gmra.mrb[2].mxu0 %v3337_v43  ;;  %v3353_v6 = vand.u32 4294901760, %v3352_v27  ;;  %v10955_v58 = vand.u32 4294901760, %v7854_v24  ;;  %v10956_v32 = vand.u32 4294901760, %v7856_v5 }
 0x156   :  { %1233 = vmatmul.mubr.f32.gmra.mrb[2].mxu1 %v10949_v60  ;;  %v3494_v45 = vand.u32 4294901760, %v3493_v33  ;;  %v3512_v60 = vand.u32 4294901760, %v3511_v47  ;;  %3348 = vmatprep.mubr.f32.mxu0 %v3347_v61  ;;  %v3363_v26 = vand.u32 4294901760, %v3362_v48  ;;  %v5524_v43 = vpack.c.bf16 %v3470_v2, %v3458_v35  ;;  %v10961_v47 = vld [vmem:[#allocation58_spill] sm:$0xff] }
 0x157   :  { %4941 = vmatpush1.bf16.msra.mxu1 %v8196_v38  ;;  %v3368_v38 = vsub.f32 %v8406_v63, %v10954_v22  ;;  %v3505_v33 = vsub.f32 %v7854_v24, %v10955_v58  ;;  %v3517_v51 = vsub.f32 %v7856_v5, %v10956_v32  ;;  %5521 = vmatpush1.bf16.msra.mxu0 %v8386_v21  ;;  %v10960_v22 = vand.u32 4294901760, %v10959_v20  ;;  %v10965_v24 = vld [vmem:[#allocation27_spill] sm:$0xff]  ;;  %v10968_v2 = vld [vmem:[#allocation270_spill] sm:$0xff] }
 0x158   :  { %4943 = vmatprep.subr.bf16.mxu1 %v10951_v3  ;;  %v10957_v3 = vld [vmem:[#allocation211_spill] sm:$0xff]  ;;  %v5526_v27 = vpack.c.bf16 %v3488_v34, %v3476_v8  ;;  %v10962_v63 = vand.u32 4294901760, %v10961_v47  ;;  %v10964_v58 = vand.u32 4294901760, %v10963_v15  ;;  %5523 = vmatprep.subr.bf16.mxu0 %v5522_v52  ;;  %v10966_v32 = vand.u32 4294901760, %v10895_v53  ;;  %v10969_v34 = vld [vmem:[#allocation28_spill] sm:$0xff] }
 0x159   :  { %v10958_v18 = vand.u32 4294901760, %v10957_v3  ;;  %v10967_v48 = vand.u32 4294901760, %v10950_v41  ;;  %v10974_v52 = vand.u32 4294901760, %v10952_v42  ;;  %3354 = vmatmul.mubr.f32.gmra.mrb[4].mxu0 %v3353_v6  ;;  %v3506_v8 = vand.u32 4294901760, %v3505_v33 }
 0x15a   :  { %v4952_v25 = vpack.c.bf16 %v10962_v63, %v10960_v22  ;;  %v3523_v61 = vsub.f32 %v10895_v53, %v10966_v32  ;;  %v10970_v63 = vld [vmem:[#allocation63_spill] sm:$0xff]  ;;  %v10975_v22 = vand.u32 4294901760, %v10953_v4  ;;  %v5528_v32 = vpack.c.bf16 %v3494_v45, %v3482_v62  ;;  %3364 = vmatprep.mubr.f32.mxu0 %v3363_v26  ;;  %v10983_v62 = vld [vmem:[#allocation33_spill] sm:$0xff] }
 0x15b   :  { %1241 = vmatprep.mubr.f32.mxu1 %v10958_v18  ;;  %4945 = vmatpush1.bf16.msra.mxu1 %v10965_v24  ;;  %v3535_v21 = vsub.f32 %v10950_v41, %v10967_v48  ;;  %v10971_v15 = vand.u32 4294901760, %v10970_v63  ;;  %v10972_v18 = vld [vmem:[#allocation64_spill] sm:$0xff]  ;;  %v3529_v3 = vsub.f32 %v10952_v42, %v10974_v52  ;;  %v5530_v48 = vpack.c.bf16 %v3512_v60, %v3500_v39  ;;  %v10986_v60 = vld [vmem:[#allocation46_spill] sm:$0xff] }
 0x15c   :  { %1245 = vmatmul.mubr.f32.gmra.mrb[4].mxu1 %v10964_v58  ;;  %4947 = vmatprep.subr.bf16.mxu1 %v10969_v34  ;;  %v10973_v20 = vand.u32 4294901760, %v10972_v18  ;;  %v3541_v47 = vsub.f32 %v10953_v4, %v10975_v22  ;;  %v3369_v58 = vand.u32 4294901760, %v3368_v38  ;;  %v3518_v35 = vand.u32 4294901760, %v3517_v51  ;;  %v10976_v34 = vld [vmem:[#allocation220_spill] sm:$0xff]  ;;  %v10981_v22 = vld [vmem:[#allocation223_spill] sm:$0xff] }
 0x15d   :  { %v10977_v53 = vand.u32 4294901760, %v10976_v34  ;;  %5525 = vmatpush1.bf16.msra.mxu0 %v5524_v43  ;;  %v10980_v42 = vld [vmem:[#allocation276_spill] sm:$0xff]  ;;  %v10982_v6 = vand.u32 4294901760, %v10981_v22  ;;  %v3524_v51 = vand.u32 4294901760, %v3523_v61  ;;  %v3536_v45 = vand.u32 4294901760, %v3535_v21  ;;  %v10987_v34 = vld [vmem:[#allocation278_spill] sm:$0xff] }
 0x15e   :  { %v4954_v24 = vpack.c.bf16 %v10973_v20, %v10971_v15  ;;  %v10978_v15 = vld [vmem:[#allocation273_spill] sm:$0xff]  ;;  %v10979_v20 = vld [vmem:[#allocation274_spill] sm:$0xff]  ;;  %5527 = vmatprep.subr.bf16.mxu0 %v5526_v27  ;;  %v10985_v26 = vand.u32 4294901760, %v10968_v2  ;;  %v3530_v33 = vand.u32 4294901760, %v3529_v3  ;;  %v3542_v43 = vand.u32 4294901760, %v3541_v47  ;;  %3370 = vmatmul.mubr.f32.gmra.mrb[6].mxu0 %v3369_v58  ;;  %v11003_v4 = vld [vmem:[#allocation76_spill] sm:$0xff] }
 0x15f   :  { %1253 = vmatprep.mubr.f32.mxu1 %v10977_v53  ;;  %4949 = vmatpush1.bf16.msra.mxu1 %v10983_v62  ;;  %v10984_v53 = vand.u32 4294901760, %v10899_v29  ;;  %v10989_v27 = vld [vmem:[#allocation69_spill] sm:$0xff]  ;;  %v10991_v21 = vld [vmem:[#allocation70_spill] sm:$0xff]  ;;  %v5532_v18 = vpack.c.bf16 %v3518_v35, %v3506_v8  ;;  %v10997_v3 = vand.u32 4294901760, %v10901_v46  ;;  %v10998_v58 = vand.u32 4294901760, %v10978_v15 }
 0x160   :  { %1257 = vmatmul.mubr.f32.gmra.mrb[6].mxu1 %v10982_v6  ;;  %v3559_v38 = vsub.f32 %v10968_v2, %v10985_v26  ;;  %4951 = vmatprep.subr.bf16.mxu1 %v10986_v60  ;;  %v10988_v6 = vld [vmem:[#allocation279_spill] sm:$0xff]  ;;  %v10990_v61 = vand.u32 4294901760, %v10989_v27  ;;  %v10992_v62 = vand.u32 4294901760, %v10991_v21  ;;  %v10995_v26 = vld [vmem:[#allocation186_spill] sm:$0xff]  ;;  %v11000_v8 = vand.u32 4294901760, %v10980_v42 }
 0x161   :  { %v3547_v39 = vsub.f32 %v10899_v29, %v10984_v53  ;;  %v10993_v53 = vld [vmem:[#allocation281_spill] sm:$0xff]  ;;  %v10994_v29 = vld [vmem:[#allocation282_spill] sm:$0xff]  ;;  %1520 = vmatprep.mubr.f32.mxu1 %v10995_v26  ;;  %v10996_v60 = vld [vmem:[#allocation231_spill] sm:$0xff]  ;;  %5529 = vmatpush1.bf16.msra.mxu0 %v5528_v32  ;;  %v3553_v47 = vsub.f32 %v10901_v46, %v10997_v3  ;;  %v3565_v27 = vsub.f32 %v10978_v15, %v10998_v58  ;;  %v11004_v63 = vand.u32 4294901760, %v11003_v4 }
 0x162   :  { %v4956_v52 = vpack.c.bf16 %v10992_v62, %v10990_v61  ;;  %3761 = vmatprep.mubr.f32.mxu0 %v10996_v60  ;;  %v10999_v61 = vand.u32 4294901760, %v10979_v20  ;;  %v3583_v21 = vsub.f32 %v10980_v42, %v11000_v8  ;;  %5531 = vmatprep.subr.bf16.mxu0 %v5530_v48  ;;  %v11001_v62 = vld [vmem:[#allocation75_spill] sm:$0xff]  ;;  %v5534_v3 = vpack.c.bf16 %v3536_v45, %v3524_v51  ;;  %v11005_v58 = vld [vmem:[#allocation81_spill] sm:$0xff]  ;;  %v11007_v15 = vld [vmem:[#allocation82_spill] sm:$0xff] }
 0x163   :  { %4953 = vmatpush1.bf16.msra.mxu1 %v4952_v25  ;;  %v11002_v32 = vand.u32 4294901760, %v11001_v62  ;;  %v3548_v22 = vand.u32 4294901760, %v3547_v39  ;;  %v3560_v60 = vand.u32 4294901760, %v3559_v38  ;;  %v11006_v46 = vand.u32 4294901760, %v11005_v58  ;;  %v11013_v45 = vld [vmem:[#allocation284_spill] sm:$0xff] }
 0x164   :  { %v3571_v35 = vsub.f32 %v10979_v20, %v10999_v61  ;;  %4955 = vmatprep.subr.bf16.mxu1 %v4954_v24  ;;  %v11008_v2 = vand.u32 4294901760, %v11007_v15  ;;  %v5536_v20 = vpack.c.bf16 %v3542_v43, %v3530_v33  ;;  %v11009_v5 = vand.u32 4294901760, %v10987_v34  ;;  %v11015_v43 = vld [vmem:[#allocation87_spill] sm:$0xff] }
 0x165   :  { %v4958_v41 = vpack.c.bf16 %v11004_v63, %v11002_v32  ;;  %v11010_v48 = vand.u32 4294901760, %v10988_v6  ;;  %v11011_v4 = vand.u32 4294901760, %v10993_v53  ;;  %v11012_v24 = vand.u32 4294901760, %v10994_v29  ;;  %5533 = vmatpush1.bf16.msra.mxu0 %v5532_v18  ;;  %v11017_v32 = vld [vmem:[#allocation88_spill] sm:$0xff] }
 0x166   :  { %v4960_v61 = vpack.c.bf16 %v11008_v2, %v11006_v46  ;;  %v3577_v25 = vsub.f32 %v10987_v34, %v11009_v5  ;;  %v11014_v46 = vld [vmem:[#allocation285_spill] sm:$0xff]  ;;  %v3554_v39 = vand.u32 4294901760, %v3553_v47  ;;  %v3566_v38 = vand.u32 4294901760, %v3565_v27  ;;  %5535 = vmatprep.subr.bf16.mxu0 %v5534_v3  ;;  %v11029_v47 = vld [vmem:[#allocation100_spill] sm:$0xff] }
 0x167   :  { %v3589_v8 = vsub.f32 %v10988_v6, %v11010_v48  ;;  %v3595_v63 = vsub.f32 %v10993_v53, %v11011_v4  ;;  %v3607_v51 = vsub.f32 %v10994_v29, %v11012_v24  ;;  %v3572_v5 = vand.u32 4294901760, %v3571_v35  ;;  %4957 = vmatpush1.bf16.msra.mxu1 %v4956_v52  ;;  %v11019_v53 = vld [vmem:[#allocation287_spill] sm:$0xff]  ;;  %v11020_v24 = vld [vmem:[#allocation288_spill] sm:$0xff] }
 0x168   :  { %v3584_v33 = vand.u32 4294901760, %v3583_v21  ;;  %v11016_v62 = vand.u32 4294901760, %v11015_v43  ;;  %v11018_v58 = vand.u32 4294901760, %v11017_v32  ;;  %v5538_v4 = vpack.c.bf16 %v3560_v60, %v3548_v22  ;;  %4959 = vmatprep.subr.bf16.mxu1 %v4958_v41  ;;  %v11023_v60 = vld [vmem:[#allocation93_spill] sm:$0xff]  ;;  %v11025_v41 = vld [vmem:[#allocation94_spill] sm:$0xff]  ;;  %v11027_v32 = vld [vmem:[#allocation99_spill] sm:$0xff] }
 0x169   :  { %v10206_v34 = vand.u32 4294901760, %v11019_v53  ;;  %v10205_v29 = vand.u32 4294901760, %v11020_v24  ;;  %v3578_v15 = vand.u32 4294901760, %v3577_v25  ;;  %v3590_v2 = vand.u32 4294901760, %v3589_v8  ;;  %5537 = vmatpush1.bf16.msra.mxu0 %v5536_v20 }
 0x16a   :  { %v4962_v48 = vpack.c.bf16 %v11018_v58, %v11016_v62  ;;  %v3596_v27 = vand.u32 4294901760, %v3595_v63  ;;  %v3608_v52 = vand.u32 4294901760, %v3607_v51  ;;  %v11021_v35 = vand.u32 4294901760, %v11013_v45  ;;  %5539 = vmatprep.subr.bf16.mxu0 %v5538_v4  ;;  %v11037_v4 = vld [vmem:[#allocation112_spill] sm:$0xff] }
 0x16b   :  { %v11022_v3 = vand.u32 4294901760, %v11014_v46  ;;  %v11024_v43 = vand.u32 4294901760, %v11023_v60  ;;  %v11026_v25 = vand.u32 4294901760, %v11025_v41  ;;  %v5540_v62 = vpack.c.bf16 %v3566_v38, %v3554_v39  ;;  %4961 = vmatpush1.bf16.msra.mxu1 %v4960_v61  ;;  %v11031_v38 = vld [vmem:[#allocation105_spill] sm:$0xff]  ;;  %v11035_v61 = vld [vmem:[#allocation111_spill] sm:$0xff] }
 0x16c   :  { %v3601_v21 = vsub.f32 %v11013_v45, %v11021_v35  ;;  %v11028_v58 = vand.u32 4294901760, %v11027_v32  ;;  %v11030_v63 = vand.u32 4294901760, %v11029_v47  ;;  %v5542_v18 = vpack.c.bf16 %v3584_v33, %v3572_v5  ;;  %4963 = vmatprep.subr.bf16.mxu1 %v4962_v48  ;;  %v11033_v47 = vld [vmem:[#allocation106_spill] sm:$0xff] }
 0x16d   :  { %v3613_v22 = vsub.f32 %v11014_v46, %v11022_v3  ;;  %v4964_v8 = vpack.c.bf16 %v11026_v25, %v11024_v43  ;;  %v3619_v35 = vsub.f32 %v11019_v53, %v10206_v34  ;;  %v3631_v20 = vsub.f32 %v11020_v24, %v10205_v29  ;;  %5541 = vmatpush1.bf16.msra.mxu0 %v5540_v62 }
 0x16e   :  { %v4966_v51 = vpack.c.bf16 %v11030_v63, %v11028_v58  ;;  %v10209_v3 = vand.u32 4294901760, %v10917_v50  ;;  %v11032_v60 = vand.u32 4294901760, %v11031_v38  ;;  %v11034_v43 = vand.u32 4294901760, %v11033_v47  ;;  %5543 = vmatprep.subr.bf16.mxu0 %v5542_v18 }
 0x16f   :  { %v11036_v33 = vand.u32 4294901760, %v11035_v61  ;;  %v11038_v41 = vand.u32 4294901760, %v11037_v4  ;;  %v11039_v32 = vand.u32 4294901760, %v10915_v59  ;;  %v11040_v63 = vand.u32 4294901760, %v10916_v12  ;;  %4965 = vmatpush1.bf16.msra.mxu1 %v4964_v8  ;;  %v11048_v8 = vld [vmem:[#allocation124_spill] sm:$0xff] }
 0x170   :  { %v4968_v5 = vpack.c.bf16 %v11034_v43, %v11032_v60  ;;  %v5544_v34 = vpack.c.bf16 %v3590_v2, %v3578_v15  ;;  %v5546_v48 = vpack.c.bf16 %v3608_v52, %v3596_v27  ;;  %v3602_v39 = vand.u32 4294901760, %v3601_v21  ;;  %4967 = vmatprep.subr.bf16.mxu1 %v4966_v51 }
 0x171   :  { %v4970_v25 = vpack.c.bf16 %v11038_v41, %v11036_v33  ;;  %v3625_v58 = vsub.f32 %v10915_v59, %v11039_v32  ;;  %v3637_v29 = vsub.f32 %v10916_v12, %v11040_v63  ;;  %v3614_v38 = vand.u32 4294901760, %v3613_v22  ;;  %v11044_v32 = vld [vmem:[#allocation118_spill] sm:$0xff] }
 0x172   :  { %v10207_v60 = vand.u32 4294901760, %v8027_v14  ;;  %v10208_v47 = vand.u32 4294901760, %v10919_v56  ;;  %v10210_v43 = vand.u32 4294901760, %v10921_v11  ;;  %v10212_v61 = vand.u32 4294901760, %v10922_v36  ;;  %5545 = vmatpush1.bf16.msra.mxu0 %v5544_v34 }
 0x173   :  { %v3620_v33 = vand.u32 4294901760, %v3619_v35  ;;  %v3632_v4 = vand.u32 4294901760, %v3631_v20  ;;  %v3643_v15 = vsub.f32 %v10917_v50, %v10209_v3  ;;  %v11041_v2 = vand.u32 4294901760, %v10918_v1  ;;  %4969 = vmatpush1.bf16.msra.mxu1 %v4968_v5  ;;  %5547 = vmatprep.subr.bf16.mxu0 %v5546_v48 }
 0x174   :  { %v3626_v52 = vand.u32 4294901760, %v3625_v58  ;;  %v3638_v21 = vand.u32 4294901760, %v3637_v29  ;;  %v10211_v22 = vand.u32 4294901760, %v10923_v49  ;;  %v5548_v41 = vpack.c.bf16 %v3614_v38, %v3602_v39  ;;  %v11042_v39 = vld [vmem:[#allocation117_spill] sm:$0xff]  ;;  %4971 = vmatprep.subr.bf16.mxu1 %v4970_v25 }
 0x175   :  { %v3655_v27 = vsub.f32 %v10918_v1, %v11041_v2  ;;  %v3649_v35 = vsub.f32 %v8027_v14, %v10207_v60  ;;  %v3661_v51 = vsub.f32 %v10919_v56, %v10208_v47  ;;  %v3667_v29 = vsub.f32 %v10921_v11, %v10210_v43  ;;  %v11046_v47 = vld [vmem:[#allocation123_spill] sm:$0xff] }
 0x176   :  { %v3679_v20 = vsub.f32 %v10922_v36, %v10212_v61  ;;  %v11043_v34 = vand.u32 4294901760, %v11042_v39  ;;  %v11045_v58 = vand.u32 4294901760, %v11044_v32  ;;  %v5550_v38 = vpack.c.bf16 %v3632_v4, %v3620_v33  ;;  %5549 = vmatpush1.bf16.msra.mxu0 %v5548_v41  ;;  %v11058_v4 = vld [vmem:[#allocation135_spill] sm:$0xff]  ;;  %v11060_v41 = vld [vmem:[#allocation136_spill] sm:$0xff] }
 0x177   :  { %v3644_v2 = vand.u32 4294901760, %v3643_v15  ;;  %v3656_v60 = vand.u32 4294901760, %v3655_v27  ;;  %v11047_v3 = vand.u32 4294901760, %v11046_v47  ;;  %v11049_v18 = vand.u32 4294901760, %v11048_v8  ;;  %v11054_v8 = vld [vmem:[#allocation129_spill] sm:$0xff] }
 0x178   :  { %v4972_v63 = vpack.c.bf16 %v11045_v58, %v11043_v34  ;;  %v5552_v62 = vpack.c.bf16 %v3638_v21, %v3626_v52  ;;  %v3673_v5 = vsub.f32 %v10923_v49, %v10211_v22  ;;  %v11050_v48 = vand.u32 4294901760, %v10924_v54  ;;  %5551 = vmatprep.subr.bf16.mxu0 %v5550_v38  ;;  %v11056_v58 = vld [vmem:[#allocation130_spill] sm:$0xff] }
 0x179   :  { %v4974_v43 = vpack.c.bf16 %v11049_v18, %v11047_v3  ;;  %v11051_v34 = vand.u32 4294901760, %v10925_v10  ;;  %v11052_v25 = vand.u32 4294901760, %v10926_v0  ;;  %v11053_v3 = vld [vmem:[#allocation310_spill] sm:$0xff]  ;;  %v3650_v27 = vand.u32 4294901760, %v3649_v35 }
 0x17a   :  { %v3685_v39 = vsub.f32 %v10924_v54, %v11050_v48  ;;  %v3662_v52 = vand.u32 4294901760, %v3661_v51  ;;  %v3668_v21 = vand.u32 4294901760, %v3667_v29  ;;  %v3680_v18 = vand.u32 4294901760, %v3679_v20  ;;  %4973 = vmatpush1.bf16.msra.mxu1 %v4972_v63  ;;  %v11062_v29 = vld [vmem:[#allocation141_spill] sm:$0xff]  ;;  %v11064_v63 = vld [vmem:[#allocation142_spill] sm:$0xff]  ;;  %5553 = vmatpush1.bf16.msra.mxu0 %v5552_v62 }
 0x17b   :  { %v3691_v33 = vsub.f32 %v10925_v10, %v11051_v34  ;;  %v3703_v47 = vsub.f32 %v10926_v0, %v11052_v25  ;;  %v11055_v32 = vand.u32 4294901760, %v11054_v8  ;;  %v11057_v48 = vand.u32 4294901760, %v11056_v58  ;;  %4975 = vmatprep.subr.bf16.mxu1 %v4974_v43 }
 0x17c   :  { %v5554_v22 = vpack.c.bf16 %v3656_v60, %v3644_v2  ;;  %v10215_v61 = vand.u32 4294901760, %v8087_v30  ;;  %v10216_v25 = vand.u32 4294901760, %v8089_v7  ;;  %v11059_v15 = vand.u32 4294901760, %v11058_v4 }
 0x17d   :  { %v4976_v34 = vpack.c.bf16 %v11057_v48, %v11055_v32  ;;  %v11061_v35 = vand.u32 4294901760, %v11060_v41  ;;  %v11063_v20 = vand.u32 4294901760, %v11062_v29  ;;  %v11065_v38 = vand.u32 4294901760, %v11064_v63  ;;  %v11074_v29 = vld [vmem:[#allocation154_spill] sm:$0xff] }
 0x17e   :  { %v3674_v8 = vand.u32 4294901760, %v3673_v5  ;;  %v3686_v0 = vand.u32 4294901760, %v3685_v39  ;;  %v3692_v58 = vand.u32 4294901760, %v3691_v33  ;;  %v3704_v32 = vand.u32 4294901760, %v3703_v47  ;;  %5555 = vmatprep.subr.bf16.mxu0 %v5554_v22  ;;  %v11068_v47 = vld [vmem:[#allocation147_spill] sm:$0xff] }
 0x17f   :  { %v4978_v51 = vpack.c.bf16 %v11061_v35, %v11059_v15  ;;  %v4980_v10 = vpack.c.bf16 %v11065_v38, %v11063_v20  ;;  %v11066_v60 = vand.u32 4294901760, %v10927_v13  ;;  %v11067_v43 = vand.u32 4294901760, %v11053_v3  ;;  %4977 = vmatpush1.bf16.msra.mxu1 %v4976_v34  ;;  %v11072_v34 = vld [vmem:[#allocation153_spill] sm:$0xff] }
 0x180   :  { %v5556_v48 = vpack.c.bf16 %v3662_v52, %v3650_v27  ;;  %v5558_v15 = vpack.c.bf16 %v3680_v18, %v3668_v21  ;;  %v10222_v41 = vand.u32 4294901760, %v8092_v23  ;;  %v10221_v35 = vand.u32 4294901760, %v8100_v40  ;;  %v11070_v52 = vld [vmem:[#allocation148_spill] sm:$0xff] }
 0x181   :  { %v3697_v2 = vsub.f32 %v10927_v13, %v11066_v60  ;;  %v3709_v4 = vsub.f32 %v11053_v3, %v11067_v43  ;;  %v3715_v5 = vsub.f32 %v8087_v30, %v10215_v61  ;;  %v3727_v39 = vsub.f32 %v8089_v7, %v10216_v25  ;;  %4979 = vmatprep.subr.bf16.mxu1 %v4978_v51 }
 0x182   :  { %v10220_v33 = vand.u32 4294901760, %v8120_v37  ;;  %v10218_v62 = vand.u32 4294901760, %v8122_v57  ;;  %v11069_v27 = vand.u32 4294901760, %v11068_v47  ;;  %v11071_v21 = vand.u32 4294901760, %v11070_v52  ;;  %5557 = vmatpush1.bf16.msra.mxu0 %v5556_v48 }
 0x183   :  { %v11073_v22 = vand.u32 4294901760, %v11072_v34  ;;  %v11075_v20 = vand.u32 4294901760, %v11074_v29  ;;  %v5560_v38 = vpack.c.bf16 %v3686_v0, %v3674_v8  ;;  %v5562_v60 = vpack.c.bf16 %v3704_v32, %v3692_v58  ;;  %4981 = vmatpush1.bf16.msra.mxu1 %v4980_v10  ;;  %5559 = vmatprep.subr.bf16.mxu0 %v5558_v15  ;;  %v11076_v32 = vld [vmem:[#allocation159_spill] sm:$0xff]  ;;  %v11082_v29 = vld [vmem:[#allocation166_spill] sm:$0xff] }
 0x184   :  { %v4982_v18 = vpack.c.bf16 %v11071_v21, %v11069_v27  ;;  %v3698_v43 = vand.u32 4294901760, %v3697_v2  ;;  %v3710_v61 = vand.u32 4294901760, %v3709_v4  ;;  %v3721_v25 = vsub.f32 %v8092_v23, %v10222_v41  ;;  %v11078_v4 = vld [vmem:[#allocation160_spill] sm:$0xff] }
 0x185   :  { %v4984_v63 = vpack.c.bf16 %v11075_v20, %v11073_v22  ;;  %v3733_v51 = vsub.f32 %v8100_v40, %v10221_v35  ;;  %v10217_v47 = vand.u32 4294901760, %v8142_v16  ;;  %v10219_v27 = vand.u32 4294901760, %v8144_v17  ;;  %v11134_v35 = vld [vmem:[#allocation44_spill] sm:$0xff] }
 0x186   :  { %v3716_v52 = vand.u32 4294901760, %v3715_v5  ;;  %v3728_v0 = vand.u32 4294901760, %v3727_v39  ;;  %v3739_v8 = vsub.f32 %v8120_v37, %v10220_v33  ;;  %v3751_v58 = vsub.f32 %v8122_v57, %v10218_v62  ;;  %4983 = vmatprep.subr.bf16.mxu1 %v4982_v18  ;;  %5561 = vmatpush1.bf16.msra.mxu0 %v5560_v38  ;;  %v11080_v18 = vld [vmem:[#allocation165_spill] sm:$0xff]  ;;  %v11133_v33 = vld [vmem:[#allocation218_spill] sm:$0xff] }
 0x187   :  { %v11077_v2 = vand.u32 4294901760, %v11076_v32  ;;  %v11079_v48 = vand.u32 4294901760, %v11078_v4  ;;  %v5564_v34 = vpack.c.bf16 %v3710_v61, %v3698_v43  ;;  %v3722_v10 = vand.u32 4294901760, %v3721_v25  ;;  %4985 = vmatpush1.bf16.msra.mxu1 %v4984_v63  ;;  %5563 = vmatprep.subr.bf16.mxu0 %v5562_v60  ;;  %v11084_v25 = vld [vmem:[#allocation171_spill] sm:$0xff]  ;;  %v11088_v63 = vld [vmem:[#allocation177_spill] sm:$0xff] }
 0x188   :  { %v3734_v15 = vand.u32 4294901760, %v3733_v51  ;;  %v3745_v5 = vsub.f32 %v8142_v16, %v10217_v47  ;;  %v3757_v39 = vsub.f32 %v8144_v17, %v10219_v27  ;;  %v11081_v22 = vand.u32 4294901760, %v11080_v18  ;;  %v11086_v51 = vld [vmem:[#allocation172_spill] sm:$0xff]  ;;  %v11090_v18 = vld [vmem:[#allocation178_spill] sm:$0xff] }
 0x189   :  { %v4986_v21 = vpack.c.bf16 %v11079_v48, %v11077_v2  ;;  %v11083_v20 = vand.u32 4294901760, %v11082_v29  ;;  %v5566_v2 = vpack.c.bf16 %v3728_v0, %v3716_v52  ;;  %v3740_v61 = vand.u32 4294901760, %v3739_v8  ;;  %v11092_v0 = vld [vmem:[#allocation183_spill] sm:$0xff] }
 0x18a   :  { %v3752_v38 = vand.u32 4294901760, %v3751_v58  ;;  %v11085_v43 = vand.u32 4294901760, %v11084_v25  ;;  %v11087_v4 = vand.u32 4294901760, %v11086_v51  ;;  %5565 = vmatpush1.bf16.msra.mxu0 %v5564_v34  ;;  %v5568_v47 = vpack.c.bf16 %v3734_v15, %v3722_v10  ;;  %v11094_v58 = vld [vmem:[#allocation184_spill] sm:$0xff]  ;;  %v11096_v34 = vld [vmem:[#allocation190_spill] sm:$0xff]  ;;  %v11098_v15 = vld [vmem:[#allocation191_spill] sm:$0xff] }
 0x18b   :  { %v4988_v32 = vpack.c.bf16 %v11083_v20, %v11081_v22  ;;  %4987 = vmatprep.subr.bf16.mxu1 %v4986_v21  ;;  %v3746_v62 = vand.u32 4294901760, %v3745_v5  ;;  %v3758_v27 = vand.u32 4294901760, %v3757_v39  ;;  %5567 = vmatprep.subr.bf16.mxu0 %v5566_v2  ;;  %v11089_v60 = vand.u32 4294901760, %v11088_v63  ;;  %v11101_v2 = vld [vmem:[#allocation227_spill] sm:$0xff]  ;;  %v11108_v63 = vld [vmem:[#allocation197_spill] sm:$0xff] }
 0x18c   :  { %v4990_v48 = vpack.c.bf16 %v11087_v4, %v11085_v43  ;;  %v11091_v29 = vand.u32 4294901760, %v11090_v18  ;;  %v5570_v52 = vpack.c.bf16 %v3752_v38, %v3740_v61  ;;  %v11093_v8 = vand.u32 4294901760, %v11092_v0  ;;  %v11102_v61 = vld [vmem:[#allocation229_spill] sm:$0xff]  ;;  %v11103_v38 = vld [vmem:[#allocation230_spill] sm:$0xff]  ;;  %v11113_v0 = vld [vmem:[#allocation240_spill] sm:$0xff] }
 0x18d   :  { %4989 = vmatpush1.bf16.msra.mxu1 %v4988_v32  ;;  %v11095_v21 = vand.u32 4294901760, %v11094_v58  ;;  %v5572_v25 = vpack.c.bf16 %v3758_v27, %v3746_v62  ;;  %v11097_v10 = vand.u32 4294901760, %v11096_v34  ;;  %v11099_v5 = vand.u32 4294901760, %v11098_v15  ;;  %v11100_v32 = vld [vmem:[#allocation226_spill] sm:$0xff]  ;;  %v11104_v4 = vld [vmem:[#allocation233_spill] sm:$0xff]  ;;  %v11114_v58 = vld [vmem:[#allocation15_spill] sm:$0xff] }
 0x18e   :  { %v4992_v22 = vpack.c.bf16 %v11091_v29, %v11089_v60  ;;  %4991 = vmatprep.subr.bf16.mxu1 %v4990_v48  ;;  %5569 = vmatpush1.bf16.msra.mxu0 %v5568_v47  ;;  %v5574_v43 = vpack.c.bf16 %v11101_v2, %v11100_v32  ;;  %v5576_v51 = vpack.c.bf16 %v11103_v38, %v11102_v61  ;;  %v11105_v47 = vld [vmem:[#allocation234_spill] sm:$0xff]  ;;  %v11106_v27 = vld [vmem:[#allocation5_spill] sm:$0xff]  ;;  %v11109_v60 = vld [vmem:[#allocation235_spill] sm:$0xff] }
 0x18f   :  { %v4994_v20 = vpack.c.bf16 %v11095_v21, %v11093_v8  ;;  %5571 = vmatprep.subr.bf16.mxu0 %v5570_v52  ;;  %v4996_v39 = vpack.c.bf16 %v11099_v5, %v11097_v10  ;;  %v5578_v62 = vpack.c.bf16 %v11105_v47, %v11104_v4  ;;  %v11107_v48 = vld [vmem:[#allocation309_spill] sm:$0xff]  ;;  %v11112_v52 = vld [vmem:[#allocation239_spill] sm:$0xff]  ;;  %v11115_v21 = vld [vmem:[#allocation202_spill] sm:$0xff]  ;;  %v11135_v41 = vpack.c.bf16 %v7800_v44, %v7780_v19 }
 0x190   :  { %v11110_v18 = vld [vmem:[#allocation237_spill] sm:$0xff]  ;;  %v5582_v8 = vpack.c.bf16 %v11113_v0, %v11112_v52  ;;  %v11119_v10 = vld [vmem:[#allocation26_spill] sm:$0xff]  ;;  %v11120_v15 = vld [vmem:[#allocation16_spill] sm:$0xff] }
 0x191   :  { %4993 = vmatpush1.bf16.msra.mxu1 %v4992_v22  ;;  %v5580_v29 = vpack.c.bf16 %v11110_v18, %v11109_v60  ;;  %v11111_v22 = vld [vmem:[#allocation9_spill] sm:$0xff]  ;;  %v11121_v5 = vld [vmem:[#allocation210_spill] sm:$0xff] }
 0x192   :  { %4995 = vmatprep.subr.bf16.mxu1 %v4994_v20  ;;  %5573 = vmatpush1.bf16.msra.mxu0 %v5572_v25  ;;  %v11116_v20 = vld [vmem:[#allocation10_spill] sm:$0xff]  ;;  %v11118_v34 = vld [vmem:[#allocation21_spill] sm:$0xff] }
 0x193   :  { %5575 = vmatprep.subr.bf16.mxu0 %v5574_v43  ;;  %v11117_v25 = vld [vmem:[#allocation206_spill] sm:$0xff]  ;;  %v11123_v43 = vld [vmem:[#allocation244_spill] sm:$0xff] }
 0x195   :  { %4997 = vmatpush1.bf16.msra.mxu1 %v4996_v39  ;;  %3763 = vmatmul.mubr.f32.vlgmr.msra.gmra.mrb[0].mxu0 %v11107_v48  ;;  %v11122_v39 = vld [vmem:[#allocation20_spill] sm:$0xff]  ;;  %v11147_v48 = vld [vmem:[#allocation62_spill] sm:$0xff] }
 0x196   :  { %4999 = vmatprep.subr.bf16.mxu1 %v11106_v27  ;;  %5577 = vmatpush1.bf16.msra.mxu0 %v5576_v51  ;;  %v11124_v51 = vld [vmem:[#allocation243_spill] sm:$0xff]  ;;  %v11126_v27 = vld [vmem:[#allocation214_spill] sm:$0xff] }
 0x197   :  { %5579 = vmatprep.subr.bf16.mxu0 %v5578_v62  ;;  %3769 = vmatprep.mubr.f32.mxu0 %v11116_v20  ;;  %v11125_v62 = vpack.c.bf16 %v11123_v43, %v11124_v51 }
 0x198   :  { %1522 = vmatmul.mubr.f32.vlgmr.msra.gmra.mrb[0].mxu1 %v11108_v63 }
 0x199   :  { %5001 = vmatpush1.bf16.msra.mxu1 %v11111_v22  ;;  %1528 = vmatprep.mubr.f32.mxu1 %v11115_v21  ;;  %v11128_v22 = vld [vmem:[#allocation247_spill] sm:$0xff] }
 0x19a   :  { %5003 = vmatprep.subr.bf16.mxu1 %v11114_v58  ;;  %5581 = vmatpush1.bf16.msra.mxu0 %v5580_v29  ;;  %v11127_v29 = vld [vmem:[#allocation32_spill] sm:$0xff]  ;;  %v11129_v58 = vld [vmem:[#allocation246_spill] sm:$0xff] }
 0x19b   :  { %5583 = vmatprep.subr.bf16.mxu0 %v5582_v8  ;;  %3771 = vmatmul.mubr.f32.gmra.mrb[2].mxu0 %v11120_v15  ;;  %v11131_v8 = vld [vmem:[#allocation38_spill] sm:$0xff] }
 0x19c   :  { %1530 = vmatmul.mubr.f32.gmra.mrb[2].mxu1 %v11117_v25  ;;  %3777 = vmatprep.mubr.f32.mxu0 %v11122_v39  ;;  %v11137_v39 = vld [vmem:[#allocation45_spill] sm:$0xff]  ;;  %v11144_v15 = vld [vmem:[#allocation258_spill] sm:$0xff] }
 0x19d   :  { %5005 = vmatpush1.bf16.msra.mxu1 %v11118_v34  ;;  %1536 = vmatprep.mubr.f32.mxu1 %v11121_v5  ;;  %v11130_v34 = vpack.c.bf16 %v11128_v22, %v11129_v58 }
 0x19e   :  { %5007 = vmatprep.subr.bf16.mxu1 %v11119_v10  ;;  %5585 = vmatpush1.bf16.msra.mxu0 %v11125_v62  ;;  %v11132_v10 = vld [vmem:[#allocation40_spill] sm:$0xff]  ;;  %v11136_v62 = vld [vmem:[#allocation222_spill] sm:$0xff] }
 0x19f   :  { %5587 = vmatprep.subr.bf16.mxu0 %v11130_v34  ;;  %3779 = vmatmul.mubr.f32.gmra.mrb[4].mxu0 %v11132_v10  ;;  %v11139_v34 = vld [vmem:[#allocation50_spill] sm:$0xff] }
 0x1a0   :  { %1538 = vmatmul.mubr.f32.gmra.mrb[4].mxu1 %v11126_v27  ;;  %3785 = vmatprep.mubr.f32.mxu0 %v11134_v35  ;;  %v11141_v35 = vld [vmem:[#allocation253_spill] sm:$0xff] }
 0x1a1   :  { %5009 = vmatpush1.bf16.msra.mxu1 %v11127_v29  ;;  %1544 = vmatprep.mubr.f32.mxu1 %v11133_v33  ;;  %v11138_v29 = vpack.c.bf16 %v10890_v28, %v7804_v9  ;;  %v11142_v10 = vpack.c.bf16 %v10892_v31, %v11141_v35  ;;  %v11153_v9 = vld [vmem:[#allocation263_spill] sm:$0xff]  ;;  %v11155_v31 = vld [vmem:[#allocation74_spill] sm:$0xff] }
 0x1a2   :  { %5011 = vmatprep.subr.bf16.mxu1 %v11131_v8  ;;  %5589 = vmatpush1.bf16.msra.mxu0 %v11135_v41  ;;  %v11140_v8 = vld [vmem:[#allocation241_spill] sm:$0xff]  ;;  %v11143_v41 = vld [vmem:[#allocation56_spill] sm:$0xff] }
 0x1a3   :  { %5591 = vmatprep.subr.bf16.mxu0 %v11138_v29  ;;  %3787 = vmatmul.mubr.f32.gmra.mrb[6].mxu0 %v8360_v55  ;;  %v11148_v29 = vld [vmem:[#allocation261_spill] sm:$0xff]  ;;  %v11151_v55 = vld [vmem:[#allocation68_spill] sm:$0xff] }
 0x1a4   :  { %1546 = vmatmul.mubr.f32.gmra.mrb[6].mxu1 %v11136_v62  ;;  %3987 = vmatprep.mubr.f32.mxu0 %v11140_v8 }
 0x1a5   :  { %5013 = vmatpush1.bf16.msra.mxu1 %v11137_v39  ;;  %1681 = vmatprep.mubr.f32.mxu1 %v10995_v26  ;;  %v11145_v39 = vld [vmem:[#allocation257_spill] sm:$0xff]  ;;  %v11152_v26 = vld [vmem:[#allocation264_spill] sm:$0xff] }
 0x1a6   :  { %5015 = vmatprep.subr.bf16.mxu1 %v11139_v34  ;;  %5593 = vmatpush1.bf16.msra.mxu0 %v11142_v10  ;;  %v11146_v20 = vpack.c.bf16 %v11144_v15, %v11145_v39  ;;  %v11149_v34 = vld [vmem:[#allocation260_spill] sm:$0xff]  ;;  %v11154_v44 = vpack.c.bf16 %v11152_v26, %v11153_v9  ;;  %v11156_v10 = vld [vmem:[#allocation267_spill] sm:$0xff] }
 0x1a7   :  { %v11150_v28 = vpack.c.bf16 %v11148_v29, %v11149_v34  ;;  %v11159_v15 = vld [vmem:[#allocation80_spill] sm:$0xff]  ;;  %v11163_v29 = vld [vmem:[#allocation86_spill] sm:$0xff] }
 0x1a8   :  { %5595 = vmatprep.subr.bf16.mxu0 %v11146_v20  ;;  %v11160_v20 = vld [vmem:[#allocation270_spill] sm:$0xff]  ;;  %v11167_v26 = vld [vmem:[#allocation92_spill] sm:$0xff] }
 0x1a9   :  { %5017 = vmatpush1.bf16.msra.mxu1 %v11143_v41  ;;  %v11157_v41 = vld [vmem:[#allocation266_spill] sm:$0xff] }
 0x1aa   :  { %5019 = vmatprep.subr.bf16.mxu1 %v11147_v48  ;;  %5597 = vmatpush1.bf16.msra.mxu0 %v11150_v28  ;;  %v11158_v35 = vpack.c.bf16 %v11156_v10, %v11157_v41  ;;  %v11161_v48 = vld [vmem:[#allocation269_spill] sm:$0xff]  ;;  %v11170_v10 = vld [vmem:[#allocation98_spill] sm:$0xff] }
 0x1ab   :  { %5599 = vmatprep.subr.bf16.mxu0 %v11154_v44  ;;  %v11162_v39 = vpack.c.bf16 %v11160_v20, %v11161_v48  ;;  %v11164_v28 = vld [vmem:[#allocation273_spill] sm:$0xff]  ;;  %v11168_v44 = vld [vmem:[#allocation274_spill] sm:$0xff]  ;;  %v11173_v20 = vld [vmem:[#allocation104_spill] sm:$0xff] }
 0x1ad   :  { %5021 = vmatpush1.bf16.msra.mxu1 %v11151_v55  ;;  %v11165_v55 = vld [vmem:[#allocation272_spill] sm:$0xff] }
 0x1ae   :  { %5023 = vmatprep.subr.bf16.mxu1 %v11155_v31  ;;  %5601 = vmatpush1.bf16.msra.mxu0 %v11158_v35  ;;  %v11166_v34 = vpack.c.bf16 %v11164_v28, %v11165_v55  ;;  %v11169_v31 = vpack.c.bf16 %v10980_v42, %v11168_v44  ;;  %v11171_v35 = vld [vmem:[#allocation278_spill] sm:$0xff] }
 0x1af   :  { %5603 = vmatprep.subr.bf16.mxu0 %v11162_v39  ;;  %v11174_v39 = vld [vmem:[#allocation282_spill] sm:$0xff] }
 0x1b0   :  { %v11177_v28 = vld [vmem:[#allocation110_spill] sm:$0xff] }
 0x1b1   :  { %5025 = vmatpush1.bf16.msra.mxu1 %v11159_v15  ;;  %v11172_v15 = vpack.c.bf16 %v10988_v6, %v11171_v35 }
 0x1b2   :  { %5027 = vmatprep.subr.bf16.mxu1 %v11163_v29  ;;  %5605 = vmatpush1.bf16.msra.mxu0 %v11166_v34  ;;  %v11175_v29 = vld [vmem:[#allocation281_spill] sm:$0xff]  ;;  %v11178_v34 = vpack.c.bf16 %v11014_v46, %v11013_v45 }
 0x1b3   :  { %5607 = vmatprep.subr.bf16.mxu0 %v11169_v31  ;;  %v11176_v48 = vpack.c.bf16 %v11174_v39, %v11175_v29  ;;  %v11181_v31 = vld [vmem:[#allocation122_spill] sm:$0xff] }
 0x1b5   :  { %5029 = vmatpush1.bf16.msra.mxu1 %v11167_v26  ;;  %v11179_v26 = vld [vmem:[#allocation116_spill] sm:$0xff] }
 0x1b6   :  { %5031 = vmatprep.subr.bf16.mxu1 %v11170_v10  ;;  %5609 = vmatpush1.bf16.msra.mxu0 %v11172_v15  ;;  %v11180_v10 = vpack.c.bf16 %v11020_v24, %v11019_v53  ;;  %v11183_v15 = vld [vmem:[#allocation128_spill] sm:$0xff] }
 0x1b7   :  { %5611 = vmatprep.subr.bf16.mxu0 %v11176_v48  ;;  %v11184_v48 = vpack.c.bf16 %v10918_v1, %v10917_v50 }
 0x1b9   :  { %5033 = vmatpush1.bf16.msra.mxu1 %v11173_v20  ;;  %v11182_v20 = vpack.c.bf16 %v10916_v12, %v10915_v59 }
 0x1ba   :  { %5035 = vmatprep.subr.bf16.mxu1 %v11177_v28  ;;  %5613 = vmatpush1.bf16.msra.mxu0 %v11178_v34  ;;  %v11185_v28 = vld [vmem:[#allocation134_spill] sm:$0xff]  ;;  %v11186_v34 = vpack.c.bf16 %v10919_v56, %v8027_v14 }
 0x1bb   :  { %5615 = vmatprep.subr.bf16.mxu0 %v11180_v10  ;;  %v11188_v10 = vpack.c.bf16 %v10922_v36, %v10921_v11  ;;  %v11195_v56 = vld [vmem:[#allocation158_spill] sm:$0xff]  ;;  %v11295_v36 = vld [vmem:[#allocation179_spill] sm:$0xff] }
 0x1bd   :  { %5037 = vmatpush1.bf16.msra.mxu1 %v11179_v26  ;;  %v11187_v26 = vld [vmem:[#allocation140_spill] sm:$0xff] }
 0x1be   :  { %5039 = vmatprep.subr.bf16.mxu1 %v11181_v31  ;;  %5617 = vmatpush1.bf16.msra.mxu0 %v11182_v20  ;;  %v11189_v31 = vld [vmem:[#allocation146_spill] sm:$0xff]  ;;  %v11190_v20 = vpack.c.bf16 %v10924_v54, %v10923_v49 }
 0x1bf   :  { %5619 = vmatprep.subr.bf16.mxu0 %v11184_v48  ;;  %v11192_v48 = vld [vmem:[#allocation306_spill] sm:$0xff] }
 0x1c1   :  { %5041 = vmatpush1.bf16.msra.mxu1 %v11183_v15  ;;  %v11191_v15 = vld [vmem:[#allocation152_spill] sm:$0xff] }
 0x1c2   :  { %5043 = vmatprep.subr.bf16.mxu1 %v11185_v28  ;;  %5621 = vmatpush1.bf16.msra.mxu0 %v11186_v34  ;;  %v11193_v28 = vld [vmem:[#allocation305_spill] sm:$0xff]  ;;  %v11196_v34 = vpack.c.bf16 %v11053_v3, %v10927_v13 }
 0x1c3   :  { %5623 = vmatprep.subr.bf16.mxu0 %v11188_v10  ;;  %v11194_v1 = vpack.c.bf16 %v11192_v48, %v11193_v28  ;;  %v11198_v10 = vpack.c.bf16 %v8089_v7, %v8087_v30  ;;  %v11281_v30 = vld [vmem:[#allocation167_spill] sm:$0xff] }
 0x1c4   :  { %v11292_v28 = vld [vmem:[#allocation315_spill] sm:$0xff] }
 0x1c5   :  { %5045 = vmatpush1.bf16.msra.mxu1 %v11187_v26  ;;  %v11197_v26 = vld [vmem:[#allocation164_spill] sm:$0xff] }
 0x1c6   :  { %5047 = vmatprep.subr.bf16.mxu1 %v11189_v31  ;;  %5625 = vmatpush1.bf16.msra.mxu0 %v11190_v20  ;;  %v11199_v31 = vld [vmem:[#allocation170_spill] sm:$0xff]  ;;  %v11200_v20 = vpack.c.bf16 %v8100_v40, %v8092_v23  ;;  %v11208_v40 = vld [vmem:[#allocation317_spill] sm:$0xff] }
 0x1c7   :  { %5627 = vmatprep.subr.bf16.mxu0 %v11194_v1  ;;  %v11203_v1 = vld [vmem:[#allocation182_spill] sm:$0xff] }
 0x1c8   :  { %v11279_v23 = vld [vmem:[#allocation18_spill] sm:$0xff] }
 0x1c9   :  { %5049 = vmatpush1.bf16.msra.mxu1 %v11191_v15  ;;  %v11201_v15 = vld [vmem:[#allocation176_spill] sm:$0xff] }
 0x1ca   :  { %5051 = vmatprep.subr.bf16.mxu1 %v11195_v56  ;;  %5629 = vmatpush1.bf16.msra.mxu0 %v11196_v34  ;;  %v11202_v56 = vpack.c.bf16 %v8122_v57, %v8120_v37  ;;  %v11204_v34 = vpack.c.bf16 %v8144_v17, %v8142_v16  ;;  %v11222_v17 = vld [vmem:[#allocation242_spill] sm:$0xff]  ;;  %v11272_v16 = vld [vmem:[#allocation8_spill] sm:$0xff]  ;;  %v11274_v57 = vld [vmem:[#allocation307_spill] sm:$0xff] }
 0x1cb   :  { %5631 = vmatprep.subr.bf16.mxu0 %v11198_v10  ;;  %v11206_v10 = vld [vmem:[#allocation195_spill] sm:$0xff]  ;;  %v11277_v37 = vld [vmem:[#allocation13_spill] sm:$0xff] }
 0x1cd   :  { %5053 = vmatpush1.bf16.msra.mxu1 %v11197_v26  ;;  %v11205_v26 = vld [vmem:[#allocation189_spill] sm:$0xff] }
 0x1ce   :  { %5055 = vmatprep.subr.bf16.mxu1 %v11199_v31  ;;  %5633 = vmatpush1.bf16.msra.mxu0 %v11200_v20  ;;  %v11207_v31 = vld [vmem:[#allocation7_spill] sm:$0xff]  ;;  %v11209_v20 = vld [vmem:[#allocation228_spill] sm:$0xff] }
 0x1cf   :  { %5635 = vmatprep.subr.bf16.mxu0 %v11202_v56  ;;  %v11211_v56 = vld [vmem:[#allocation232_spill] sm:$0xff] }
 0x1d1   :  { %5057 = vmatpush1.bf16.msra.mxu1 %v11201_v15  ;;  %v11210_v15 = vld [vmem:[#allocation11_spill] sm:$0xff] }
 0x1d2   :  { %5059 = vmatprep.subr.bf16.mxu1 %v11203_v1  ;;  %5637 = vmatpush1.bf16.msra.mxu0 %v11204_v34  ;;  %v11212_v1 = vld [vmem:[#allocation17_spill] sm:$0xff]  ;;  %v11213_v34 = vld [vmem:[#allocation14_spill] sm:$0xff] }
 0x1d3   :  { %5639 = vmatprep.subr.bf16.mxu0 %v11206_v10  ;;  %v11216_v10 = vld [vmem:[#allocation238_spill] sm:$0xff] }
 0x1d5   :  { %5061 = vmatpush1.bf16.msra.mxu1 %v11205_v26  ;;  %3990 = vmatmul.mubr.f32.vlgmr.msra.gmra.mrb[0].mxu0 %v11208_v40  ;;  %v11214_v26 = vld [vmem:[#allocation236_spill] sm:$0xff] }
 0x1d6   :  { %5063 = vmatprep.subr.bf16.mxu1 %v11207_v31  ;;  %5641 = vmatpush1.bf16.msra.mxu0 %v11209_v20  ;;  %v11215_v31 = vld [vmem:[#allocation24_spill] sm:$0xff]  ;;  %v11218_v20 = vld [vmem:[#allocation34_spill] sm:$0xff] }
 0x1d7   :  { %5643 = vmatprep.subr.bf16.mxu0 %v11211_v56  ;;  %3997 = vmatprep.mubr.f32.mxu0 %v11213_v34 }
 0x1d8   :  { %1683 = vmatmul.mubr.f32.vlgmr.msra.gmra.mrb[0].mxu1 %v11108_v63  ;;  %v11217_v63 = vld [vmem:[#allocation29_spill] sm:$0xff] }
 0x1d9   :  { %5065 = vmatpush1.bf16.msra.mxu1 %v11210_v15  ;;  %1689 = vmatprep.mubr.f32.mxu1 %v11115_v21  ;;  %v11219_v15 = vld [vmem:[#allocation198_spill] sm:$0xff]  ;;  %v11221_v21 = vld [vmem:[#allocation39_spill] sm:$0xff] }
 0x1da   :  { %5067 = vmatprep.subr.bf16.mxu1 %v11212_v1  ;;  %5645 = vmatpush1.bf16.msra.mxu0 %v11214_v26  ;;  %v11220_v56 = vand.u32 4294901760, %v11219_v15  ;;  %v11227_v26 = vld [vmem:[#allocation52_spill] sm:$0xff] }
 0x1db   :  { %5647 = vmatprep.subr.bf16.mxu0 %v11216_v10  ;;  %4000 = vmatmul.mubr.f32.gmra.mrb[2].mxu0 %v11218_v20  ;;  %v11225_v10 = vld [vmem:[#allocation41_spill] sm:$0xff] }
 0x1dc   :  { %1691 = vmatmul.mubr.f32.gmra.mrb[2].mxu1 %v11117_v25  ;;  %v1844_v1 = vsub.f32 %v11219_v15, %v11220_v56  ;;  %4007 = vmatprep.mubr.f32.mxu0 %v11221_v21  ;;  %v11223_v25 = vld [vmem:[#allocation35_spill] sm:$0xff] }
 0x1dd   :  { %5069 = vmatpush1.bf16.msra.mxu1 %v11215_v31  ;;  %1697 = vmatprep.mubr.f32.mxu1 %v11121_v5  ;;  %v11224_v31 = vld [vmem:[#allocation245_spill] sm:$0xff]  ;;  %v11228_v5 = vld [vmem:[#allocation248_spill] sm:$0xff]  ;;  %v11229_v15 = vld [vmem:[#allocation47_spill] sm:$0xff] }
 0x1de   :  { %5071 = vmatprep.subr.bf16.mxu1 %v11217_v63  ;;  %5649 = vmatpush1.bf16.msra.mxu0 %v11222_v17  ;;  %v11226_v63 = vld [vmem:[#allocation51_spill] sm:$0xff]  ;;  %v1845_v56 = vand.u32 4294901760, %v1844_v1  ;;  %v11236_v1 = vld [vmem:[#allocation256_spill] sm:$0xff] }
 0x1df   :  { %5651 = vmatprep.subr.bf16.mxu0 %v11224_v31  ;;  %4010 = vmatmul.mubr.f32.gmra.mrb[4].mxu0 %v11226_v63  ;;  %v11232_v31 = vld [vmem:[#allocation290_spill] sm:$0xff]  ;;  %v11235_v17 = vld [vmem:[#allocation59_spill] sm:$0xff] }
 0x1e0   :  { %1699 = vmatmul.mubr.f32.gmra.mrb[4].mxu1 %v11126_v27  ;;  %4017 = vmatprep.mubr.f32.mxu0 %v11227_v26  ;;  %v11230_v27 = vld [vmem:[#allocation250_spill] sm:$0xff] }
 0x1e1   :  { %5073 = vmatpush1.bf16.msra.mxu1 %v11223_v25  ;;  %1705 = vmatprep.mubr.f32.mxu1 %v11133_v33  ;;  %v11231_v25 = vld [vmem:[#allocation54_spill] sm:$0xff] }
 0x1e2   :  { %5075 = vmatprep.subr.bf16.mxu1 %v11225_v10  ;;  %5653 = vmatpush1.bf16.msra.mxu0 %v11228_v5  ;;  %v11233_v10 = vand.u32 4294901760, %v11140_v8  ;;  %v11234_v33 = vld [vmem:[#allocation254_spill] sm:$0xff]  ;;  %v11243_v8 = vld [vmem:[#allocation83_spill] sm:$0xff] }
 0x1e3   :  { %5655 = vmatprep.subr.bf16.mxu0 %v11230_v27  ;;  %4020 = vmatmul.mubr.f32.gmra.mrb[6].mxu0 %v11232_v31  ;;  %v11237_v5 = vld [vmem:[#allocation66_spill] sm:$0xff] }
 0x1e4   :  { %1707 = vmatmul.mubr.f32.gmra.mrb[6].mxu1 %v11136_v62  ;;  %4157 = vmatprep.mubr.f32.mxu0 %v11233_v10  ;;  %v11238_v62 = vld [vmem:[#allocation259_spill] sm:$0xff]  ;;  %v11240_v27 = vld [vmem:[#allocation262_spill] sm:$0xff]  ;;  %v11244_v10 = vld [vmem:[#allocation268_spill] sm:$0xff] }
 0x1e5   :  { %5077 = vmatpush1.bf16.msra.mxu1 %v11229_v15  ;;  %1846 = vmatprep.mubr.f32.mxu1 %v1845_v56  ;;  %v11239_v15 = vld [vmem:[#allocation71_spill] sm:$0xff]  ;;  %v11242_v56 = vld [vmem:[#allocation265_spill] sm:$0xff] }
 0x1e6   :  { %5079 = vmatprep.subr.bf16.mxu1 %v11231_v25  ;;  %5657 = vmatpush1.bf16.msra.mxu0 %v11234_v33  ;;  %v11241_v25 = vld [vmem:[#allocation78_spill] sm:$0xff] }
 0x1e7   :  { %5659 = vmatprep.subr.bf16.mxu0 %v11236_v1  ;;  %v11245_v33 = vld [vmem:[#allocation90_spill] sm:$0xff]  ;;  %v11247_v1 = vld [vmem:[#allocation95_spill] sm:$0xff] }
 0x1e9   :  { %5081 = vmatpush1.bf16.msra.mxu1 %v11235_v17  ;;  %v11246_v17 = vld [vmem:[#allocation271_spill] sm:$0xff] }
 0x1ea   :  { %5083 = vmatprep.subr.bf16.mxu1 %v11237_v5  ;;  %5661 = vmatpush1.bf16.msra.mxu0 %v11238_v62  ;;  %v11248_v5 = vld [vmem:[#allocation275_spill] sm:$0xff]  ;;  %v11249_v62 = vld [vmem:[#allocation102_spill] sm:$0xff] }
 0x1eb   :  { %5663 = vmatprep.subr.bf16.mxu0 %v11240_v27  ;;  %v11251_v27 = vld [vmem:[#allocation107_spill] sm:$0xff] }
 0x1ed   :  { %5085 = vmatpush1.bf16.msra.mxu1 %v11239_v15  ;;  %v11250_v15 = vld [vmem:[#allocation277_spill] sm:$0xff] }
 0x1ee   :  { %5087 = vmatprep.subr.bf16.mxu1 %v11241_v25  ;;  %5665 = vmatpush1.bf16.msra.mxu0 %v11242_v56  ;;  %v11252_v25 = vld [vmem:[#allocation280_spill] sm:$0xff]  ;;  %v11253_v56 = vld [vmem:[#allocation114_spill] sm:$0xff] }
 0x1ef   :  { %5667 = vmatprep.subr.bf16.mxu0 %v11244_v10  ;;  %v11255_v10 = vld [vmem:[#allocation119_spill] sm:$0xff] }
 0x1f1   :  { %5089 = vmatpush1.bf16.msra.mxu1 %v11243_v8  ;;  %v11254_v8 = vld [vmem:[#allocation283_spill] sm:$0xff] }
 0x1f2   :  { %5091 = vmatprep.subr.bf16.mxu1 %v11245_v33  ;;  %5669 = vmatpush1.bf16.msra.mxu0 %v11246_v17  ;;  %v11256_v33 = vld [vmem:[#allocation286_spill] sm:$0xff] }
 0x1f3   :  { %5671 = vmatprep.subr.bf16.mxu0 %v11248_v5  ;;  %v11257_v17 = vld [vmem:[#allocation126_spill] sm:$0xff]  ;;  %v11259_v5 = vld [vmem:[#allocation131_spill] sm:$0xff] }
 0x1f5   :  { %5093 = vmatpush1.bf16.msra.mxu1 %v11247_v1  ;;  %v11258_v1 = vld [vmem:[#allocation289_spill] sm:$0xff] }
 0x1f6   :  { %5095 = vmatprep.subr.bf16.mxu1 %v11249_v62  ;;  %5673 = vmatpush1.bf16.msra.mxu0 %v11250_v15  ;;  %v11260_v62 = vld [vmem:[#allocation292_spill] sm:$0xff]  ;;  %v11261_v15 = vld [vmem:[#allocation138_spill] sm:$0xff] }
 0x1f7   :  { %5675 = vmatprep.subr.bf16.mxu0 %v11252_v25  ;;  %v11263_v25 = vld [vmem:[#allocation143_spill] sm:$0xff] }
 0x1f9   :  { %5097 = vmatpush1.bf16.msra.mxu1 %v11251_v27  ;;  %v11262_v27 = vld [vmem:[#allocation295_spill] sm:$0xff] }
 0x1fa   :  { %5099 = vmatprep.subr.bf16.mxu1 %v11253_v56  ;;  %5677 = vmatpush1.bf16.msra.mxu0 %v11254_v8  ;;  %v11264_v56 = vld [vmem:[#allocation298_spill] sm:$0xff] }
 0x1fb   :  { %5679 = vmatprep.subr.bf16.mxu0 %v11256_v33  ;;  %v11265_v8 = vld [vmem:[#allocation150_spill] sm:$0xff]  ;;  %v11267_v33 = vld [vmem:[#allocation155_spill] sm:$0xff] }
 0x1fd   :  { %5101 = vmatpush1.bf16.msra.mxu1 %v11255_v10  ;;  %v11266_v10 = vld [vmem:[#allocation301_spill] sm:$0xff] }
 0x1fe   :  { %5103 = vmatprep.subr.bf16.mxu1 %v11257_v17  ;;  %5681 = vmatpush1.bf16.msra.mxu0 %v11258_v1  ;;  %v11268_v17 = vld [vmem:[#allocation304_spill] sm:$0xff]  ;;  %v11269_v1 = vld [vmem:[#allocation162_spill] sm:$0xff] }
 0x1ff   :  { %5683 = vmatprep.subr.bf16.mxu0 %v11260_v62 }
 0x201   :  { %5105 = vmatpush1.bf16.msra.mxu1 %v11259_v5  ;;  %v11270_v5 = vld [vmem:[#allocation6_spill] sm:$0xff] }
 0x202   :  { %5107 = vmatprep.subr.bf16.mxu1 %v11261_v15  ;;  %5685 = vmatpush1.bf16.msra.mxu0 %v11262_v27  ;;  %v11271_v62 = vand.u32 4294901760, %v11270_v5  ;;  %v11273_v27 = vand.u32 4294901760, %v11272_v16 }
 0x203   :  { %5687 = vmatprep.subr.bf16.mxu0 %v11264_v56  ;;  %v11275_v56 = vld [vmem:[#allocation12_spill] sm:$0xff] }
 0x204   :  { %v1909_v15 = vsub.f32 %v11270_v5, %v11271_v62  ;;  %v11282_v62 = vld [vmem:[#allocation311_spill] sm:$0xff] }
 0x205   :  { %5109 = vmatpush1.bf16.msra.mxu1 %v11263_v25  ;;  %v1921_v25 = vsub.f32 %v11272_v16, %v11273_v27  ;;  %v11283_v5 = vld [vmem:[#allocation19_spill] sm:$0xff] }
 0x206   :  { %5111 = vmatprep.subr.bf16.mxu1 %v11265_v8  ;;  %5689 = vmatpush1.bf16.msra.mxu0 %v11266_v10  ;;  %v11276_v8 = vand.u32 4294901760, %v11275_v56  ;;  %v11284_v27 = vand.u32 4294901760, %v11283_v5  ;;  %v11285_v16 = vld [vmem:[#allocation23_spill] sm:$0xff]  ;;  %v1910_v48 = vand.u32 4294901760, %v1909_v15 }
 0x207   :  { %5691 = vmatprep.subr.bf16.mxu0 %v11268_v17  ;;  %v11286_v3 = vand.u32 4294901760, %v11285_v16 }
 0x208   :  { %v1915_v10 = vsub.f32 %v11275_v56, %v11276_v8  ;;  %v11287_v56 = vld [vmem:[#allocation25_spill] sm:$0xff] }
 0x209   :  { %5113 = vmatpush1.bf16.msra.mxu1 %v11267_v33  ;;  %v11278_v33 = vand.u32 4294901760, %v11277_v37  ;;  %v1939_v8 = vsub.f32 %v11285_v16, %v11286_v3  ;;  %v11288_v13 = vand.u32 4294901760, %v11287_v56 }
 0x20a   :  { %5115 = vmatprep.subr.bf16.mxu1 %v11269_v1  ;;  %5693 = vmatpush1.bf16.msra.mxu0 %v11274_v57  ;;  %v11280_v1 = vand.u32 4294901760, %v11279_v23  ;;  %v1945_v57 = vsub.f32 %v11283_v5, %v11284_v27  ;;  %v11293_v27 = vand.u32 4294901760, %v11100_v32  ;;  %v11294_v5 = vand.u32 4294901760, %v11101_v2 }
 0x20b   :  { %v1927_v17 = vsub.f32 %v11277_v37, %v11278_v33  ;;  %5695 = vmatprep.subr.bf16.mxu0 %v11282_v62  ;;  %v1951_v33 = vsub.f32 %v11287_v56, %v11288_v13  ;;  %v11289_v37 = vld [vmem:[#allocation174_spill] sm:$0xff]  ;;  %v1916_v3 = vand.u32 4294901760, %v1915_v10  ;;  %v1940_v15 = vand.u32 4294901760, %v1939_v8 }
 0x20c   :  { %v1933_v7 = vsub.f32 %v11279_v23, %v11280_v1  ;;  %v1922_v1 = vand.u32 4294901760, %v1921_v25  ;;  %v11290_v23 = vld [vmem:[#allocation201_spill] sm:$0xff]  ;;  %v5702_v54 = vpack.c.bf16 %v11294_v5, %v11293_v27  ;;  %v11296_v13 = vld [vmem:[#allocation318_spill] sm:$0xff]  ;;  %v11304_v27 = vld [vmem:[#allocation36_spill] sm:$0xff] }
 0x20d   :  { %5117 = vmatpush1.bf16.msra.mxu1 %v11281_v30  ;;  %v11291_v30 = vand.u32 4294901760, %v11290_v23  ;;  %v1928_v16 = vand.u32 4294901760, %v1927_v17  ;;  %v1952_v25 = vand.u32 4294901760, %v1951_v33  ;;  %v11297_v56 = vld [vmem:[#allocation30_spill] sm:$0xff]  ;;  %v11302_v17 = vld [vmem:[#allocation205_spill] sm:$0xff] }
 0x20e   :  { %5119 = vmatprep.subr.bf16.mxu1 %v11289_v37  ;;  %5697 = vmatpush1.bf16.msra.mxu0 %v11292_v28  ;;  %v1934_v49 = vand.u32 4294901760, %v1933_v7  ;;  %v1946_v37 = vand.u32 4294901760, %v1945_v57  ;;  %v11298_v11 = vand.u32 4294901760, %v11297_v56  ;;  %v5126_v32 = vpack.c.bf16 %v1922_v1, %v1910_v48  ;;  %v11300_v28 = vld [vmem:[#allocation31_spill] sm:$0xff]  ;;  %v11306_v33 = vld [vmem:[#allocation321_spill] sm:$0xff] }
 0x20f   :  { %v1850_v62 = vsub.f32 %v11290_v23, %v11291_v30  ;;  %5699 = vmatprep.subr.bf16.mxu0 %v11296_v13  ;;  %v11299_v23 = vld [vmem:[#allocation187_spill] sm:$0xff]  ;;  %v11301_v2 = vand.u32 4294901760, %v11300_v28  ;;  %v11303_v7 = vand.u32 4294901760, %v11302_v17  ;;  %v11305_v57 = vand.u32 4294901760, %v11304_v27  ;;  %v11309_v1 = vld [vmem:[#allocation37_spill] sm:$0xff] }
 0x210   :  { %v1957_v30 = vsub.f32 %v11297_v56, %v11298_v11  ;;  %v5128_v13 = vpack.c.bf16 %v1928_v16, %v1916_v3  ;;  %v11307_v11 = vand.u32 4294901760, %v11102_v61  ;;  %v11310_v56 = vand.u32 4294901760, %v11309_v1 }
 0x211   :  { %5121 = vmatpush1.bf16.msra.mxu1 %v11295_v36  ;;  %v1969_v10 = vsub.f32 %v11300_v28, %v11301_v2  ;;  %v1860_v36 = vsub.f32 %v11302_v17, %v11303_v7  ;;  %v1851_v5 = vand.u32 4294901760, %v1850_v62  ;;  %v1963_v8 = vsub.f32 %v11304_v27, %v11305_v57  ;;  %v11311_v28 = vld [vmem:[#allocation209_spill] sm:$0xff]  ;;  %v11313_v7 = vld [vmem:[#allocation192_spill] sm:$0xff] }
 0x212   :  { %5123 = vmatprep.subr.bf16.mxu1 %v11299_v23  ;;  %5701 = vmatpush1.bf16.msra.mxu0 %v11306_v33  ;;  %v11308_v23 = vand.u32 4294901760, %v11103_v38  ;;  %v1975_v2 = vsub.f32 %v11309_v1, %v11310_v56  ;;  %v11312_v14 = vand.u32 4294901760, %v11311_v28  ;;  %v5130_v57 = vpack.c.bf16 %v1946_v37, %v1934_v49  ;;  %v11318_v1 = vld [vmem:[#allocation43_spill] sm:$0xff] }
 0x213   :  { %5703 = vmatprep.subr.bf16.mxu0 %v5702_v54  ;;  %v11314_v17 = vand.u32 4294901760, %v11104_v4  ;;  %v11315_v16 = vand.u32 4294901760, %v11105_v47  ;;  %v5132_v3 = vpack.c.bf16 %v1952_v25, %v1940_v15  ;;  %v1958_v38 = vand.u32 4294901760, %v1957_v30 }
 0x214   :  { %v5704_v48 = vpack.c.bf16 %v11308_v23, %v11307_v11  ;;  %v1866_v62 = vsub.f32 %v11311_v28, %v11312_v14  ;;  %v1970_v11 = vand.u32 4294901760, %v1969_v10  ;;  %v11316_v23 = vld [vmem:[#allocation42_spill] sm:$0xff]  ;;  %v11319_v27 = vand.u32 4294901760, %v11318_v1 }
 0x215   :  { %5125 = vmatpush1.bf16.msra.mxu1 %v11313_v7  ;;  %v5706_v61 = vpack.c.bf16 %v11315_v16, %v11314_v17  ;;  %v11317_v33 = vand.u32 4294901760, %v11316_v23  ;;  %v1861_v7 = vand.u32 4294901760, %v1860_v36  ;;  %v11320_v49 = vand.u32 4294901760, %v11208_v40  ;;  %v11327_v40 = vld [vmem:[#allocation48_spill] sm:$0xff] }
 0x216   :  { %5127 = vmatprep.subr.bf16.mxu1 %v5126_v32  ;;  %v1993_v14 = vsub.f32 %v11318_v1, %v11319_v27  ;;  %v11321_v54 = vand.u32 4294901760, %v11109_v60  ;;  %v11322_v4 = vand.u32 4294901760, %v11110_v18  ;;  %v11323_v37 = vand.u32 4294901760, %v11112_v52  ;;  %v11325_v32 = vld [vmem:[#allocation213_spill] sm:$0xff] }
 0x217   :  { %v1981_v56 = vsub.f32 %v11316_v23, %v11317_v33  ;;  %4161 = vmatmul.mubr.f32.vlgmr.msra.gmra.mrb[0].mxu0 %v11320_v49  ;;  %v11324_v15 = vand.u32 4294901760, %v11113_v0  ;;  %v1964_v30 = vand.u32 4294901760, %v1963_v8  ;;  %v11326_v10 = vand.u32 4294901760, %v11325_v32  ;;  %v11329_v18 = vld [vmem:[#allocation217_spill] sm:$0xff] }
 0x218   :  { %v5708_v47 = vpack.c.bf16 %v11322_v4, %v11321_v54  ;;  %1852 = vmatmul.mubr.f32.vlgmr.msra.gmra.mrb[0].mxu1 %v1851_v5  ;;  %5705 = vmatpush1.bf16.msra.mxu0 %v5704_v48  ;;  %v1976_v36 = vand.u32 4294901760, %v1975_v2  ;;  %v11328_v27 = vand.u32 4294901760, %v11327_v40  ;;  %v1867_v33 = vand.u32 4294901760, %v1866_v62  ;;  %v11331_v0 = vld [vmem:[#allocation49_spill] sm:$0xff]  ;;  %v11335_v48 = vld [vmem:[#allocation55_spill] sm:$0xff] }
 0x219   :  { %v5710_v25 = vpack.c.bf16 %v11324_v15, %v11323_v37  ;;  %v1876_v17 = vsub.f32 %v11325_v32, %v11326_v10  ;;  %v11330_v16 = vand.u32 4294901760, %v11329_v18  ;;  %5129 = vmatpush1.bf16.msra.mxu1 %v5128_v13  ;;  %5707 = vmatprep.subr.bf16.mxu0 %v5706_v61  ;;  %v11332_v8 = vand.u32 4294901760, %v11331_v0  ;;  %v11333_v54 = vld [vmem:[#allocation53_spill] sm:$0xff] }
 0x21a   :  { %v1987_v60 = vsub.f32 %v11327_v40, %v11328_v27  ;;  %v11334_v4 = vand.u32 4294901760, %v11333_v54  ;;  %v11336_v2 = vand.u32 4294901760, %v11335_v48  ;;  %5131 = vmatprep.subr.bf16.mxu1 %v5130_v57  ;;  %v5134_v62 = vpack.c.bf16 %v1970_v11, %v1958_v38  ;;  %1862 = vmatprep.mubr.f32.mxu1 %v1861_v7  ;;  %v11341_v32 = vld [vmem:[#allocation61_spill] sm:$0xff] }
 0x21b   :  { %v1882_v52 = vsub.f32 %v11329_v18, %v11330_v16  ;;  %v1999_v49 = vsub.f32 %v11331_v0, %v11332_v8  ;;  %v11337_v15 = vand.u32 4294901760, %v11124_v51  ;;  %v11338_v10 = vand.u32 4294901760, %v11123_v43  ;;  %v11339_v16 = vld [vmem:[#allocation60_spill] sm:$0xff]  ;;  %v11344_v38 = vld [vmem:[#allocation221_spill] sm:$0xff] }
 0x21c   :  { %v2005_v5 = vsub.f32 %v11333_v54, %v11334_v4  ;;  %v2017_v37 = vsub.f32 %v11335_v48, %v11336_v2  ;;  %v1982_v61 = vand.u32 4294901760, %v1981_v56  ;;  %v1994_v27 = vand.u32 4294901760, %v1993_v14  ;;  %5709 = vmatpush1.bf16.msra.mxu0 %v5708_v47  ;;  %1868 = vmatmul.mubr.f32.gmra.mrb[2].mxu1 %v1867_v33  ;;  %v11346_v7 = vld [vmem:[#allocation225_spill] sm:$0xff]  ;;  %v11352_v33 = vld [vmem:[#allocation67_spill] sm:$0xff] }
 0x21d   :  { %v5712_v13 = vpack.c.bf16 %v11338_v10, %v11337_v15  ;;  %v11340_v8 = vand.u32 4294901760, %v11339_v16  ;;  %v11342_v4 = vand.u32 4294901760, %v11341_v32  ;;  %v11343_v2 = vand.u32 4294901760, %v11213_v34  ;;  %5133 = vmatpush1.bf16.msra.mxu1 %v5132_v3  ;;  %5711 = vmatprep.subr.bf16.mxu0 %v5710_v25 }
 0x21e   :  { %v1877_v57 = vand.u32 4294901760, %v1876_v17  ;;  %v11345_v51 = vand.u32 4294901760, %v11344_v38  ;;  %v5136_v11 = vpack.c.bf16 %v1976_v36, %v1964_v30  ;;  %v1988_v56 = vand.u32 4294901760, %v1987_v60  ;;  %5135 = vmatprep.subr.bf16.mxu1 %v5134_v62  ;;  %v11350_v30 = vld [vmem:[#allocation65_spill] sm:$0xff] }
 0x21f   :  { %v2011_v18 = vsub.f32 %v11339_v16, %v11340_v8  ;;  %v2023_v28 = vsub.f32 %v11341_v32, %v11342_v4  ;;  %4169 = vmatprep.mubr.f32.mxu0 %v11343_v2  ;;  %v1883_v14 = vand.u32 4294901760, %v1882_v52  ;;  %v11347_v15 = vand.u32 4294901760, %v11346_v7 }
 0x220   :  { %v1892_v43 = vsub.f32 %v11344_v38, %v11345_v51  ;;  %v11348_v8 = vand.u32 4294901760, %v11129_v58  ;;  %v11349_v34 = vand.u32 4294901760, %v11128_v22  ;;  %v2000_v4 = vand.u32 4294901760, %v1999_v49  ;;  %1878 = vmatprep.mubr.f32.mxu1 %v1877_v57  ;;  %5713 = vmatpush1.bf16.msra.mxu0 %v5712_v13  ;;  %v11363_v13 = vld [vmem:[#allocation251_spill] sm:$0xff]  ;;  %v11409_v38 = vld [vmem:[#allocation109_spill] sm:$0xff] }
 0x221   :  { %v1898_v10 = vsub.f32 %v11346_v7, %v11347_v15  ;;  %v2006_v2 = vand.u32 4294901760, %v2005_v5  ;;  %v2018_v32 = vand.u32 4294901760, %v2017_v37  ;;  %v5138_v47 = vpack.c.bf16 %v1994_v27, %v1982_v61  ;;  %v11357_v37 = vld [vmem:[#allocation249_spill] sm:$0xff]  ;;  %v11359_v27 = vld [vmem:[#allocation72_spill] sm:$0xff]  ;;  %1884 = vmatmul.mubr.f32.gmra.mrb[4].mxu1 %v1883_v14 }
 0x222   :  { %v5714_v17 = vpack.c.bf16 %v11349_v34, %v11348_v8  ;;  %v11351_v36 = vand.u32 4294901760, %v11350_v30  ;;  %v11353_v52 = vand.u32 4294901760, %v11352_v33  ;;  %v11354_v3 = vand.u32 4294901760, %v11218_v20  ;;  %v11361_v34 = vld [vmem:[#allocation73_spill] sm:$0xff]  ;;  %5137 = vmatpush1.bf16.msra.mxu1 %v5136_v11 }
 0x223   :  { %v2012_v58 = vand.u32 4294901760, %v2011_v18  ;;  %v2024_v25 = vand.u32 4294901760, %v2023_v28  ;;  %v11355_v22 = vand.u32 4294901760, %v11221_v21  ;;  %v1893_v49 = vand.u32 4294901760, %v1892_v43  ;;  %5139 = vmatprep.subr.bf16.mxu1 %v5138_v47 }
 0x224   :  { %v2029_v60 = vsub.f32 %v11350_v30, %v11351_v36  ;;  %v2041_v51 = vsub.f32 %v11352_v33, %v11353_v52  ;;  %4173 = vmatmul.mubr.f32.gmra.mrb[2].mxu0 %v11354_v3  ;;  %v11356_v5 = vand.u32 4294901760, %v7780_v19  ;;  %v11358_v62 = vand.u32 4294901760, %v11357_v37  ;;  %5715 = vmatprep.subr.bf16.mxu0 %v5714_v17  ;;  %v11365_v19 = vld [vmem:[#allocation252_spill] sm:$0xff]  ;;  %v11374_v17 = vld [vmem:[#allocation255_spill] sm:$0xff] }
 0x225   :  { %4181 = vmatprep.mubr.f32.mxu0 %v11355_v22  ;;  %v11360_v15 = vand.u32 4294901760, %v11359_v27  ;;  %v11362_v20 = vand.u32 4294901760, %v11361_v34  ;;  %v1899_v28 = vand.u32 4294901760, %v1898_v10  ;;  %v5140_v21 = vpack.c.bf16 %v2000_v4, %v1988_v56  ;;  %v11372_v56 = vld [vmem:[#allocation253_spill] sm:$0xff]  ;;  %1894 = vmatprep.mubr.f32.mxu1 %v1893_v49 }
 0x226   :  { %v5716_v61 = vpack.c.bf16 %v11358_v62, %v11356_v5  ;;  %v5142_v57 = vpack.c.bf16 %v2018_v32, %v2006_v2  ;;  %v11364_v43 = vand.u32 4294901760, %v11363_v13  ;;  %v11366_v36 = vand.u32 4294901760, %v11365_v19  ;;  %v11367_v5 = vld [vmem:[#allocation77_spill] sm:$0xff]  ;;  %v11379_v13 = vld [vmem:[#allocation258_spill] sm:$0xff] }
 0x227   :  { %v2035_v8 = vsub.f32 %v11359_v27, %v11360_v15  ;;  %v2047_v18 = vsub.f32 %v11361_v34, %v11362_v20  ;;  %v2030_v3 = vand.u32 4294901760, %v2029_v60  ;;  %v2042_v22 = vand.u32 4294901760, %v2041_v51  ;;  %v11369_v15 = vld [vmem:[#allocation79_spill] sm:$0xff]  ;;  %v11377_v60 = vld [vmem:[#allocation257_spill] sm:$0xff]  ;;  %1900 = vmatmul.mubr.f32.gmra.mrb[6].mxu1 %v1899_v28 }
 0x228   :  { %v5718_v52 = vpack.c.bf16 %v11366_v36, %v11364_v43  ;;  %v11368_v37 = vand.u32 4294901760, %v11367_v5  ;;  %v11370_v20 = vand.u32 4294901760, %v11369_v15  ;;  %v11371_v11 = vand.u32 4294901760, %v11226_v63  ;;  %5717 = vmatpush1.bf16.msra.mxu0 %v5716_v61  ;;  %v11381_v63 = vld [vmem:[#allocation84_spill] sm:$0xff]  ;;  %5141 = vmatpush1.bf16.msra.mxu1 %v5140_v21 }
 0x229   :  { %v5144_v32 = vpack.c.bf16 %v2024_v25, %v2012_v58  ;;  %v11373_v10 = vand.u32 4294901760, %v11372_v56  ;;  %v11375_v4 = vand.u32 4294901760, %v11374_v17  ;;  %v11376_v47 = vand.u32 4294901760, %v11227_v26  ;;  %v11383_v25 = vld [vmem:[#allocation85_spill] sm:$0xff]  ;;  %5143 = vmatprep.subr.bf16.mxu1 %v5142_v57  ;;  %v11390_v21 = vld [vmem:[#allocation260_spill] sm:$0xff] }
 0x22a   :  { %v2053_v62 = vsub.f32 %v11367_v5, %v11368_v37  ;;  %v2065_v14 = vsub.f32 %v11369_v15, %v11370_v20  ;;  %4185 = vmatmul.mubr.f32.gmra.mrb[4].mxu0 %v11371_v11  ;;  %v11378_v51 = vand.u32 4294901760, %v11377_v60  ;;  %v11380_v43 = vand.u32 4294901760, %v11379_v13  ;;  %5719 = vmatprep.subr.bf16.mxu0 %v5718_v52  ;;  %v11385_v11 = vld [vmem:[#allocation89_spill] sm:$0xff] }
 0x22b   :  { %v5720_v2 = vpack.c.bf16 %v11375_v4, %v11373_v10  ;;  %4193 = vmatprep.mubr.f32.mxu0 %v11376_v47  ;;  %v2036_v36 = vand.u32 4294901760, %v2035_v8  ;;  %v2048_v37 = vand.u32 4294901760, %v2047_v18  ;;  %v11382_v20 = vand.u32 4294901760, %v11381_v63  ;;  %v11387_v10 = vld [vmem:[#allocation91_spill] sm:$0xff]  ;;  %v11392_v60 = vld [vmem:[#allocation261_spill] sm:$0xff] }
 0x22c   :  { %v5722_v19 = vpack.c.bf16 %v11380_v43, %v11378_v51  ;;  %v11384_v49 = vand.u32 4294901760, %v11383_v25  ;;  %v11386_v61 = vand.u32 4294901760, %v11385_v11  ;;  %v11388_v17 = vand.u32 4294901760, %v11387_v10  ;;  %v11394_v43 = vld [vmem:[#allocation196_spill] sm:$0xff]  ;;  %5145 = vmatpush1.bf16.msra.mxu1 %v5144_v32 }
 0x22d   :  { %v2059_v58 = vsub.f32 %v11381_v63, %v11382_v20  ;;  %v5146_v18 = vpack.c.bf16 %v2042_v22, %v2030_v3  ;;  %v2054_v4 = vand.u32 4294901760, %v2053_v62  ;;  %v2066_v47 = vand.u32 4294901760, %v2065_v14  ;;  %2291 = vmatprep.mubr.f32.mxu1 %v11394_v43  ;;  %v11395_v20 = vld [vmem:[#allocation231_spill] sm:$0xff]  ;;  %5721 = vmatpush1.bf16.msra.mxu0 %v5720_v2  ;;  %v11398_v22 = vld [vmem:[#allocation97_spill] sm:$0xff]  ;;  %v11407_v32 = vld [vmem:[#allocation108_spill] sm:$0xff] }
 0x22e   :  { %v2071_v26 = vsub.f32 %v11383_v25, %v11384_v49  ;;  %v2077_v56 = vsub.f32 %v11385_v11, %v11386_v61  ;;  %v2089_v8 = vsub.f32 %v11387_v10, %v11388_v17  ;;  %v11389_v28 = vand.u32 4294901760, %v11232_v31  ;;  %v11396_v17 = vld [vmem:[#allocation96_spill] sm:$0xff]  ;;  %5723 = vmatprep.subr.bf16.mxu0 %v5722_v19 }
 0x22f   :  { %v11391_v52 = vand.u32 4294901760, %v11390_v21  ;;  %v11393_v51 = vand.u32 4294901760, %v11392_v60  ;;  %v5148_v49 = vpack.c.bf16 %v2048_v37, %v2036_v36  ;;  %v2060_v61 = vand.u32 4294901760, %v2059_v58  ;;  %5147 = vmatprep.subr.bf16.mxu1 %v5146_v18  ;;  %v11403_v37 = vld [vmem:[#allocation101_spill] sm:$0xff] }
 0x230   :  { %4197 = vmatmul.mubr.f32.gmra.mrb[6].mxu0 %v11389_v28  ;;  %v11397_v57 = vand.u32 4294901760, %v11396_v17  ;;  %v11399_v62 = vand.u32 4294901760, %v11398_v22  ;;  %v11400_v14 = vand.u32 4294901760, %v11153_v9  ;;  %v11401_v28 = vld [vmem:[#allocation264_spill] sm:$0xff]  ;;  %v2072_v60 = vand.u32 4294901760, %v2071_v26 }
 0x231   :  { %v5724_v13 = vpack.c.bf16 %v11393_v51, %v11391_v52  ;;  %4460 = vmatprep.mubr.f32.mxu0 %v11395_v20  ;;  %v11402_v21 = vand.u32 4294901760, %v11401_v28  ;;  %v2078_v51 = vand.u32 4294901760, %v2077_v56  ;;  %v2090_v2 = vand.u32 4294901760, %v2089_v8  ;;  %v11412_v8 = vld [vmem:[#allocation267_spill] sm:$0xff]  ;;  %5149 = vmatpush1.bf16.msra.mxu1 %v5148_v49 }
 0x232   :  { %v2083_v3 = vsub.f32 %v11396_v17, %v11397_v57  ;;  %v2095_v31 = vsub.f32 %v11398_v22, %v11399_v62  ;;  %v5150_v36 = vpack.c.bf16 %v2066_v47, %v2054_v4  ;;  %v11404_v58 = vand.u32 4294901760, %v11403_v37  ;;  %v11405_v57 = vld [vmem:[#allocation103_spill] sm:$0xff] }
 0x233   :  { %v5726_v52 = vpack.c.bf16 %v11402_v21, %v11400_v14  ;;  %v11406_v7 = vand.u32 4294901760, %v11405_v57  ;;  %v11408_v19 = vand.u32 4294901760, %v11407_v32  ;;  %v11410_v28 = vand.u32 4294901760, %v11409_v38  ;;  %5725 = vmatpush1.bf16.msra.mxu0 %v5724_v13  ;;  %v11418_v13 = vld [vmem:[#allocation113_spill] sm:$0xff] }
 0x234   :  { %v2101_v43 = vsub.f32 %v11403_v37, %v11404_v58  ;;  %v11411_v56 = vand.u32 4294901760, %v11157_v41  ;;  %v11413_v18 = vand.u32 4294901760, %v11412_v8  ;;  %v2084_v47 = vand.u32 4294901760, %v2083_v3  ;;  %v11414_v58 = vld [vmem:[#allocation269_spill] sm:$0xff]  ;;  %v11416_v37 = vld [vmem:[#allocation270_spill] sm:$0xff]  ;;  %5151 = vmatprep.subr.bf16.mxu1 %v5150_v36  ;;  %v11420_v8 = vld [vmem:[#allocation115_spill] sm:$0xff] }
 0x235   :  { %v2113_v62 = vsub.f32 %v11405_v57, %v11406_v7  ;;  %v2107_v9 = vsub.f32 %v11407_v32, %v11408_v19  ;;  %v2119_v26 = vsub.f32 %v11409_v38, %v11410_v28  ;;  %v2096_v14 = vand.u32 4294901760, %v2095_v31  ;;  %5727 = vmatprep.subr.bf16.mxu0 %v5726_v52  ;;  %v11425_v36 = vld [vmem:[#allocation120_spill] sm:$0xff] }
 0x236   :  { %v5728_v4 = vpack.c.bf16 %v11413_v18, %v11411_v56  ;;  %v5152_v21 = vpack.c.bf16 %v2072_v60, %v2060_v61  ;;  %v5154_v7 = vpack.c.bf16 %v2090_v2, %v2078_v51  ;;  %v11415_v57 = vand.u32 4294901760, %v11414_v58  ;;  %v11423_v60 = vld [vmem:[#allocation273_spill] sm:$0xff] }
 0x237   :  { %v11417_v19 = vand.u32 4294901760, %v11416_v37  ;;  %v2102_v22 = vand.u32 4294901760, %v2101_v43  ;;  %v2114_v28 = vand.u32 4294901760, %v2113_v62  ;;  %v11419_v38 = vand.u32 4294901760, %v11418_v13 }
 0x238   :  { %v11421_v56 = vand.u32 4294901760, %v11420_v8  ;;  %v2108_v49 = vand.u32 4294901760, %v2107_v9  ;;  %v2120_v31 = vand.u32 4294901760, %v2119_v26  ;;  %5729 = vmatpush1.bf16.msra.mxu0 %v5728_v4  ;;  %v5156_v61 = vpack.c.bf16 %v2096_v14, %v2084_v47  ;;  %5153 = vmatpush1.bf16.msra.mxu1 %v5152_v21  ;;  %v11431_v4 = vld [vmem:[#allocation125_spill] sm:$0xff]  ;;  %v11433_v14 = vld [vmem:[#allocation127_spill] sm:$0xff] }
 0x239   :  { %v5730_v32 = vpack.c.bf16 %v11417_v19, %v11415_v57  ;;  %v2125_v41 = vsub.f32 %v11418_v13, %v11419_v38  ;;  %v11422_v52 = vand.u32 4294901760, %v11165_v55  ;;  %v11424_v51 = vand.u32 4294901760, %v11423_v60  ;;  %v11427_v57 = vld [vmem:[#allocation121_spill] sm:$0xff]  ;;  %5155 = vmatprep.subr.bf16.mxu1 %v5154_v7 }
 0x23a   :  { %v2137_v3 = vsub.f32 %v11420_v8, %v11421_v56  ;;  %v11426_v37 = vand.u32 4294901760, %v11425_v36  ;;  %v11428_v62 = vand.u32 4294901760, %v11427_v57  ;;  %v11429_v9 = vand.u32 4294901760, %v11168_v44 }
 0x23b   :  { %v5732_v2 = vpack.c.bf16 %v11424_v51, %v11422_v52  ;;  %5731 = vmatprep.subr.bf16.mxu0 %v5730_v32  ;;  %v11430_v26 = vand.u32 4294901760, %v10980_v42  ;;  %v11432_v55 = vand.u32 4294901760, %v11431_v4  ;;  %v11434_v58 = vand.u32 4294901760, %v11433_v14 }
 0x23c   :  { %v2131_v43 = vsub.f32 %v11425_v36, %v11426_v37  ;;  %v2143_v38 = vsub.f32 %v11427_v57, %v11428_v62  ;;  %v5158_v56 = vpack.c.bf16 %v2114_v28, %v2102_v22  ;;  %v2126_v52 = vand.u32 4294901760, %v2125_v41  ;;  %v11437_v62 = vld [vmem:[#allocation132_spill] sm:$0xff]  ;;  %5157 = vmatpush1.bf16.msra.mxu1 %v5156_v61 }
 0x23d   :  { %v5734_v18 = vpack.c.bf16 %v11430_v26, %v11429_v9  ;;  %v2149_v47 = vsub.f32 %v11431_v4, %v11432_v55  ;;  %v2161_v19 = vsub.f32 %v11433_v14, %v11434_v58  ;;  %v2138_v60 = vand.u32 4294901760, %v2137_v3  ;;  %5733 = vmatpush1.bf16.msra.mxu0 %v5732_v2  ;;  %v11443_v2 = vld [vmem:[#allocation137_spill] sm:$0xff]  ;;  %v11445_v55 = vld [vmem:[#allocation139_spill] sm:$0xff] }
 0x23e   :  { %v5160_v51 = vpack.c.bf16 %v2120_v31, %v2108_v49  ;;  %v11435_v32 = vand.u32 4294901760, %v11171_v35  ;;  %v11436_v44 = vand.u32 4294901760, %v10988_v6  ;;  %v2132_v21 = vand.u32 4294901760, %v2131_v43  ;;  %v11441_v49 = vld [vmem:[#allocation133_spill] sm:$0xff]  ;;  %5159 = vmatprep.subr.bf16.mxu1 %v5158_v56 }
 0x23f   :  { %v2144_v37 = vand.u32 4294901760, %v2143_v38  ;;  %v11438_v9 = vand.u32 4294901760, %v11437_v62  ;;  %5735 = vmatprep.subr.bf16.mxu0 %v5734_v18  ;;  %v11439_v7 = vand.u32 4294901760, %v11175_v29  ;;  %v11440_v22 = vand.u32 4294901760, %v11174_v39 }
 0x240   :  { %v5736_v42 = vpack.c.bf16 %v11436_v44, %v11435_v32  ;;  %v2150_v41 = vand.u32 4294901760, %v2149_v47  ;;  %v2162_v3 = vand.u32 4294901760, %v2161_v19  ;;  %v11442_v35 = vand.u32 4294901760, %v11441_v49  ;;  %5161 = vmatpush1.bf16.msra.mxu1 %v5160_v51 }
 0x241   :  { %v2155_v26 = vsub.f32 %v11437_v62, %v11438_v9  ;;  %v5738_v28 = vpack.c.bf16 %v11440_v22, %v11439_v7  ;;  %v5162_v31 = vpack.c.bf16 %v2138_v60, %v2126_v52  ;;  %v11444_v43 = vand.u32 4294901760, %v11443_v2  ;;  %v11451_v9 = vld [vmem:[#allocation144_spill] sm:$0xff] }
 0x242   :  { %v2167_v6 = vsub.f32 %v11441_v49, %v11442_v35  ;;  %v11446_v61 = vand.u32 4294901760, %v11445_v55  ;;  %5737 = vmatpush1.bf16.msra.mxu0 %v5736_v42  ;;  %v5164_v29 = vpack.c.bf16 %v2144_v37, %v2132_v21  ;;  %v11447_v39 = vand.u32 4294901760, %v11013_v45  ;;  %v11453_v21 = vld [vmem:[#allocation145_spill] sm:$0xff] }
 0x243   :  { %v2173_v38 = vsub.f32 %v11443_v2, %v11444_v43  ;;  %v11448_v47 = vand.u32 4294901760, %v11014_v46  ;;  %v11449_v19 = vand.u32 4294901760, %v11019_v53  ;;  %v11450_v56 = vand.u32 4294901760, %v11020_v24  ;;  %5739 = vmatprep.subr.bf16.mxu0 %v5738_v28  ;;  %5163 = vmatprep.subr.bf16.mxu1 %v5162_v31  ;;  %v11455_v53 = vld [vmem:[#allocation149_spill] sm:$0xff] }
 0x244   :  { %v2185_v18 = vsub.f32 %v11445_v55, %v11446_v61  ;;  %v2156_v60 = vand.u32 4294901760, %v2155_v26  ;;  %v5166_v32 = vpack.c.bf16 %v2162_v3, %v2150_v41  ;;  %v2168_v44 = vand.u32 4294901760, %v2167_v6  ;;  %v11457_v26 = vld [vmem:[#allocation151_spill] sm:$0xff]  ;;  %v11459_v41 = vld [vmem:[#allocation156_spill] sm:$0xff]  ;;  %v11461_v43 = vld [vmem:[#allocation157_spill] sm:$0xff]  ;;  %5165 = vmatpush1.bf16.msra.mxu1 %v5164_v29 }
 0x245   :  { %v5740_v58 = vpack.c.bf16 %v11448_v47, %v11447_v39  ;;  %v5742_v52 = vpack.c.bf16 %v11450_v56, %v11449_v19  ;;  %v11452_v7 = vand.u32 4294901760, %v11451_v9  ;;  %v11454_v37 = vand.u32 4294901760, %v11453_v21  ;;  %v11465_v47 = vld [vmem:[#allocation161_spill] sm:$0xff] }
 0x246   :  { %v2174_v46 = vand.u32 4294901760, %v2173_v38  ;;  %v2186_v22 = vand.u32 4294901760, %v2185_v18  ;;  %v11456_v35 = vand.u32 4294901760, %v11455_v53  ;;  %v11458_v51 = vand.u32 4294901760, %v11457_v26  ;;  %5167 = vmatprep.subr.bf16.mxu1 %v5166_v32 }
 0x247   :  { %v2179_v42 = vsub.f32 %v11451_v9, %v11452_v7  ;;  %v2191_v45 = vsub.f32 %v11453_v21, %v11454_v37  ;;  %v11460_v3 = vand.u32 4294901760, %v11459_v41  ;;  %v11462_v61 = vand.u32 4294901760, %v11461_v43  ;;  %5741 = vmatpush1.bf16.msra.mxu0 %v5740_v58  ;;  %v11467_v7 = vld [vmem:[#allocation163_spill] sm:$0xff] }
 0x248   :  { %v2197_v24 = vsub.f32 %v11455_v53, %v11456_v35  ;;  %v2209_v28 = vsub.f32 %v11457_v26, %v11458_v51  ;;  %v11463_v31 = vand.u32 4294901760, %v10915_v59  ;;  %v11464_v38 = vand.u32 4294901760, %v10916_v12  ;;  %5743 = vmatprep.subr.bf16.mxu0 %v5742_v52  ;;  %v11472_v26 = vld [vmem:[#allocation296_spill] sm:$0xff] }
 0x249   :  { %v2203_v6 = vsub.f32 %v11459_v41, %v11460_v3  ;;  %v2215_v39 = vsub.f32 %v11461_v43, %v11462_v61  ;;  %v11466_v19 = vand.u32 4294901760, %v11465_v47  ;;  %v11468_v37 = vand.u32 4294901760, %v11467_v7  ;;  %v11470_v61 = vld [vmem:[#allocation294_spill] sm:$0xff] }
 0x24a   :  { %v5744_v18 = vpack.c.bf16 %v11464_v38, %v11463_v31  ;;  %v5168_v51 = vpack.c.bf16 %v2168_v44, %v2156_v60  ;;  %v11469_v3 = vand.u32 4294901760, %v10917_v50  ;;  %v11471_v58 = vand.u32 4294901760, %v11470_v61  ;;  %v11476_v50 = vld [vmem:[#allocation168_spill] sm:$0xff] }
 0x24b   :  { %v2221_v56 = vsub.f32 %v11465_v47, %v11466_v19  ;;  %v2233_v35 = vsub.f32 %v11467_v7, %v11468_v37  ;;  %v2180_v59 = vand.u32 4294901760, %v2179_v42  ;;  %v2192_v41 = vand.u32 4294901760, %v2191_v45  ;;  %v11474_v47 = vld [vmem:[#allocation297_spill] sm:$0xff] }
 0x24c   :  { %v5746_v43 = vpack.c.bf16 %v11471_v58, %v11469_v3  ;;  %v5170_v12 = vpack.c.bf16 %v2186_v22, %v2174_v46  ;;  %v2198_v31 = vand.u32 4294901760, %v2197_v24  ;;  %v2210_v38 = vand.u32 4294901760, %v2209_v28  ;;  %5745 = vmatpush1.bf16.msra.mxu0 %v5744_v18  ;;  %v11478_v42 = vld [vmem:[#allocation169_spill] sm:$0xff]  ;;  %5169 = vmatpush1.bf16.msra.mxu1 %v5168_v51  ;;  %v11480_v22 = vld [vmem:[#allocation299_spill] sm:$0xff]  ;;  %v11488_v51 = vld [vmem:[#allocation302_spill] sm:$0xff] }
 0x24d   :  { %v11473_v19 = vand.u32 4294901760, %v11472_v26  ;;  %v11475_v53 = vand.u32 4294901760, %v11474_v47  ;;  %v2204_v37 = vand.u32 4294901760, %v2203_v6  ;;  %v2216_v29 = vand.u32 4294901760, %v2215_v39  ;;  %v11482_v26 = vld [vmem:[#allocation300_spill] sm:$0xff]  ;;  %v11484_v39 = vld [vmem:[#allocation173_spill] sm:$0xff] }
 0x24e   :  { %v2222_v52 = vand.u32 4294901760, %v2221_v56  ;;  %v2234_v60 = vand.u32 4294901760, %v2233_v35  ;;  %v11477_v44 = vand.u32 4294901760, %v11476_v50  ;;  %v11479_v45 = vand.u32 4294901760, %v11478_v42  ;;  %5747 = vmatprep.subr.bf16.mxu0 %v5746_v43  ;;  %5171 = vmatprep.subr.bf16.mxu1 %v5170_v12  ;;  %v11486_v56 = vld [vmem:[#allocation175_spill] sm:$0xff]  ;;  %v11492_v12 = vld [vmem:[#allocation305_spill] sm:$0xff] }
 0x24f   :  { %v5748_v21 = vpack.c.bf16 %v11475_v53, %v11473_v19  ;;  %v5172_v46 = vpack.c.bf16 %v2192_v41, %v2180_v59  ;;  %v11481_v24 = vand.u32 4294901760, %v11480_v22  ;;  %v11483_v53 = vand.u32 4294901760, %v11482_v26  ;;  %v11490_v41 = vld [vmem:[#allocation303_spill] sm:$0xff] }
 0x250   :  { %v2227_v3 = vsub.f32 %v11476_v50, %v11477_v44  ;;  %v2239_v32 = vsub.f32 %v11478_v42, %v11479_v45  ;;  %v5174_v6 = vpack.c.bf16 %v2210_v38, %v2198_v31  ;;  %v11485_v18 = vand.u32 4294901760, %v11484_v39  ;;  %v11494_v38 = vld [vmem:[#allocation306_spill] sm:$0xff] }
 0x251   :  { %v5750_v28 = vpack.c.bf16 %v11483_v53, %v11481_v24  ;;  %v11487_v35 = vand.u32 4294901760, %v11486_v56  ;;  %v5176_v58 = vpack.c.bf16 %v2216_v29, %v2204_v37  ;;  %5749 = vmatpush1.bf16.msra.mxu0 %v5748_v21  ;;  %v11489_v43 = vand.u32 4294901760, %v11488_v51  ;;  %5173 = vmatpush1.bf16.msra.mxu1 %v5172_v46  ;;  %v11496_v53 = vld [vmem:[#allocation180_spill] sm:$0xff]  ;;  %v11498_v21 = vld [vmem:[#allocation181_spill] sm:$0xff] }
 0x252   :  { %v2245_v47 = vsub.f32 %v11484_v39, %v11485_v18  ;;  %v11491_v59 = vand.u32 4294901760, %v11490_v41  ;;  %v5178_v44 = vpack.c.bf16 %v2234_v60, %v2222_v52  ;;  %v2228_v45 = vand.u32 4294901760, %v2227_v3  ;;  %5175 = vmatprep.subr.bf16.mxu1 %v5174_v6  ;;  %v11500_v60 = vld [vmem:[#allocation185_spill] sm:$0xff]  ;;  %v11502_v46 = vld [vmem:[#allocation188_spill] sm:$0xff] }
 0x253   :  { %v2257_v61 = vsub.f32 %v11486_v56, %v11487_v35  ;;  %v2240_v22 = vand.u32 4294901760, %v2239_v32  ;;  %5751 = vmatprep.subr.bf16.mxu0 %v5750_v28  ;;  %v11493_v31 = vand.u32 4294901760, %v11492_v12  ;;  %v11495_v24 = vand.u32 4294901760, %v11494_v38  ;;  %v11510_v6 = vld [vmem:[#allocation313_spill] sm:$0xff] }
 0x254   :  { %v5752_v19 = vpack.c.bf16 %v11491_v59, %v11489_v43  ;;  %v11497_v18 = vand.u32 4294901760, %v11496_v53  ;;  %v11499_v29 = vand.u32 4294901760, %v11498_v21  ;;  %v2246_v51 = vand.u32 4294901760, %v2245_v47  ;;  %v11504_v59 = vld [vmem:[#allocation308_spill] sm:$0xff] }
 0x255   :  { %v5754_v26 = vpack.c.bf16 %v11495_v24, %v11493_v31  ;;  %v2258_v52 = vand.u32 4294901760, %v2257_v61  ;;  %v11501_v3 = vand.u32 4294901760, %v11500_v60  ;;  %v11503_v28 = vand.u32 4294901760, %v11502_v46  ;;  %v11506_v31 = vld [vmem:[#allocation310_spill] sm:$0xff]  ;;  %5177 = vmatpush1.bf16.msra.mxu1 %v5176_v58 }
 0x256   :  { %v2251_v37 = vsub.f32 %v11496_v53, %v11497_v18  ;;  %v2263_v35 = vsub.f32 %v11498_v21, %v11499_v29  ;;  %5753 = vmatpush1.bf16.msra.mxu0 %v5752_v19  ;;  %v5180_v41 = vpack.c.bf16 %v2240_v22, %v2228_v45  ;;  %v11505_v12 = vand.u32 4294901760, %v11504_v59  ;;  %v11508_v18 = vld [vmem:[#allocation312_spill] sm:$0xff]  ;;  %v11514_v19 = vld [vmem:[#allocation194_spill] sm:$0xff]  ;;  %5179 = vmatprep.subr.bf16.mxu1 %v5178_v44 }
 0x257   :  { %v2269_v32 = vsub.f32 %v11500_v60, %v11501_v3  ;;  %v2281_v43 = vsub.f32 %v11502_v46, %v11503_v28  ;;  %v11507_v38 = vand.u32 4294901760, %v11506_v31  ;;  %v11509_v29 = vand.u32 4294901760, %v11508_v18  ;;  %5755 = vmatprep.subr.bf16.mxu0 %v5754_v26  ;;  %v11512_v60 = vld [vmem:[#allocation193_spill] sm:$0xff] }
 0x258   :  { %v11511_v47 = vand.u32 4294901760, %v11510_v6  ;;  %v2252_v21 = vand.u32 4294901760, %v2251_v37  ;;  %v2264_v3 = vand.u32 4294901760, %v2263_v35  ;;  %v11513_v53 = vand.u32 4294901760, %v11512_v60  ;;  %v11520_v35 = vld [vmem:[#allocation319_spill] sm:$0xff] }
 0x259   :  { %v5756_v24 = vpack.c.bf16 %v11507_v38, %v11505_v12  ;;  %v11515_v45 = vand.u32 4294901760, %v11514_v19  ;;  %v5182_v59 = vpack.c.bf16 %v2258_v52, %v2246_v51  ;;  %v2270_v12 = vand.u32 4294901760, %v2269_v32  ;;  %v11516_v38 = vld [vmem:[#allocation314_spill] sm:$0xff]  ;;  %5181 = vmatpush1.bf16.msra.mxu1 %v5180_v41  ;;  %v11526_v32 = vld [vmem:[#allocation323_spill] sm:$0xff] }
 0x25a   :  { %v5758_v61 = vpack.c.bf16 %v11511_v47, %v11509_v29  ;;  %v2275_v28 = vsub.f32 %v11512_v60, %v11513_v53  ;;  %v2282_v31 = vand.u32 4294901760, %v2281_v43  ;;  %v11517_v18 = vand.u32 4294901760, %v11516_v38  ;;  %v11518_v29 = vld [vmem:[#allocation316_spill] sm:$0xff]  ;;  %v11524_v51 = vld [vmem:[#allocation322_spill] sm:$0xff]  ;;  %v11530_v38 = vld [vmem:[#allocation195_spill] sm:$0xff] }
 0x25b   :  { %v2287_v22 = vsub.f32 %v11514_v19, %v11515_v45  ;;  %5757 = vmatpush1.bf16.msra.mxu0 %v5756_v24  ;;  %v11519_v58 = vand.u32 4294901760, %v11518_v29  ;;  %v5184_v37 = vpack.c.bf16 %v2264_v3, %v2252_v21  ;;  %v11521_v6 = vand.u32 4294901760, %v11520_v35  ;;  %v11522_v53 = vld [vmem:[#allocation320_spill] sm:$0xff]  ;;  %5183 = vmatprep.subr.bf16.mxu1 %v5182_v59  ;;  %v11528_v21 = vld [vmem:[#allocation6_spill] sm:$0xff]  ;;  %v11535_v29 = vld [vmem:[#allocation309_spill] sm:$0xff] }
 0x25c   :  { %5759 = vmatprep.subr.bf16.mxu0 %v5758_v61  ;;  %v11523_v47 = vand.u32 4294901760, %v11522_v53  ;;  %v2276_v46 = vand.u32 4294901760, %v2275_v28  ;;  %v5186_v44 = vpack.c.bf16 %v2282_v31, %v2270_v12  ;;  %v11525_v52 = vand.u32 4294901760, %v11524_v51  ;;  %v11529_v61 = vld [vmem:[#allocation8_spill] sm:$0xff]  ;;  %v11533_v12 = vld [vmem:[#allocation18_spill] sm:$0xff]  ;;  %v11534_v31 = vld [vmem:[#allocation19_spill] sm:$0xff] }
 0x25d   :  { %v5760_v26 = vpack.c.bf16 %v11519_v58, %v11517_v18  ;;  %v2288_v45 = vand.u32 4294901760, %v2287_v22  ;;  %v11527_v43 = vand.u32 4294901760, %v11526_v32  ;;  %5185 = vmatpush1.bf16.msra.mxu1 %v5184_v37  ;;  %v5190_v3 = vpack.c.bf16 %v11529_v61, %v11528_v21  ;;  %v11531_v28 = vld [vmem:[#allocation12_spill] sm:$0xff]  ;;  %v11532_v22 = vld [vmem:[#allocation13_spill] sm:$0xff]  ;;  %v11542_v53 = vld [vmem:[#allocation31_spill] sm:$0xff] }
 0x25e   :  { %v5762_v60 = vpack.c.bf16 %v11523_v47, %v11521_v6  ;;  %5187 = vmatprep.subr.bf16.mxu1 %v5186_v44  ;;  %v5192_v59 = vpack.c.bf16 %v11532_v22, %v11531_v28  ;;  %v5194_v18 = vpack.c.bf16 %v11534_v31, %v11533_v12  ;;  %v11536_v58 = vld [vmem:[#allocation200_spill] sm:$0xff]  ;;  %v11540_v37 = vld [vmem:[#allocation25_spill] sm:$0xff]  ;;  %v11541_v6 = vld [vmem:[#allocation30_spill] sm:$0xff]  ;;  %v5202_v21 = vpack.c.bf16 %v11318_v1, %v11316_v23 }
 0x25f   :  { %5761 = vmatpush1.bf16.msra.mxu0 %v5760_v26  ;;  %v5764_v24 = vpack.c.bf16 %v11527_v43, %v11525_v52  ;;  %v5188_v41 = vpack.c.bf16 %v2288_v45, %v2276_v46  ;;  %v11538_v46 = vld [vmem:[#allocation232_spill] sm:$0xff]  ;;  %v11539_v26 = vld [vmem:[#allocation23_spill] sm:$0xff]  ;;  %v5198_v47 = vpack.c.bf16 %v11542_v53, %v11541_v6  ;;  %v11544_v44 = vld [vmem:[#allocation10_spill] sm:$0xff]  ;;  %v5204_v12 = vpack.c.bf16 %v11331_v0, %v11327_v40 }
 0x260   :  { %5763 = vmatprep.subr.bf16.mxu0 %v5762_v60  ;;  %v11537_v60 = vld [vmem:[#allocation228_spill] sm:$0xff]  ;;  %v5196_v35 = vpack.c.bf16 %v11540_v37, %v11539_v26  ;;  %v11543_v45 = vld [vmem:[#allocation203_spill] sm:$0xff]  ;;  %v11547_v32 = vld [vmem:[#allocation238_spill] sm:$0xff]  ;;  %v5206_v1 = vpack.c.bf16 %v11335_v48, %v11333_v54  ;;  %v5210_v0 = vpack.c.bf16 %v11352_v33, %v11350_v30  ;;  %v5212_v6 = vpack.c.bf16 %v11361_v34, %v11359_v27 }
 0x261   :  { %5189 = vmatpush1.bf16.msra.mxu1 %v5188_v41  ;;  %v11545_v51 = vld [vmem:[#allocation236_spill] sm:$0xff]  ;;  %v11553_v28 = vld [vmem:[#allocation242_spill] sm:$0xff]  ;;  %v11557_v31 = vld [vmem:[#allocation219_spill] sm:$0xff]  ;;  %v5216_v33 = vpack.c.bf16 %v11383_v25, %v11381_v63 }
 0x262   :  { %5191 = vmatprep.subr.bf16.mxu1 %v5190_v3  ;;  %v11546_v52 = vld [vmem:[#allocation208_spill] sm:$0xff]  ;;  %v11562_v26 = vld [vmem:[#allocation61_spill] sm:$0xff]  ;;  %v11564_v48 = vld [vmem:[#allocation198_spill] sm:$0xff] }
 0x263   :  { %5765 = vmatpush1.bf16.msra.mxu0 %v5764_v24  ;;  %v11548_v43 = vld [vmem:[#allocation36_spill] sm:$0xff]  ;;  %v11549_v24 = vld [vmem:[#allocation37_spill] sm:$0xff]  ;;  %v5208_v40 = vpack.c.bf16 %v11562_v26, %v11339_v16  ;;  %v11565_v37 = vld [vmem:[#allocation254_spill] sm:$0xff]  ;;  %v5214_v16 = vpack.c.bf16 %v11369_v15, %v11367_v5 }
 0x264   :  { %5767 = vmatprep.subr.bf16.mxu0 %v11530_v38  ;;  %2293 = vmatmul.mubr.f32.vlgmr.msra.gmra.mrb[0].mxu1 %v11536_v58  ;;  %v5200_v41 = vpack.c.bf16 %v11549_v24, %v11548_v43  ;;  %v11550_v61 = vld [vmem:[#allocation16_spill] sm:$0xff]  ;;  %v11567_v53 = vld [vmem:[#allocation259_spill] sm:$0xff]  ;;  %v11568_v30 = vld [vmem:[#allocation262_spill] sm:$0xff]  ;;  %v5228_v24 = vpack.c.bf16 %v11427_v57, %v11425_v36 }
 0x265   :  { %5193 = vmatpush1.bf16.msra.mxu1 %v5192_v59  ;;  %2299 = vmatprep.mubr.f32.mxu1 %v11543_v45  ;;  %v11551_v3 = vld [vmem:[#allocation212_spill] sm:$0xff]  ;;  %v11555_v59 = vld [vmem:[#allocation245_spill] sm:$0xff]  ;;  %v11573_v45 = vld [vmem:[#allocation103_spill] sm:$0xff] }
 0x266   :  { %4462 = vmatmul.mubr.f32.vlgmr.msra.gmra.mrb[0].mxu0 %v11535_v29  ;;  %5195 = vmatprep.subr.bf16.mxu1 %v5194_v18  ;;  %v11552_v38 = vld [vmem:[#allocation20_spill] sm:$0xff]  ;;  %v11571_v34 = vld [vmem:[#allocation97_spill] sm:$0xff]  ;;  %v11575_v63 = vld [vmem:[#allocation275_spill] sm:$0xff] }
 0x267   :  { %5769 = vmatpush1.bf16.msra.mxu0 %v11537_v60  ;;  %4468 = vmatprep.mubr.f32.mxu0 %v11544_v44  ;;  %v11554_v22 = vld [vmem:[#allocation216_spill] sm:$0xff]  ;;  %v5220_v5 = vpack.c.bf16 %v11571_v34, %v11396_v17  ;;  %v11572_v15 = vld [vmem:[#allocation101_spill] sm:$0xff]  ;;  %v11594_v26 = vld [vmem:[#allocation307_spill] sm:$0xff] }
 0x268   :  { %5771 = vmatprep.subr.bf16.mxu0 %v11538_v46  ;;  %2301 = vmatmul.mubr.f32.gmra.mrb[2].mxu1 %v11546_v52  ;;  %v11556_v23 = vld [vmem:[#allocation40_spill] sm:$0xff]  ;;  %v11561_v46 = vld [vmem:[#allocation250_spill] sm:$0xff]  ;;  %v11574_v52 = vld [vmem:[#allocation271_spill] sm:$0xff] }
 0x269   :  { %5197 = vmatpush1.bf16.msra.mxu1 %v5196_v35  ;;  %2307 = vmatprep.mubr.f32.mxu1 %v11551_v3  ;;  %v11558_v18 = vld [vmem:[#allocation44_spill] sm:$0xff]  ;;  %v11578_v43 = vld [vmem:[#allocation277_spill] sm:$0xff]  ;;  %v11581_v3 = vld [vmem:[#allocation286_spill] sm:$0xff] }
 0x26a   :  { %5199 = vmatprep.subr.bf16.mxu1 %v5198_v47  ;;  %4470 = vmatmul.mubr.f32.gmra.mrb[2].mxu0 %v11550_v61  ;;  %v11559_v58 = vld [vmem:[#allocation248_spill] sm:$0xff]  ;;  %v11569_v47 = vld [vmem:[#allocation265_spill] sm:$0xff] }
 0x26b   :  { %5773 = vmatpush1.bf16.msra.mxu0 %v11545_v51  ;;  %4476 = vmatprep.mubr.f32.mxu0 %v11552_v38  ;;  %v11560_v60 = vld [vmem:[#allocation224_spill] sm:$0xff]  ;;  %v5222_v51 = vpack.c.bf16 %v11573_v45, %v11572_v15  ;;  %v11584_v57 = vld [vmem:[#allocation145_spill] sm:$0xff] }
 0x26c   :  { %5775 = vmatprep.subr.bf16.mxu0 %v11547_v32  ;;  %2309 = vmatmul.mubr.f32.gmra.mrb[4].mxu1 %v11554_v22  ;;  %v11563_v54 = vld [vmem:[#allocation324_spill] sm:$0xff]  ;;  %v11577_v32 = vld [vmem:[#allocation109_spill] sm:$0xff]  ;;  %v11586_v22 = vld [vmem:[#allocation151_spill] sm:$0xff] }
 0x26d   :  { %5201 = vmatpush1.bf16.msra.mxu1 %v5200_v41  ;;  %2315 = vmatprep.mubr.f32.mxu1 %v11557_v31  ;;  %v11566_v35 = vld [vmem:[#allocation256_spill] sm:$0xff]  ;;  %v5230_v41 = vpack.c.bf16 %v11433_v14, %v11431_v4  ;;  %v5236_v4 = vpack.c.bf16 %v11584_v57, %v11451_v9  ;;  %v11585_v14 = vld [vmem:[#allocation149_spill] sm:$0xff] }
 0x26e   :  { %5203 = vmatprep.subr.bf16.mxu1 %v5202_v21  ;;  %4478 = vmatmul.mubr.f32.gmra.mrb[4].mxu0 %v11556_v23  ;;  %v11570_v27 = vld [vmem:[#allocation268_spill] sm:$0xff]  ;;  %v11580_v21 = vld [vmem:[#allocation283_spill] sm:$0xff] }
 0x26f   :  { %5777 = vmatpush1.bf16.msra.mxu0 %v11553_v28  ;;  %4484 = vmatprep.mubr.f32.mxu0 %v11558_v18  ;;  %v11576_v25 = vld [vmem:[#allocation108_spill] sm:$0xff]  ;;  %v11582_v28 = vld [vmem:[#allocation289_spill] sm:$0xff] }
 0x270   :  { %5779 = vmatprep.subr.bf16.mxu0 %v11555_v59  ;;  %2317 = vmatmul.mubr.f32.gmra.mrb[6].mxu1 %v11560_v60  ;;  %v11579_v17 = vld [vmem:[#allocation280_spill] sm:$0xff]  ;;  %v5238_v59 = vpack.c.bf16 %v11586_v22, %v11585_v14  ;;  %v5244_v60 = vpack.c.bf16 %v11478_v42, %v11476_v50  ;;  %v11601_v50 = vld [vmem:[#allocation318_spill] sm:$0xff]  ;;  %v11602_v42 = vld [vmem:[#allocation193_spill] sm:$0xff] }
 0x271   :  { %5205 = vmatpush1.bf16.msra.mxu1 %v5204_v12  ;;  %2517 = vmatprep.mubr.f32.mxu1 %v11564_v48  ;;  %v11583_v36 = vld [vmem:[#allocation292_spill] sm:$0xff]  ;;  %v11587_v12 = vld [vmem:[#allocation295_spill] sm:$0xff]  ;;  %v11597_v48 = vld [vmem:[#allocation181_spill] sm:$0xff] }
 0x272   :  { %5207 = vmatprep.subr.bf16.mxu1 %v5206_v1  ;;  %4486 = vmatmul.mubr.f32.gmra.mrb[6].mxu0 %v11563_v54  ;;  %v11590_v1 = vld [vmem:[#allocation157_spill] sm:$0xff]  ;;  %v11593_v9 = vld [vmem:[#allocation304_spill] sm:$0xff] }
 0x273   :  { %5781 = vmatpush1.bf16.msra.mxu0 %v11559_v58  ;;  %4621 = vmatprep.mubr.f32.mxu0 %v11395_v20  ;;  %v5218_v20 = vpack.c.bf16 %v11387_v10, %v11385_v11  ;;  %v5224_v11 = vpack.c.bf16 %v11577_v32, %v11576_v25  ;;  %v5226_v10 = vpack.c.bf16 %v11420_v8, %v11418_v13  ;;  %v11592_v58 = vld [vmem:[#allocation301_spill] sm:$0xff] }
 0x274   :  { %5783 = vmatprep.subr.bf16.mxu0 %v11561_v46  ;;  %v5232_v13 = vpack.c.bf16 %v11441_v49, %v11437_v62  ;;  %v5234_v8 = vpack.c.bf16 %v11445_v55, %v11443_v2  ;;  %v11588_v62 = vld [vmem:[#allocation298_spill] sm:$0xff]  ;;  %v11589_v49 = vld [vmem:[#allocation156_spill] sm:$0xff]  ;;  %v11591_v55 = vld [vmem:[#allocation161_spill] sm:$0xff]  ;;  %v5246_v46 = vpack.c.bf16 %v11486_v56, %v11484_v39  ;;  %v5252_v39 = vpack.c.bf16 %v11514_v19, %v11602_v42 }
 0x275   :  { %5209 = vmatpush1.bf16.msra.mxu1 %v5208_v40  ;;  %v5240_v2 = vpack.c.bf16 %v11590_v1, %v11589_v49  ;;  %v5242_v31 = vpack.c.bf16 %v11467_v7, %v11591_v55  ;;  %v11595_v40 = vld [vmem:[#allocation311_spill] sm:$0xff]  ;;  %v11603_v56 = vld [vmem:[#allocation321_spill] sm:$0xff] }
 0x276   :  { %5211 = vmatprep.subr.bf16.mxu1 %v5210_v0  ;;  %v11596_v0 = vld [vmem:[#allocation180_spill] sm:$0xff]  ;;  %v11608_v19 = vld [vmem:[#allocation217_spill] sm:$0xff] }
 0x277   :  { %5785 = vmatpush1.bf16.msra.mxu0 %v11565_v37  ;;  %v5248_v7 = vpack.c.bf16 %v11597_v48, %v11596_v0  ;;  %v11598_v37 = vld [vmem:[#allocation185_spill] sm:$0xff] }
 0x278   :  { %5787 = vmatprep.subr.bf16.mxu0 %v11566_v35  ;;  %v11599_v35 = vld [vmem:[#allocation188_spill] sm:$0xff] }
 0x279   :  { %5213 = vmatpush1.bf16.msra.mxu1 %v5212_v6  ;;  %v5250_v6 = vpack.c.bf16 %v11599_v35, %v11598_v37 }
 0x27a   :  { %5215 = vmatprep.subr.bf16.mxu1 %v5214_v16  ;;  %v11600_v16 = vld [vmem:[#allocation315_spill] sm:$0xff] }
 0x27b   :  { %5789 = vmatpush1.bf16.msra.mxu0 %v11567_v53  ;;  %v11604_v53 = vld [vmem:[#allocation201_spill] sm:$0xff] }
 0x27c   :  { %5791 = vmatprep.subr.bf16.mxu0 %v11568_v30  ;;  %v11605_v30 = vld [vmem:[#allocation205_spill] sm:$0xff] }
 0x27d   :  { %5217 = vmatpush1.bf16.msra.mxu1 %v5216_v33  ;;  %v11606_v33 = vld [vmem:[#allocation209_spill] sm:$0xff] }
 0x27e   :  { %5219 = vmatprep.subr.bf16.mxu1 %v5218_v20  ;;  %v11607_v20 = vld [vmem:[#allocation213_spill] sm:$0xff] }
 0x27f   :  { %5793 = vmatpush1.bf16.msra.mxu0 %v11569_v47  ;;  %v233_v47 = vlaneseq }
 0x280   :  { %5795 = vmatprep.subr.bf16.mxu0 %v11570_v27 }
 0x281   :  { %5221 = vmatpush1.bf16.msra.mxu1 %v5220_v5 }
 0x282   :  { %5223 = vmatprep.subr.bf16.mxu1 %v5222_v51 }
 0x283   :  { %5797 = vmatpush1.bf16.msra.mxu0 %v11574_v52 }
 0x284   :  { %5799 = vmatprep.subr.bf16.mxu0 %v11575_v63 }
 0x285   :  { %5225 = vmatpush1.bf16.msra.mxu1 %v5224_v11 }
 0x286   :  { %5227 = vmatprep.subr.bf16.mxu1 %v5226_v10 }
 0x287   :  { %5801 = vmatpush1.bf16.msra.mxu0 %v11578_v43 }
 0x288   :  { %5803 = vmatprep.subr.bf16.mxu0 %v11579_v17 }
 0x289   :  { %5229 = vmatpush1.bf16.msra.mxu1 %v5228_v24 }
 0x28a   :  { %5231 = vmatprep.subr.bf16.mxu1 %v5230_v41 }
 0x28b   :  { %5805 = vmatpush1.bf16.msra.mxu0 %v11580_v21 }
 0x28c   :  { %5807 = vmatprep.subr.bf16.mxu0 %v11581_v3 }
 0x28d   :  { %5233 = vmatpush1.bf16.msra.mxu1 %v5232_v13 }
 0x28e   :  { %5235 = vmatprep.subr.bf16.mxu1 %v5234_v8 }
 0x28f   :  { %5809 = vmatpush1.bf16.msra.mxu0 %v11582_v28 }
 0x290   :  { %5811 = vmatprep.subr.bf16.mxu0 %v11583_v36 }
 0x291   :  { %5237 = vmatpush1.bf16.msra.mxu1 %v5236_v4 }
 0x292   :  { %5239 = vmatprep.subr.bf16.mxu1 %v5238_v59 }
 0x293   :  { %5813 = vmatpush1.bf16.msra.mxu0 %v11587_v12 }
 0x294   :  { %5815 = vmatprep.subr.bf16.mxu0 %v11588_v62 }
 0x295   :  { %5241 = vmatpush1.bf16.msra.mxu1 %v5240_v2 }
 0x296   :  { %5243 = vmatprep.subr.bf16.mxu1 %v5242_v31 }
 0x297   :  { %5817 = vmatpush1.bf16.msra.mxu0 %v11592_v58 }
 0x298   :  { %5819 = vmatprep.subr.bf16.mxu0 %v11593_v9 }
 0x299   :  { %5245 = vmatpush1.bf16.msra.mxu1 %v5244_v60 }
 0x29a   :  { %5247 = vmatprep.subr.bf16.mxu1 %v5246_v46 }
 0x29b   :  { %5821 = vmatpush1.bf16.msra.mxu0 %v11594_v26 }
 0x29c   :  { %5823 = vmatprep.subr.bf16.mxu0 %v11595_v40 }
 0x29d   :  { %5249 = vmatpush1.bf16.msra.mxu1 %v5248_v7 }
 0x29e   :  { %5251 = vmatprep.subr.bf16.mxu1 %v5250_v6 }
 0x29f   :  { %5825 = vmatpush1.bf16.msra.mxu0 %v11600_v16 }
 0x2a0   :  { %5827 = vmatprep.subr.bf16.mxu0 %v11601_v50 }
 0x2a1   :  { %5253 = vmatpush1.bf16.msra.mxu1 %v5252_v39 }
 0x2a3   :  { %5829 = vmatpush1.bf16.msra.mxu0 %v11603_v56 }
 0x2a4   :  { %2520 = vmatmul.mubr.f32.vlgmr.msra.gmra.mrb[0].mxu1 %v11604_v53 }
 0x2a5   :  { %2527 = vmatprep.mubr.f32.mxu1 %v11605_v30 }
 0x2a6   :  { %4623 = vmatmul.mubr.f32.vlgmr.msra.gmra.mrb[0].mxu0 %v11535_v29  ;;  %v11609_v29 = vld [vmem:[#allocation221_spill] sm:$0xff] }
 0x2a7   :  { %4629 = vmatprep.mubr.f32.mxu0 %v11544_v44  ;;  %v11610_v44 = vld [vmem:[#allocation225_spill] sm:$0xff] }
 0x2a8   :  { %2530 = vmatmul.mubr.f32.gmra.mrb[2].mxu1 %v11606_v33 }
 0x2a9   :  { %2537 = vmatprep.mubr.f32.mxu1 %v11607_v20 }
 0x2aa   :  { %4631 = vmatmul.mubr.f32.gmra.mrb[2].mxu0 %v11550_v61  ;;  %v234_v61 = vshrl.u32 %v233_v47, 7 }
 0x2ab   :  { %4637 = vmatprep.mubr.f32.mxu0 %v11552_v38  ;;  %v231_v38 = vld [vmem:[%s9463_s2] sm:$0x3]  ;;  %s6001_s2 = smov [#allocation2]  }
 0x2ac   :  { %2540 = vmatmul.mubr.f32.gmra.mrb[4].mxu1 %v11608_v19  ;;  %v235_v27 = vsub.s32 0, %v234_v61  ;;  %v239_v34 = vsub.s32 1, %v234_v61  ;;  %s4667_s12 = sshll.u32 %s6001_s2, 4  ;;  %s4668_s12 = int_to_ptr.vmem [resolvable:$true] %s4667_s12 }
 0x2ad   :  { %2547 = vmatprep.mubr.f32.mxu1 %v11609_v29  ;;  %s5977_s13 = scalar_lea.vmem %s4668_s12, 1024  ;;  %p5982_p1 = scmp.lt.s32.totalorder %s4668_s12, %s4668_s12 }
 0x2ae   :  { %4639 = vmatmul.mubr.f32.gmra.mrb[4].mxu0 %v11556_v23  ;;  %v236_v5 = vrot.slane %v231_v38, %v235_v27  ;;  %v240_v23 = vrot.slane %v231_v38, %v239_v34  ;;  %p5978_p0 = scmp.ne.s32.totalorder %s4668_s12, %s5977_s13  ;;  %p5983_p2 = scmp.lt.s32.totalorder %s5977_s13, %s5977_s13 }
 0x2af   :  { %4645 = vmatprep.mubr.f32.mxu0 %v11558_v18 }
 0x2b0   :  { %2550 = vmatmul.mubr.f32.gmra.mrb[6].mxu1 %v11610_v44  ;;  %p5984_p3 = por %p5983_p2, %p5982_p1 }
 0x2b2   :  { %4647 = vmatmul.mubr.f32.gmra.mrb[6].mxu0 %v11563_v54  ;;  %p5985_p4 = pnand %p5984_p3, %p5978_p0 }
 0x377   :  { %v2521_v45 = vpop.f32.mrb[0].mxu1 }
 0x378   :  { %v5830_v18 = vadd.f32 %v2521_v45, %v236_v5  ;;  %v2523_v52 = vpop.f32.mrb[1].mxu1 }
 0x379   :  { %v4624_v15 = vpop.f32.mrb[0].mxu0  ;;  %v5832_v63 = vadd.f32 %v2523_v52, %v240_v23 }
 0x37a   :  { %v4626_v51 = vpop.f32.mrb[1].mxu0  ;;  %v5831_v25 = vadd.f32 %v5830_v18, %v4624_v15 }
 0x37b   :  { %v5833_v32 = vadd.f32 %v5832_v63, %v4626_v51  ;;  %v2531_v11 = vpop.f32.mrb[2].mxu1 }
 0x37c   :  { %4653 = vst [vmem:[#allocation2] sm:$0xff] %v5831_v25  ;;  %v5834_v43 = vadd.f32 %v2531_v11, %v236_v5  ;;  %v2533_v17 = vpop.f32.mrb[3].mxu1 }
 0x37d   :  { %v4632_v54 = vpop.f32.mrb[2].mxu0  ;;  %4655 = vst.msk [vmem:[#allocation2 + $0x8] sm:$0xff] %vm4654_vm0, %v5833_v32  ;;  %v5836_v24 = vadd.f32 %v2533_v17, %v240_v23 }
 0x37e   :  { %v4634_v10 = vpop.f32.mrb[3].mxu0  ;;  %v5835_v41 = vadd.f32 %v5834_v43, %v4632_v54 }
 0x37f   :  { %v5837_v3 = vadd.f32 %v5836_v24, %v4634_v10  ;;  %v2541_v13 = vpop.f32.mrb[4].mxu1 }
 0x380   :  { %4656 = vst [vmem:[#allocation2 + $0x10] sm:$0xff] %v5835_v41  ;;  %v5838_v28 = vadd.f32 %v2541_v13, %v236_v5  ;;  %v2543_v36 = vpop.f32.mrb[5].mxu1 }
 0x381   :  { %v4640_v21 = vpop.f32.mrb[4].mxu0  ;;  %4657 = vst.msk [vmem:[#allocation2 + $0x18] sm:$0xff] %vm4654_vm0, %v5837_v3  ;;  %v5840_v57 = vadd.f32 %v2543_v36, %v240_v23 }
 0x382   :  { %v4642_v8 = vpop.f32.mrb[5].mxu0  ;;  %v5839_v4 = vadd.f32 %v5838_v28, %v4640_v21 }
 0x383   :  { %v5841_v22 = vadd.f32 %v5840_v57, %v4642_v8  ;;  %v2551_v59 = vpop.f32.mrb[6].mxu1 }
 0x384   :  { %4658 = vst [vmem:[#allocation2 + $0x20] sm:$0xff] %v5839_v4  ;;  %v5842_v62 = vadd.f32 %v2551_v59, %v236_v5  ;;  %v2553_v49 = vpop.f32.mrb[7].mxu1 }
 0x385   :  { %v4648_v14 = vpop.f32.mrb[6].mxu0  ;;  %4659 = vst.msk [vmem:[#allocation2 + $0x28] sm:$0xff] %vm4654_vm0, %v5841_v22  ;;  %v5844_v1 = vadd.f32 %v2553_v49, %v240_v23 }
 0x386   :  { %v4650_v12 = vpop.f32.mrb[7].mxu0  ;;  %v5843_v2 = vadd.f32 %v5842_v62, %v4648_v14 }
 0x387   :  { %v5845_v55 = vadd.f32 %v5844_v1, %v4650_v12 }
 0x388   :  { %4660 = vst [vmem:[#allocation2 + $0x30] sm:$0xff] %v5843_v2 }
 0x389   :  { %4661 = vst.msk [vmem:[#allocation2 + $0x38] sm:$0xff] %vm4654_vm0, %v5845_v55 }
 0x38a   :  { %5988 = shalt.err (!%p5985_p4)
}
 0x38b   :  { %s5989_s16 = scalar_lea.hbm %s9464_s3, 1024 }
 0x38c   :  { %p5990_p5 = scmp.ne.s32.totalorder %s9464_s3, %s5989_s16  ;;  %p5993_p6 = scmp.lt.u32.totalorder %s5989_s16, %s9464_s3 }
 0x38e   :  { %p5995_p7 = pnand %p5993_p6, %p5990_p5 }
 0x390   :  { %5998 = shalt.err (!%p5995_p7)
}
 0x391   :  { %s6002_s21 = smov 256   ;;  %s6003_s22 = smov 16  }
 0x392   :  { %4673 = dma.vmem_to_hbm [thread:$0]  %s4668_s12, 1024, %s9464_s3, [#allocation3], %s6002_s21, %s6002_s21, %s6003_s22  }
 0x393   :  { %5999 = dma.done.wait [#allocation3], 1024  }
 0x394   :  { %6000 = vsyncadd [#allocation3], 4294966272 }
 0x395   :  { %4677 = vsyncpa [#allocation3], 1 }

</bundles_post_ra>
